<compile_context>
chip_gen: v7x
topology: tpu7x:2x2x1
jax: 0.10.0
libtpu: 0.0.40
codegen_flags: <defaults>
</compile_context>

<pallas_src>
import functools

import jax
import jax.numpy as jnp
from jax import lax
from jax.experimental import pallas as pl
from jax.experimental.pallas import tpu as pltpu


# -----------------------------------------------------------------------------
# Pallas kernel: full TransformerMPNN forward for the whole flattened batch.
# -----------------------------------------------------------------------------
def transformer_mpnn_kernel(
    x_ref, adj_ref, bias_ref,
    wg_ref, bg_ref,                                  # GCNConv
    wkqv_ref, bkqv_ref,                              # fused K|Q|V projection
    wo_ref, bo_ref,                                  # attention out projection
    ln1g_ref, ln1b_ref, ln2g_ref, ln2b_ref,          # block layernorms
    w1_ref, b1_ref, w2_ref, b2_ref,                  # MLP
    wa_ref, ba_ref,                                  # aggregation Linear (2D->D)
    lnfg_ref, lnfb_ref,                              # final layernorm
    out_ref,
    *, n_heads):

    bf16 = jnp.bfloat16

    def mm(a, b):
        # bf16 MXU inputs, f32 accumulation.
        return jnp.dot(a.astype(bf16), b.astype(bf16),
                       preferred_element_type=jnp.float32)

    def mm_nt(a, b):
        # a @ b.T without materializing the transpose (NT dot_general).
        return lax.dot_general(a.astype(bf16), b.astype(bf16),
                               (((1,), (1,)), ((), ())),
                               preferred_element_type=jnp.float32)

    def layer_norm(v, g, b, eps=1e-5):
        mu = jnp.mean(v, axis=-1, keepdims=True)
        var = jnp.mean((v - mu) ** 2, axis=-1, keepdims=True)
        return (v - mu) * lax.rsqrt(var + eps) * g + b

    x = x_ref[...]                                    # (BN, D) float32
    D = x.shape[-1]
    dk = D // n_heads
    bias = bias_ref[...]                              # (BN, BN) block-diag mask

    # ---------------- GCN branch:  A_blockdiag @ (x @ Wg) + bg ----------------
    # adjacency kept f32 for parity with torch GCNConv; x@Wg goes through bf16.
    gcn = jnp.dot(adj_ref[...], mm(x, wg_ref[...]),
                  preferred_element_type=jnp.float32) + bg_ref[...]

    # ---------------- Transformer branch ----------------
    h = layer_norm(x, ln1g_ref[...], ln1b_ref[...])           # layer_norm_1

    # Fused K|Q|V projection: one (BN, 3D) MXU pass, lane-aligned slices.
    # 1/sqrt(dk) is already folded into the Q columns/bias in the wrapper.
    kqv = mm(h, wkqv_ref[...]) + bkqv_ref[...]                # (BN, 3D) f32
    K = kqv[:, 0:D]
    Q = kqv[:, D:2 * D]
    V = kqv[:, 2 * D:3 * D]

    # Per-head scores across the whole flattened batch; per-graph softmax via
    # the additive block-diagonal mask. Normalized probability blocks are
    # stacked along lanes, per-head V_h @ Wo_h slabs along sublanes, so the
    # out-projection becomes a single lane-dense K = n_heads*BN matmul.
    p_blocks = []
    vwo_blocks = []
    for hd in range(n_heads):
        lo, hi = hd * dk, (hd + 1) * dk
        # matches torch.einsum('bihx,bjhx->bhij'): s[i, j] = K_i . Q_j
        s = mm_nt(K[:, lo:hi], Q[:, lo:hi]) + bias            # (BN, BN)
        s = s - jnp.max(s, axis=-1, keepdims=True)
        e = jnp.exp(s)
        l = jnp.sum(e, axis=-1, keepdims=True)                # (BN, 1)
        p_blocks.append(e * pl.reciprocal(l, approx=True))    # normalized probs
        vwo_blocks.append(mm(V[:, lo:hi], wo_ref[lo:hi, :]))  # (BN, D)
    p_all = jnp.concatenate(p_blocks, axis=1)                 # (BN, H*BN)
    vwo_all = jnp.concatenate(vwo_blocks, axis=0)             # (H*BN, D)
    attn = mm(p_all, vwo_all) + bo_ref[...]                   # (BN, D)
    h = h + attn                                              # residual 1

    h2 = layer_norm(h, ln2g_ref[...], ln2b_ref[...])          # layer_norm_2
    hidden = jnp.maximum(mm(h2, w1_ref[...]) + b1_ref[...], 0.0)
    t_out = h + mm(hidden, w2_ref[...]) + b2_ref[...]         # residual 2

    # -------- aggregation Linear: one K=2D contraction on cat([gcn, t_out]) --
    agg = mm(jnp.concatenate([gcn, t_out], axis=1), wa_ref[...]) + ba_ref[...]

    # -------- final layernorm + outer residual --------
    out_ref[...] = layer_norm(agg, lnfg_ref[...], lnfb_ref[...]) + x


# -----------------------------------------------------------------------------
# Wrapper: flatten the batch to (B*N, D), build block-diagonal adjacency and
# attention mask, fuse/fold weights, one grid-less pallas_call.
# -----------------------------------------------------------------------------
def transformer_mpnn(x, adj, params, n_heads):
    B, N, D = x.shape
    BN = B * N
    bf16 = jnp.bfloat16
    f32 = jnp.float32
    dk = D // n_heads
    scaling = float(dk) ** (-0.5)

    x_flat = x.astype(f32).reshape(BN, D)

    # Block-diagonal normalized adjacency (f32): one matmul covers all graphs.
    adj_bd = jnp.zeros((BN, BN), f32)
    for b in range(B):
        adj_bd = adj_bd.at[b * N:(b + 1) * N, b * N:(b + 1) * N].set(
            adj[b].astype(f32))

    # Additive attention mask: 0 inside a graph, -1e9 across graphs (keeps the
    # row max / softmax strictly per-graph).
    gid = jnp.repeat(jnp.arange(B, dtype=jnp.int32), N)
    attn_bias = jnp.where(gid[:, None] == gid[None, :], 0.0, -1e9).astype(f32)

    # Fuse K/Q/V weights -> (D, 3D); fold 1/sqrt(dk) into the Q columns/bias.
    wkqv = jnp.concatenate(
        [params["wk"], params["wq"] * scaling, params["wv"]], axis=1).astype(bf16)
    bkqv = jnp.concatenate(
        [params["bk"], params["bq"] * scaling, params["bv"]], axis=1).astype(f32)

    args = (
        x_flat,
        adj_bd,
        attn_bias,
        params["wg"].astype(bf16), params["bg"].astype(f32),
        wkqv, bkqv,
        params["wo"].astype(bf16), params["bo"].astype(f32),
        params["ln1_g"].astype(f32), params["ln1_b"].astype(f32),
        params["ln2_g"].astype(f32), params["ln2_b"].astype(f32),
        params["w1"].astype(bf16), params["b1"].astype(f32),
        params["w2"].astype(bf16), params["b2"].astype(f32),
        params["wa"].astype(bf16), params["ba"].astype(f32),
        params["lnf_g"].astype(f32), params["lnf_b"].astype(f32),
    )

    kernel = functools.partial(transformer_mpnn_kernel, n_heads=n_heads)
    out_flat = pl.pallas_call(
        kernel,
        out_shape=jax.ShapeDtypeStruct((BN, D), f32),
        input_output_aliases={0: 0},   # out = f(...) + x, x not needed afterwards
    )(*args)
    return out_flat.reshape(B, N, D)


# -----------------------------------------------------------------------------
# Glue: torch_geometric gcn_norm (add self loops + symmetric normalization)
# turned into a dense normalized adjacency for one graph.
# -----------------------------------------------------------------------------
def build_normalized_adj(src, dst, edge_weight, num_nodes):
    a = jnp.zeros((num_nodes, num_nodes), jnp.float32)
    a = a.at[dst, src].add(edge_weight)                # message flows src -> dst
    a = a + jnp.eye(num_nodes, dtype=jnp.float32)      # self loops, weight 1
    deg = jnp.sum(a, axis=1)                           # weighted in-degree
    dinv = jnp.where(deg > 0, deg ** -0.5, 0.0)
    return dinv[:, None] * a * dinv[None, :]           # D^-1/2 (A+I) D^-1/2


# -----------------------------------------------------------------------------
# Pure-JAX per-graph reference in torch ordering, with the SAME bf16-matmul /
# f32-accumulate policy, so the tolerance check validates kernel structure
# rather than precision policy.
# -----------------------------------------------------------------------------
def reference(x, adj, p, n_heads):
    bf16 = jnp.bfloat16

    def mm(a, b):
        return jnp.dot(a.astype(bf16), b.astype(bf16),
                       preferred_element_type=jnp.float32)

    def ln(v, g, b, eps=1e-5):
        mu = jnp.mean(v, -1, keepdims=True)
        var = jnp.mean((v - mu) ** 2, -1, keepdims=True)
        return (v - mu) * lax.rsqrt(var + eps) * g + b

    def single(xg, ag):
        D = xg.shape[-1]
        dk = D // n_heads
        gcn = jnp.dot(ag, mm(xg, p["wg"]),
                      preferred_element_type=jnp.float32) + p["bg"]
        h = ln(xg, p["ln1_g"], p["ln1_b"])
        K = mm(h, p["wk"]) + p["bk"]
        Q = mm(h, p["wq"]) + p["bq"]
        V = mm(h, p["wv"]) + p["bv"]
        attn = jnp.zeros_like(xg)
        for hd in range(n_heads):
            lo, hi = hd * dk, (hd + 1) * dk
            s = mm(K[:, lo:hi], Q[:, lo:hi].T) * (dk ** -0.5)
            s = s - jnp.max(s, -1, keepdims=True)
            e = jnp.exp(s)
            l = jnp.sum(e, -1, keepdims=True)
            o = mm(e, V[:, lo:hi]) / l
            attn = attn + mm(o, p["wo"][lo:hi, :])
        attn = attn + p["bo"]
        h = h + attn
        h2 = ln(h, p["ln2_g"], p["ln2_b"])
        mlp = mm(jnp.maximum(mm(h2, p["w1"]) + p["b1"], 0.0), p["w2"]) + p["b2"]
        t_out = h + mlp
        agg = mm(jnp.concatenate([gcn, t_out], -1), p["wa"]) + p["ba"]
        return ln(agg, p["lnf_g"], p["lnf_b"]) + xg

    return jax.vmap(single)(x, adj)


# -----------------------------------------------------------------------------
if __name__ == "__main__":
    B = 4            # graphs per batch (folded into the sublane dimension)
    N = 16           # nodes per graph
    D = 128          # d_model
    H = 4            # n_heads
    MLP = 2          # mlp_expansion_factor
    E = 48           # edges per graph

    key = jax.random.PRNGKey(0)
    ks = jax.random.split(key, 24)

    def w(k, shape, scale=0.05):
        return scale * jax.random.normal(k, shape, jnp.float32)

    params = {
        # GCNConv: lin weight (pre-transposed to (in, out)) + bias
        "wg": w(ks[0], (D, D)), "bg": w(ks[1], (1, D)),
        # attention projections (pre-transposed) + biases
        "wk": w(ks[2], (D, D)), "bk": w(ks[3], (1, D)),
        "wq": w(ks[4], (D, D)), "bq": w(ks[5], (1, D)),
        "wv": w(ks[6], (D, D)), "bv": w(ks[7], (1, D)),
        "wo": w(ks[8], (D, D)), "bo": w(ks[9], (1, D)),
        # layernorms (torch default init: gamma=1, beta=0)
        "ln1_g": jnp.ones((1, D), jnp.float32), "ln1_b": jnp.zeros((1, D), jnp.float32),
        "ln2_g": jnp.ones((1, D), jnp.float32), "ln2_b": jnp.zeros((1, D), jnp.float32),
        "lnf_g": jnp.ones((1, D), jnp.float32), "lnf_b": jnp.zeros((1, D), jnp.float32),
        # MLP
        "w1": w(ks[10], (D, D * MLP)), "b1": w(ks[11], (1, D * MLP)),
        "w2": w(ks[12], (D * MLP, D)), "b2": w(ks[13], (1, D)),
        # aggregation Linear(2D -> D), pre-transposed to (2D, D)
        "wa": w(ks[14], (2 * D, D)), "ba": w(ks[16], (1, D)),
    }

    # node features, random graphs, positive edge weights
    x = jax.random.normal(ks[17], (B, N, D), jnp.float32)
    src = jax.random.randint(ks[18], (B, E), 0, N)
    dst = jax.random.randint(ks[19], (B, E), 0, N)
    edge_attr = 0.5 + jax.random.uniform(ks[20], (B, E), jnp.float32)

    adj = jax.vmap(lambda s, d, ew: build_normalized_adj(s, d, ew, N))(
        src, dst, edge_attr)

    out = transformer_mpnn(x, adj, params, n_heads=H)
    out = jax.block_until_ready(out)

    ref = reference(x, adj, params, H)
    assert out.shape == (B, N, D)
    # tolerance absorbs bf16 re-association (p @ (V@Wo) vs (p@V) @ Wo) and the
    # approx reciprocal; structural bugs would produce O(1) errors.
    assert jnp.allclose(out, ref, atol=2e-2, rtol=2e-2), (
        f"max abs err {jnp.max(jnp.abs(out - ref))}")

    print("KERNEL_OK")
</pallas_src>

<mosaic_0001>
module attributes {stable_mosaic.version = 11 : i64} {
  func.func @transformer_mpnn_kernel(%arg0: memref<64x128xf32, #tpu.memory_space<vmem>>, %arg1: memref<64x64xf32, #tpu.memory_space<vmem>>, %arg2: memref<64x64xf32, #tpu.memory_space<vmem>>, %arg3: memref<128x128xbf16, #tpu.memory_space<vmem>>, %arg4: memref<1x128xf32, #tpu.memory_space<vmem>>, %arg5: memref<128x384xbf16, #tpu.memory_space<vmem>>, %arg6: memref<1x384xf32, #tpu.memory_space<vmem>>, %arg7: memref<128x128xbf16, #tpu.memory_space<vmem>>, %arg8: memref<1x128xf32, #tpu.memory_space<vmem>>, %arg9: memref<1x128xf32, #tpu.memory_space<vmem>>, %arg10: memref<1x128xf32, #tpu.memory_space<vmem>>, %arg11: memref<1x128xf32, #tpu.memory_space<vmem>>, %arg12: memref<1x128xf32, #tpu.memory_space<vmem>>, %arg13: memref<128x256xbf16, #tpu.memory_space<vmem>>, %arg14: memref<1x256xf32, #tpu.memory_space<vmem>>, %arg15: memref<256x128xbf16, #tpu.memory_space<vmem>>, %arg16: memref<1x128xf32, #tpu.memory_space<vmem>>, %arg17: memref<256x128xbf16, #tpu.memory_space<vmem>>, %arg18: memref<1x128xf32, #tpu.memory_space<vmem>>, %arg19: memref<1x128xf32, #tpu.memory_space<vmem>>, %arg20: memref<1x128xf32, #tpu.memory_space<vmem>>, %arg21: memref<64x128xf32, #tpu.memory_space<vmem>>) attributes {dimension_semantics = [], scalar_prefetch = 0 : i64, scratch_operands = 0 : i64, tpu.core_type = #tpu.core_type<tc>} {
    %c0 = arith.constant 0 : index
    %c0_0 = arith.constant 0 : index
    %0 = vector.load %arg0[%c0, %c0_0] : memref<64x128xf32, #tpu.memory_space<vmem>>, vector<64x128xf32>
    %c0_1 = arith.constant 0 : index
    %c0_2 = arith.constant 0 : index
    %1 = vector.load %arg2[%c0_1, %c0_2] : memref<64x64xf32, #tpu.memory_space<vmem>>, vector<64x64xf32>
    %c0_3 = arith.constant 0 : index
    %c0_4 = arith.constant 0 : index
    %2 = vector.load %arg1[%c0_3, %c0_4] : memref<64x64xf32, #tpu.memory_space<vmem>>, vector<64x64xf32>
    %c0_5 = arith.constant 0 : index
    %c0_6 = arith.constant 0 : index
    %3 = vector.load %arg3[%c0_5, %c0_6] : memref<128x128xbf16, #tpu.memory_space<vmem>>, vector<128x128xbf16>
    %4 = arith.truncf %0 : vector<64x128xf32> to vector<64x128xbf16>
    %cst = arith.constant dense<0.000000e+00> : vector<64x128xf32>
    %5 = tpu.matmul %4, %3, %cst {dimension_numbers = #tpu.dot_dimension_numbers<[1], [0], [0], [1], [0, 0, 1, 1], [], []>} : vector<64x128xbf16>, vector<128x128xbf16>, vector<64x128xf32> -> vector<64x128xf32>
    %cst_7 = arith.constant dense<0.000000e+00> : vector<64x128xf32>
    %6 = tpu.matmul %2, %5, %cst_7 {dimension_numbers = #tpu.dot_dimension_numbers<[1], [0], [0], [1], [0, 0, 1, 1], [], []>} : vector<64x64xf32>, vector<64x128xf32>, vector<64x128xf32> -> vector<64x128xf32>
    %c0_8 = arith.constant 0 : index
    %c0_9 = arith.constant 0 : index
    %7 = vector.load %arg4[%c0_8, %c0_9] : memref<1x128xf32, #tpu.memory_space<vmem>>, vector<1x128xf32>
    %8 = vector.broadcast %7 : vector<1x128xf32> to vector<64x128xf32>
    %9 = arith.addf %6, %8 : vector<64x128xf32>
    %c0_10 = arith.constant 0 : index
    %c0_11 = arith.constant 0 : index
    %10 = vector.load %arg9[%c0_10, %c0_11] : memref<1x128xf32, #tpu.memory_space<vmem>>, vector<1x128xf32>
    %c0_12 = arith.constant 0 : index
    %c0_13 = arith.constant 0 : index
    %11 = vector.load %arg10[%c0_12, %c0_13] : memref<1x128xf32, #tpu.memory_space<vmem>>, vector<1x128xf32>
    %cst_14 = arith.constant dense<0.000000e+00> : vector<64xf32>
    %12 = vector.multi_reduction <add>, %0, %cst_14 [1] : vector<64x128xf32> to vector<64xf32>
    %13 = vector.shape_cast %12 : vector<64xf32> to vector<64x1xf32>
    %cst_15 = arith.constant 1.280000e+02 : f32
    %14 = vector.broadcast %cst_15 : f32 to vector<64x1xf32>
    %15 = arith.divf %13, %14 : vector<64x1xf32>
    %16 = vector.broadcast %15 : vector<64x1xf32> to vector<64x128xf32>
    %17 = arith.subf %0, %16 : vector<64x128xf32>
    %18 = arith.mulf %17, %17 : vector<64x128xf32>
    %cst_16 = arith.constant dense<0.000000e+00> : vector<64xf32>
    %19 = vector.multi_reduction <add>, %18, %cst_16 [1] : vector<64x128xf32> to vector<64xf32>
    %20 = vector.shape_cast %19 : vector<64xf32> to vector<64x1xf32>
    %cst_17 = arith.constant 1.280000e+02 : f32
    %21 = vector.broadcast %cst_17 : f32 to vector<64x1xf32>
    %22 = arith.divf %20, %21 : vector<64x1xf32>
    %23 = vector.broadcast %15 : vector<64x1xf32> to vector<64x128xf32>
    %24 = arith.subf %0, %23 : vector<64x128xf32>
    %cst_18 = arith.constant 9.99999974E-6 : f32
    %25 = vector.broadcast %cst_18 : f32 to vector<64x1xf32>
    %26 = arith.addf %22, %25 : vector<64x1xf32>
    %27 = math.rsqrt %26 : vector<64x1xf32>
    %28 = vector.broadcast %27 : vector<64x1xf32> to vector<64x128xf32>
    %29 = arith.mulf %24, %28 : vector<64x128xf32>
    %30 = vector.broadcast %10 : vector<1x128xf32> to vector<64x128xf32>
    %31 = arith.mulf %29, %30 : vector<64x128xf32>
    %32 = vector.broadcast %11 : vector<1x128xf32> to vector<64x128xf32>
    %33 = arith.addf %31, %32 : vector<64x128xf32>
    %c0_19 = arith.constant 0 : index
    %c0_20 = arith.constant 0 : index
    %34 = vector.load %arg5[%c0_19, %c0_20] : memref<128x384xbf16, #tpu.memory_space<vmem>>, vector<128x384xbf16>
    %35 = arith.truncf %33 : vector<64x128xf32> to vector<64x128xbf16>
    %cst_21 = arith.constant dense<0.000000e+00> : vector<64x384xf32>
    %36 = tpu.matmul %35, %34, %cst_21 {dimension_numbers = #tpu.dot_dimension_numbers<[1], [0], [0], [1], [0, 0, 1, 1], [], []>} : vector<64x128xbf16>, vector<128x384xbf16>, vector<64x384xf32> -> vector<64x384xf32>
    %c0_22 = arith.constant 0 : index
    %c0_23 = arith.constant 0 : index
    %37 = vector.load %arg6[%c0_22, %c0_23] : memref<1x384xf32, #tpu.memory_space<vmem>>, vector<1x384xf32>
    %38 = vector.broadcast %37 : vector<1x384xf32> to vector<64x384xf32>
    %39 = arith.addf %36, %38 : vector<64x384xf32>
    %40 = vector.extract_strided_slice %39 {offsets = [0, 0], sizes = [64, 128], strides = [1, 1]} : vector<64x384xf32> to vector<64x128xf32>
    %41 = vector.extract_strided_slice %39 {offsets = [0, 128], sizes = [64, 128], strides = [1, 1]} : vector<64x384xf32> to vector<64x128xf32>
    %42 = vector.extract_strided_slice %39 {offsets = [0, 256], sizes = [64, 128], strides = [1, 1]} : vector<64x384xf32> to vector<64x128xf32>
    %43 = vector.extract_strided_slice %40 {offsets = [0, 0], sizes = [64, 32], strides = [1, 1]} : vector<64x128xf32> to vector<64x32xf32>
    %44 = vector.extract_strided_slice %41 {offsets = [0, 0], sizes = [64, 32], strides = [1, 1]} : vector<64x128xf32> to vector<64x32xf32>
    %45 = arith.truncf %43 : vector<64x32xf32> to vector<64x32xbf16>
    %46 = arith.truncf %44 : vector<64x32xf32> to vector<64x32xbf16>
    %cst_24 = arith.constant dense<0.000000e+00> : vector<64x64xf32>
    %47 = tpu.matmul %45, %46, %cst_24 {dimension_numbers = #tpu.dot_dimension_numbers<[1], [1], [0], [0], [0, 0, 1, 0], [], []>} : vector<64x32xbf16>, vector<64x32xbf16>, vector<64x64xf32> -> vector<64x64xf32>
    %48 = arith.addf %47, %1 : vector<64x64xf32>
    %cst_25 = arith.constant dense<0xFF800000> : vector<64xf32>
    %49 = vector.multi_reduction <maximumf>, %48, %cst_25 [1] : vector<64x64xf32> to vector<64xf32>
    %50 = vector.shape_cast %49 : vector<64xf32> to vector<64x1xf32>
    %51 = vector.broadcast %50 : vector<64x1xf32> to vector<64x64xf32>
    %52 = arith.subf %48, %51 : vector<64x64xf32>
    %53 = math.exp %52 : vector<64x64xf32>
    %cst_26 = arith.constant dense<0.000000e+00> : vector<64xf32>
    %54 = vector.multi_reduction <add>, %53, %cst_26 [1] : vector<64x64xf32> to vector<64xf32>
    %55 = vector.shape_cast %54 : vector<64xf32> to vector<64x1xf32>
    %56 = tpu.reciprocal %55 {approx = true} : vector<64x1xf32> -> vector<64x1xf32>
    %57 = vector.broadcast %56 : vector<64x1xf32> to vector<64x64xf32>
    %58 = arith.mulf %53, %57 : vector<64x64xf32>
    %59 = vector.extract_strided_slice %42 {offsets = [0, 0], sizes = [64, 32], strides = [1, 1]} : vector<64x128xf32> to vector<64x32xf32>
    %c0_27 = arith.constant 0 : index
    %c0_28 = arith.constant 0 : index
    %60 = vector.load %arg7[%c0_27, %c0_28] : memref<128x128xbf16, #tpu.memory_space<vmem>>, vector<32x128xbf16>
    %61 = arith.truncf %59 : vector<64x32xf32> to vector<64x32xbf16>
    %cst_29 = arith.constant dense<0.000000e+00> : vector<64x128xf32>
    %62 = tpu.matmul %61, %60, %cst_29 {dimension_numbers = #tpu.dot_dimension_numbers<[1], [0], [0], [1], [0, 0, 1, 1], [], []>} : vector<64x32xbf16>, vector<32x128xbf16>, vector<64x128xf32> -> vector<64x128xf32>
    %63 = vector.extract_strided_slice %40 {offsets = [0, 32], sizes = [64, 32], strides = [1, 1]} : vector<64x128xf32> to vector<64x32xf32>
    %64 = vector.extract_strided_slice %41 {offsets = [0, 32], sizes = [64, 32], strides = [1, 1]} : vector<64x128xf32> to vector<64x32xf32>
    %65 = arith.truncf %63 : vector<64x32xf32> to vector<64x32xbf16>
    %66 = arith.truncf %64 : vector<64x32xf32> to vector<64x32xbf16>
    %cst_30 = arith.constant dense<0.000000e+00> : vector<64x64xf32>
    %67 = tpu.matmul %65, %66, %cst_30 {dimension_numbers = #tpu.dot_dimension_numbers<[1], [1], [0], [0], [0, 0, 1, 0], [], []>} : vector<64x32xbf16>, vector<64x32xbf16>, vector<64x64xf32> -> vector<64x64xf32>
    %68 = arith.addf %67, %1 : vector<64x64xf32>
    %cst_31 = arith.constant dense<0xFF800000> : vector<64xf32>
    %69 = vector.multi_reduction <maximumf>, %68, %cst_31 [1] : vector<64x64xf32> to vector<64xf32>
    %70 = vector.shape_cast %69 : vector<64xf32> to vector<64x1xf32>
    %71 = vector.broadcast %70 : vector<64x1xf32> to vector<64x64xf32>
    %72 = arith.subf %68, %71 : vector<64x64xf32>
    %73 = math.exp %72 : vector<64x64xf32>
    %cst_32 = arith.constant dense<0.000000e+00> : vector<64xf32>
    %74 = vector.multi_reduction <add>, %73, %cst_32 [1] : vector<64x64xf32> to vector<64xf32>
    %75 = vector.shape_cast %74 : vector<64xf32> to vector<64x1xf32>
    %76 = tpu.reciprocal %75 {approx = true} : vector<64x1xf32> -> vector<64x1xf32>
    %77 = vector.broadcast %76 : vector<64x1xf32> to vector<64x64xf32>
    %78 = arith.mulf %73, %77 : vector<64x64xf32>
    %79 = vector.extract_strided_slice %42 {offsets = [0, 32], sizes = [64, 32], strides = [1, 1]} : vector<64x128xf32> to vector<64x32xf32>
    %c32 = arith.constant 32 : index
    %c0_33 = arith.constant 0 : index
    %80 = vector.load %arg7[%c32, %c0_33] : memref<128x128xbf16, #tpu.memory_space<vmem>>, vector<32x128xbf16>
    %81 = arith.truncf %79 : vector<64x32xf32> to vector<64x32xbf16>
    %cst_34 = arith.constant dense<0.000000e+00> : vector<64x128xf32>
    %82 = tpu.matmul %81, %80, %cst_34 {dimension_numbers = #tpu.dot_dimension_numbers<[1], [0], [0], [1], [0, 0, 1, 1], [], []>} : vector<64x32xbf16>, vector<32x128xbf16>, vector<64x128xf32> -> vector<64x128xf32>
    %83 = vector.extract_strided_slice %40 {offsets = [0, 64], sizes = [64, 32], strides = [1, 1]} : vector<64x128xf32> to vector<64x32xf32>
    %84 = vector.extract_strided_slice %41 {offsets = [0, 64], sizes = [64, 32], strides = [1, 1]} : vector<64x128xf32> to vector<64x32xf32>
    %85 = arith.truncf %83 : vector<64x32xf32> to vector<64x32xbf16>
    %86 = arith.truncf %84 : vector<64x32xf32> to vector<64x32xbf16>
    %cst_35 = arith.constant dense<0.000000e+00> : vector<64x64xf32>
    %87 = tpu.matmul %85, %86, %cst_35 {dimension_numbers = #tpu.dot_dimension_numbers<[1], [1], [0], [0], [0, 0, 1, 0], [], []>} : vector<64x32xbf16>, vector<64x32xbf16>, vector<64x64xf32> -> vector<64x64xf32>
    %88 = arith.addf %87, %1 : vector<64x64xf32>
    %cst_36 = arith.constant dense<0xFF800000> : vector<64xf32>
    %89 = vector.multi_reduction <maximumf>, %88, %cst_36 [1] : vector<64x64xf32> to vector<64xf32>
    %90 = vector.shape_cast %89 : vector<64xf32> to vector<64x1xf32>
    %91 = vector.broadcast %90 : vector<64x1xf32> to vector<64x64xf32>
    %92 = arith.subf %88, %91 : vector<64x64xf32>
    %93 = math.exp %92 : vector<64x64xf32>
    %cst_37 = arith.constant dense<0.000000e+00> : vector<64xf32>
    %94 = vector.multi_reduction <add>, %93, %cst_37 [1] : vector<64x64xf32> to vector<64xf32>
    %95 = vector.shape_cast %94 : vector<64xf32> to vector<64x1xf32>
    %96 = tpu.reciprocal %95 {approx = true} : vector<64x1xf32> -> vector<64x1xf32>
    %97 = vector.broadcast %96 : vector<64x1xf32> to vector<64x64xf32>
    %98 = arith.mulf %93, %97 : vector<64x64xf32>
    %99 = vector.extract_strided_slice %42 {offsets = [0, 64], sizes = [64, 32], strides = [1, 1]} : vector<64x128xf32> to vector<64x32xf32>
    %c64 = arith.constant 64 : index
    %c0_38 = arith.constant 0 : index
    %100 = vector.load %arg7[%c64, %c0_38] : memref<128x128xbf16, #tpu.memory_space<vmem>>, vector<32x128xbf16>
    %101 = arith.truncf %99 : vector<64x32xf32> to vector<64x32xbf16>
    %cst_39 = arith.constant dense<0.000000e+00> : vector<64x128xf32>
    %102 = tpu.matmul %101, %100, %cst_39 {dimension_numbers = #tpu.dot_dimension_numbers<[1], [0], [0], [1], [0, 0, 1, 1], [], []>} : vector<64x32xbf16>, vector<32x128xbf16>, vector<64x128xf32> -> vector<64x128xf32>
    %103 = vector.extract_strided_slice %40 {offsets = [0, 96], sizes = [64, 32], strides = [1, 1]} : vector<64x128xf32> to vector<64x32xf32>
    %104 = vector.extract_strided_slice %41 {offsets = [0, 96], sizes = [64, 32], strides = [1, 1]} : vector<64x128xf32> to vector<64x32xf32>
    %105 = arith.truncf %103 : vector<64x32xf32> to vector<64x32xbf16>
    %106 = arith.truncf %104 : vector<64x32xf32> to vector<64x32xbf16>
    %cst_40 = arith.constant dense<0.000000e+00> : vector<64x64xf32>
    %107 = tpu.matmul %105, %106, %cst_40 {dimension_numbers = #tpu.dot_dimension_numbers<[1], [1], [0], [0], [0, 0, 1, 0], [], []>} : vector<64x32xbf16>, vector<64x32xbf16>, vector<64x64xf32> -> vector<64x64xf32>
    %108 = arith.addf %107, %1 : vector<64x64xf32>
    %cst_41 = arith.constant dense<0xFF800000> : vector<64xf32>
    %109 = vector.multi_reduction <maximumf>, %108, %cst_41 [1] : vector<64x64xf32> to vector<64xf32>
    %110 = vector.shape_cast %109 : vector<64xf32> to vector<64x1xf32>
    %111 = vector.broadcast %110 : vector<64x1xf32> to vector<64x64xf32>
    %112 = arith.subf %108, %111 : vector<64x64xf32>
    %113 = math.exp %112 : vector<64x64xf32>
    %cst_42 = arith.constant dense<0.000000e+00> : vector<64xf32>
    %114 = vector.multi_reduction <add>, %113, %cst_42 [1] : vector<64x64xf32> to vector<64xf32>
    %115 = vector.shape_cast %114 : vector<64xf32> to vector<64x1xf32>
    %116 = tpu.reciprocal %115 {approx = true} : vector<64x1xf32> -> vector<64x1xf32>
    %117 = vector.broadcast %116 : vector<64x1xf32> to vector<64x64xf32>
    %118 = arith.mulf %113, %117 : vector<64x64xf32>
    %119 = vector.extract_strided_slice %42 {offsets = [0, 96], sizes = [64, 32], strides = [1, 1]} : vector<64x128xf32> to vector<64x32xf32>
    %c96 = arith.constant 96 : index
    %c0_43 = arith.constant 0 : index
    %120 = vector.load %arg7[%c96, %c0_43] : memref<128x128xbf16, #tpu.memory_space<vmem>>, vector<32x128xbf16>
    %121 = arith.truncf %119 : vector<64x32xf32> to vector<64x32xbf16>
    %cst_44 = arith.constant dense<0.000000e+00> : vector<64x128xf32>
    %122 = tpu.matmul %121, %120, %cst_44 {dimension_numbers = #tpu.dot_dimension_numbers<[1], [0], [0], [1], [0, 0, 1, 1], [], []>} : vector<64x32xbf16>, vector<32x128xbf16>, vector<64x128xf32> -> vector<64x128xf32>
    %123 = tpu.concatenate %58, %78, %98, %118 in 1 : vector<64x64xf32>, vector<64x64xf32>, vector<64x64xf32>, vector<64x64xf32> -> vector<64x256xf32>
    %124 = tpu.concatenate %62, %82, %102, %122 in 0 : vector<64x128xf32>, vector<64x128xf32>, vector<64x128xf32>, vector<64x128xf32> -> vector<256x128xf32>
    %125 = arith.truncf %123 : vector<64x256xf32> to vector<64x256xbf16>
    %126 = arith.truncf %124 : vector<256x128xf32> to vector<256x128xbf16>
    %cst_45 = arith.constant dense<0.000000e+00> : vector<64x128xf32>
    %127 = tpu.matmul %125, %126, %cst_45 {dimension_numbers = #tpu.dot_dimension_numbers<[1], [0], [0], [1], [0, 0, 1, 1], [], []>} : vector<64x256xbf16>, vector<256x128xbf16>, vector<64x128xf32> -> vector<64x128xf32>
    %c0_46 = arith.constant 0 : index
    %c0_47 = arith.constant 0 : index
    %128 = vector.load %arg8[%c0_46, %c0_47] : memref<1x128xf32, #tpu.memory_space<vmem>>, vector<1x128xf32>
    %129 = vector.broadcast %128 : vector<1x128xf32> to vector<64x128xf32>
    %130 = arith.addf %127, %129 : vector<64x128xf32>
    %131 = arith.addf %33, %130 : vector<64x128xf32>
    %c0_48 = arith.constant 0 : index
    %c0_49 = arith.constant 0 : index
    %132 = vector.load %arg11[%c0_48, %c0_49] : memref<1x128xf32, #tpu.memory_space<vmem>>, vector<1x128xf32>
    %c0_50 = arith.constant 0 : index
    %c0_51 = arith.constant 0 : index
    %133 = vector.load %arg12[%c0_50, %c0_51] : memref<1x128xf32, #tpu.memory_space<vmem>>, vector<1x128xf32>
    %cst_52 = arith.constant dense<0.000000e+00> : vector<64xf32>
    %134 = vector.multi_reduction <add>, %131, %cst_52 [1] : vector<64x128xf32> to vector<64xf32>
    %135 = vector.shape_cast %134 : vector<64xf32> to vector<64x1xf32>
    %cst_53 = arith.constant 1.280000e+02 : f32
    %136 = vector.broadcast %cst_53 : f32 to vector<64x1xf32>
    %137 = arith.divf %135, %136 : vector<64x1xf32>
    %138 = vector.broadcast %137 : vector<64x1xf32> to vector<64x128xf32>
    %139 = arith.subf %131, %138 : vector<64x128xf32>
    %140 = arith.mulf %139, %139 : vector<64x128xf32>
    %cst_54 = arith.constant dense<0.000000e+00> : vector<64xf32>
    %141 = vector.multi_reduction <add>, %140, %cst_54 [1] : vector<64x128xf32> to vector<64xf32>
    %142 = vector.shape_cast %141 : vector<64xf32> to vector<64x1xf32>
    %cst_55 = arith.constant 1.280000e+02 : f32
    %143 = vector.broadcast %cst_55 : f32 to vector<64x1xf32>
    %144 = arith.divf %142, %143 : vector<64x1xf32>
    %145 = vector.broadcast %137 : vector<64x1xf32> to vector<64x128xf32>
    %146 = arith.subf %131, %145 : vector<64x128xf32>
    %cst_56 = arith.constant 9.99999974E-6 : f32
    %147 = vector.broadcast %cst_56 : f32 to vector<64x1xf32>
    %148 = arith.addf %144, %147 : vector<64x1xf32>
    %149 = math.rsqrt %148 : vector<64x1xf32>
    %150 = vector.broadcast %149 : vector<64x1xf32> to vector<64x128xf32>
    %151 = arith.mulf %146, %150 : vector<64x128xf32>
    %152 = vector.broadcast %132 : vector<1x128xf32> to vector<64x128xf32>
    %153 = arith.mulf %151, %152 : vector<64x128xf32>
    %154 = vector.broadcast %133 : vector<1x128xf32> to vector<64x128xf32>
    %155 = arith.addf %153, %154 : vector<64x128xf32>
    %c0_57 = arith.constant 0 : index
    %c0_58 = arith.constant 0 : index
    %156 = vector.load %arg13[%c0_57, %c0_58] : memref<128x256xbf16, #tpu.memory_space<vmem>>, vector<128x256xbf16>
    %157 = arith.truncf %155 : vector<64x128xf32> to vector<64x128xbf16>
    %cst_59 = arith.constant dense<0.000000e+00> : vector<64x256xf32>
    %158 = tpu.matmul %157, %156, %cst_59 {dimension_numbers = #tpu.dot_dimension_numbers<[1], [0], [0], [1], [0, 0, 1, 1], [], []>} : vector<64x128xbf16>, vector<128x256xbf16>, vector<64x256xf32> -> vector<64x256xf32>
    %c0_60 = arith.constant 0 : index
    %c0_61 = arith.constant 0 : index
    %159 = vector.load %arg14[%c0_60, %c0_61] : memref<1x256xf32, #tpu.memory_space<vmem>>, vector<1x256xf32>
    %160 = vector.broadcast %159 : vector<1x256xf32> to vector<64x256xf32>
    %161 = arith.addf %158, %160 : vector<64x256xf32>
    %cst_62 = arith.constant 0.000000e+00 : f32
    %162 = vector.broadcast %cst_62 : f32 to vector<64x256xf32>
    %163 = arith.maximumf %161, %162 : vector<64x256xf32>
    %c0_63 = arith.constant 0 : index
    %c0_64 = arith.constant 0 : index
    %164 = vector.load %arg15[%c0_63, %c0_64] : memref<256x128xbf16, #tpu.memory_space<vmem>>, vector<256x128xbf16>
    %165 = arith.truncf %163 : vector<64x256xf32> to vector<64x256xbf16>
    %cst_65 = arith.constant dense<0.000000e+00> : vector<64x128xf32>
    %166 = tpu.matmul %165, %164, %cst_65 {dimension_numbers = #tpu.dot_dimension_numbers<[1], [0], [0], [1], [0, 0, 1, 1], [], []>} : vector<64x256xbf16>, vector<256x128xbf16>, vector<64x128xf32> -> vector<64x128xf32>
    %167 = arith.addf %131, %166 : vector<64x128xf32>
    %c0_66 = arith.constant 0 : index
    %c0_67 = arith.constant 0 : index
    %168 = vector.load %arg16[%c0_66, %c0_67] : memref<1x128xf32, #tpu.memory_space<vmem>>, vector<1x128xf32>
    %169 = vector.broadcast %168 : vector<1x128xf32> to vector<64x128xf32>
    %170 = arith.addf %167, %169 : vector<64x128xf32>
    %171 = tpu.concatenate %9, %170 in 1 : vector<64x128xf32>, vector<64x128xf32> -> vector<64x256xf32>
    %c0_68 = arith.constant 0 : index
    %c0_69 = arith.constant 0 : index
    %172 = vector.load %arg17[%c0_68, %c0_69] : memref<256x128xbf16, #tpu.memory_space<vmem>>, vector<256x128xbf16>
    %173 = arith.truncf %171 : vector<64x256xf32> to vector<64x256xbf16>
    %cst_70 = arith.constant dense<0.000000e+00> : vector<64x128xf32>
    %174 = tpu.matmul %173, %172, %cst_70 {dimension_numbers = #tpu.dot_dimension_numbers<[1], [0], [0], [1], [0, 0, 1, 1], [], []>} : vector<64x256xbf16>, vector<256x128xbf16>, vector<64x128xf32> -> vector<64x128xf32>
    %c0_71 = arith.constant 0 : index
    %c0_72 = arith.constant 0 : index
    %175 = vector.load %arg18[%c0_71, %c0_72] : memref<1x128xf32, #tpu.memory_space<vmem>>, vector<1x128xf32>
    %176 = vector.broadcast %175 : vector<1x128xf32> to vector<64x128xf32>
    %177 = arith.addf %174, %176 : vector<64x128xf32>
    %c0_73 = arith.constant 0 : index
    %c0_74 = arith.constant 0 : index
    %178 = vector.load %arg19[%c0_73, %c0_74] : memref<1x128xf32, #tpu.memory_space<vmem>>, vector<1x128xf32>
    %c0_75 = arith.constant 0 : index
    %c0_76 = arith.constant 0 : index
    %179 = vector.load %arg20[%c0_75, %c0_76] : memref<1x128xf32, #tpu.memory_space<vmem>>, vector<1x128xf32>
    %cst_77 = arith.constant dense<0.000000e+00> : vector<64xf32>
    %180 = vector.multi_reduction <add>, %177, %cst_77 [1] : vector<64x128xf32> to vector<64xf32>
    %181 = vector.shape_cast %180 : vector<64xf32> to vector<64x1xf32>
    %cst_78 = arith.constant 1.280000e+02 : f32
    %182 = vector.broadcast %cst_78 : f32 to vector<64x1xf32>
    %183 = arith.divf %181, %182 : vector<64x1xf32>
    %184 = vector.broadcast %183 : vector<64x1xf32> to vector<64x128xf32>
    %185 = arith.subf %177, %184 : vector<64x128xf32>
    %186 = arith.mulf %185, %185 : vector<64x128xf32>
    %cst_79 = arith.constant dense<0.000000e+00> : vector<64xf32>
    %187 = vector.multi_reduction <add>, %186, %cst_79 [1] : vector<64x128xf32> to vector<64xf32>
    %188 = vector.shape_cast %187 : vector<64xf32> to vector<64x1xf32>
    %cst_80 = arith.constant 1.280000e+02 : f32
    %189 = vector.broadcast %cst_80 : f32 to vector<64x1xf32>
    %190 = arith.divf %188, %189 : vector<64x1xf32>
    %191 = vector.broadcast %183 : vector<64x1xf32> to vector<64x128xf32>
    %192 = arith.subf %177, %191 : vector<64x128xf32>
    %cst_81 = arith.constant 9.99999974E-6 : f32
    %193 = vector.broadcast %cst_81 : f32 to vector<64x1xf32>
    %194 = arith.addf %190, %193 : vector<64x1xf32>
    %195 = math.rsqrt %194 : vector<64x1xf32>
    %196 = vector.broadcast %195 : vector<64x1xf32> to vector<64x128xf32>
    %197 = arith.mulf %192, %196 : vector<64x128xf32>
    %198 = vector.broadcast %178 : vector<1x128xf32> to vector<64x128xf32>
    %199 = arith.mulf %197, %198 : vector<64x128xf32>
    %200 = vector.broadcast %179 : vector<1x128xf32> to vector<64x128xf32>
    %201 = arith.addf %199, %200 : vector<64x128xf32>
    %202 = arith.addf %201, %0 : vector<64x128xf32>
    %c0_82 = arith.constant 0 : index
    %c0_83 = arith.constant 0 : index
    %203 = vector.load %arg21[%c0_82, %c0_83] : memref<64x128xf32, #tpu.memory_space<vmem>>, vector<64x128xf32>
    tpu.vector_store %arg21[%c0_82, %c0_83], %202 {strides = array<i32>} : memref<64x128xf32, #tpu.memory_space<vmem>>, vector<64x128xf32>,
    return
  }
}

</mosaic_0001>

<bundles_post_ra>
// kernel: tpu_custom_call.1
= control target key start
LH: loop header
LB: loop body
LE: loop exit
PB: predicated region body
PF: predicated region fallthrough
CT: control target
= control target key end

     0   :  { %s5661_s0 = inlined_call_operand.hbm [shape: f32[64,128], index: 0, kind: input, shape index: {}, may-alias: {0,21}]   ;;  %s5662_s1 = inlined_call_operand.hbm [shape: f32[64,64], index: 1, kind: input, shape index: {}]   ;;  %s5663_s2 = inlined_call_operand.hbm [shape: f32[64,64], index: 2, kind: input, shape index: {}]   ;;  %s5664_s3 = inlined_call_operand.hbm [shape: bf16[128,128], index: 3, kind: input, shape index: {}]   ;;  %s5665_s4 = inlined_call_operand.vmem [shape: f32[1,128], index: 4, kind: input, shape index: {}]   ;;  %s5666_s5 = inlined_call_operand.hbm [shape: bf16[128,384], index: 5, kind: input, shape index: {}]   ;;  %s5667_s6 = inlined_call_operand.vmem [shape: f32[1,384], index: 6, kind: input, shape index: {}]   ;;  %s5668_s7 = inlined_call_operand.hbm [shape: bf16[128,128], index: 7, kind: input, shape index: {}]   ;;  %s5669_s8 = inlined_call_operand.vmem [shape: f32[1,128], index: 8, kind: input, shape index: {}]   ;;  %s5670_s9 = inlined_call_operand.vmem [shape: f32[1,128], index: 9, kind: input, shape index: {}]   ;;  %s5671_s10 = inlined_call_operand.vmem [shape: f32[1,128], index: 10, kind: input, shape index: {}]   ;;  %s5672_s11 = inlined_call_operand.vmem [shape: f32[1,128], index: 11, kind: input, shape index: {}]   ;;  %s5673_s12 = inlined_call_operand.vmem [shape: f32[1,128], index: 12, kind: input, shape index: {}]   ;;  %s5674_s13 = inlined_call_operand.vmem [shape: bf16[128,256], index: 13, kind: input, shape index: {}]   ;;  %s5675_s14 = inlined_call_operand.vmem [shape: f32[1,256], index: 14, kind: input, shape index: {}]   ;;  %s5676_s15 = inlined_call_operand.hbm [shape: bf16[256,128], index: 15, kind: input, shape index: {}]   ;;  %s5677_s16 = inlined_call_operand.vmem [shape: f32[1,128], index: 16, kind: input, shape index: {}]   ;;  %s5678_s17 = inlined_call_operand.hbm [shape: bf16[256,128], index: 17, kind: input, shape index: {}]   ;;  %s5679_s18 = inlined_call_operand.vmem [shape: f32[1,128], index: 18, kind: input, shape index: {}]   ;;  %s5680_s19 = inlined_call_operand.vmem [shape: f32[1,128], index: 19, kind: input, shape index: {}]   ;;  %s5681_s20 = inlined_call_operand.vmem [shape: f32[1,128], index: 20, kind: input, shape index: {}]   ;;  %s5682_s21 = inlined_call_operand.hbm [shape: f32[64,128], index: 21, kind: output, shape index: {}, may-alias: {0,21}]  }
   0x1   :  { %5715 = sst [smem:[#allocation35_spill]] %s5661_s0 }
   0x2   :  { %5716 = sst [smem:[#allocation36_spill]] %s5662_s1 }
   0x3   :  { %5717 = sst [smem:[#allocation37_spill]] %s5663_s2 }
   0x4   :  { %5718 = sst [smem:[#allocation38_spill]] %s5664_s3 }
   0x5   :  { %5719 = sst [smem:[#allocation39_spill]] %s5665_s4 }
   0x6   :  { %5720 = sst [smem:[#allocation40_spill]] %s5666_s5 }
   0x7   :  { %5721 = sst [smem:[#allocation41_spill]] %s5681_s20 }
   0x8   :  { %5722 = sst [smem:[#allocation42_spill]] %s5682_s21 }
   0x9   :  { %26 = vsyncpa [#allocation3], 0 }
   0xa   :  { %27 = vsyncpa [#allocation6], 0 }
   0xb   :  { %28 = vsyncpa [#allocation9], 0 }
   0xc   :  { %29 = vsyncpa [#allocation12], 0 }
   0xd   :  { %30 = vsyncpa [#allocation15], 0 }
   0xe   :  { %31 = vsyncpa [#allocation4], 0  ;;  %s4324_s2 = smov [#allocation5]   ;;  %s4325_s26 = smov [#allocation8]  }
   0xf   :  { %s49_s25 = sshll.u32 %s4324_s2, 4  ;;  %s73_s27 = sshll.u32 %s4325_s26, 4  ;;  %s50_s25 = int_to_ptr.vmem [resolvable:$true] %s49_s25  ;;  %s4452_s27 = int_to_ptr.vmem [resolvable:$true] %s73_s27 }
  0x10   :  { %s5723_s29 = sld [smem:[#allocation36_spill]] }
  0x16   :  { %s4114_s0 = scalar_lea.hbm %s5723_s29, 1024 }
  0x17   :  { %p4115_p0 = scmp.ne.s32.totalorder %s5723_s29, %s4114_s0  ;;  %p4118_p1 = scmp.lt.u32.totalorder %s4114_s0, %s5723_s29 }
  0x19   :  { %p4120_p2 = pnand %p4118_p1, %p4115_p0 }
  0x1b   :  { %4123 = shalt.err (!%p4120_p2)
}
  0x1c   :  { %s4124_s23 = scalar_lea.vmem %s50_s25, 1024  ;;  %p4129_p4 = scmp.lt.s32.totalorder %s50_s25, %s50_s25 }
  0x1d   :  { %p4125_p3 = scmp.ne.s32.totalorder %s50_s25, %s4124_s23  ;;  %p4130_p5 = scmp.lt.s32.totalorder %s4124_s23, %s4124_s23 }
  0x1f   :  { %p4131_p6 = por %p4130_p5, %p4129_p4 }
  0x21   :  { %p4132_p7 = pnand %p4131_p6, %p4125_p3 }
  0x23   :  { %4135 = shalt.err (!%p4132_p7)
}
  0x24   :  { %s5689_s1 = smov 128   ;;  %s5691_s24 = smov 8  }
  0x25   :  { %55 = dma.hbm_to_vmem [thread:$0]  %s5723_s29, 1024, %s50_s25, [#allocation6], %s5689_s1, %s5689_s1, %s5691_s24  }
  0x26   :  { %s5724_s0 = sld [smem:[#allocation38_spill]] }
  0x2c   :  { %s4136_s4 = scalar_lea.hbm %s5724_s0, 1024 }
  0x2d   :  { %p4137_p8 = scmp.ne.s32.totalorder %s5724_s0, %s4136_s4  ;;  %p4140_p9 = scmp.lt.u32.totalorder %s4136_s4, %s5724_s0 }
  0x2f   :  { %p4142_p10 = pnand %p4140_p9, %p4137_p8 }
  0x31   :  { %4145 = shalt.err (!%p4142_p10)
}
  0x32   :  { %s4146_s21 = scalar_lea.vmem %s4452_s27, 1024  ;;  %p4151_p12 = scmp.lt.s32.totalorder %s4452_s27, %s4452_s27 }
  0x33   :  { %p4147_p11 = scmp.ne.s32.totalorder %s4452_s27, %s4146_s21  ;;  %p4152_p13 = scmp.lt.s32.totalorder %s4146_s21, %s4146_s21 }
  0x35   :  { %p4153_p0 = por %p4152_p13, %p4151_p12 }
  0x37   :  { %p4154_p1 = pnand %p4153_p0, %p4147_p11 }
  0x39   :  { %4157 = shalt.err (!%p4154_p1)
}
  0x3a   :  { %s5693_s25 = smov 64   ;;  %s5695_s29 = smov 4  }
  0x3b   :  { %79 = dma.hbm_to_vmem [thread:$0]  %s5724_s0, 1024, %s4452_s27, [#allocation9], %s5693_s25, %s5693_s25, %s5695_s29  }
  0x3c   :  { %s4330_s3 = smov [#allocation11]   ;;  %s4331_s4 = smov [#allocation2]  }
  0x3d   :  { %s101_s28 = sshll.u32 %s4330_s3, 4  ;;  %s37_s30 = sshll.u32 %s4331_s4, 4  ;;  %s102_s28 = int_to_ptr.vmem [resolvable:$true] %s101_s28  ;;  %s4489_s30 = int_to_ptr.vmem [resolvable:$true] %s37_s30 }
  0x3e   :  { %s4158_s22 = scalar_lea.hbm %s5668_s7, 1024 }
  0x3f   :  { %p4159_p2 = scmp.ne.s32.totalorder %s5668_s7, %s4158_s22  ;;  %p4162_p3 = scmp.lt.u32.totalorder %s4158_s22, %s5668_s7 }
  0x41   :  { %p4164_p4 = pnand %p4162_p3, %p4159_p2 }
  0x43   :  { %4167 = shalt.err (!%p4164_p4)
}
  0x44   :  { %s4168_s27 = scalar_lea.vmem %s102_s28, 1024  ;;  %p4173_p6 = scmp.lt.s32.totalorder %s102_s28, %s102_s28 }
  0x45   :  { %p4169_p5 = scmp.ne.s32.totalorder %s102_s28, %s4168_s27  ;;  %p4174_p7 = scmp.lt.s32.totalorder %s4168_s27, %s4168_s27 }
  0x47   :  { %p4175_p8 = por %p4174_p7, %p4173_p6 }
  0x49   :  { %p4176_p9 = pnand %p4175_p8, %p4169_p5 }
  0x4b   :  { %4179 = shalt.err (!%p4176_p9)
}
  0x4c   :  { %107 = dma.hbm_to_vmem [thread:$0]  %s5668_s7, 1024, %s102_s28, [#allocation12], %s5693_s25, %s5693_s25, %s5695_s29  }
  0x4d   :  { %s5725_s20 = sld [smem:[#allocation35_spill]] }
  0x53   :  { %s4180_s24 = scalar_lea.hbm %s5725_s20, 1024 }
  0x54   :  { %p4181_p10 = scmp.ne.s32.totalorder %s5725_s20, %s4180_s24  ;;  %p4184_p11 = scmp.lt.u32.totalorder %s4180_s24, %s5725_s20 }
  0x56   :  { %p4186_p12 = pnand %p4184_p11, %p4181_p10 }
  0x58   :  { %4189 = shalt.err (!%p4186_p12)
}
  0x59   :  { %s4190_s22 = scalar_lea.vmem %s4489_s30, 1024  ;;  %p4195_p0 = scmp.lt.s32.totalorder %s4489_s30, %s4489_s30 }
  0x5a   :  { %p4191_p13 = scmp.ne.s32.totalorder %s4489_s30, %s4190_s22  ;;  %p4196_p1 = scmp.lt.s32.totalorder %s4190_s22, %s4190_s22 }
  0x5c   :  { %p4197_p2 = por %p4196_p1, %p4195_p0 }
  0x5e   :  { %p4198_p3 = pnand %p4197_p2, %p4191_p13 }
  0x60   :  { %4201 = shalt.err (!%p4198_p3)
}
  0x61   :  { %s5726_s7 = smov 8   ;;  %s5727_s28 = smov 128  }
  0x62   :  { %43 = dma.hbm_to_vmem [thread:$0]  %s5725_s20, 1024, %s4489_s30, [#allocation3], %s5727_s28, %s5727_s28, %s5726_s7  }
  0x63   :  { %s4332_s0 = smov [#allocation7]   ;;  %s4333_s1 = smov [#allocation10]  }
  0x64   :  { %s61_s2 = sshll.u32 %s4332_s0, 4  ;;  %s87_s26 = sshll.u32 %s4333_s1, 4  ;;  %s62_s2 = int_to_ptr.vmem [resolvable:$true] %s61_s2  ;;  %s4526_s26 = int_to_ptr.vmem [resolvable:$true] %s87_s26 }
  0x65   :  { %s5728_s4 = sld [smem:[#allocation37_spill]] }
  0x6b   :  { %s4202_s21 = scalar_lea.hbm %s5728_s4, 1024 }
  0x6c   :  { %p4203_p4 = scmp.ne.s32.totalorder %s5728_s4, %s4202_s21  ;;  %p4206_p5 = scmp.lt.u32.totalorder %s4202_s21, %s5728_s4 }
  0x6e   :  { %p4208_p6 = pnand %p4206_p5, %p4203_p4 }
  0x70   :  { %4211 = shalt.err (!%p4208_p6)
}
  0x71   :  { %s4212_s30 = scalar_lea.vmem %s62_s2, 1024  ;;  %p4217_p8 = scmp.lt.s32.totalorder %s62_s2, %s62_s2 }
  0x72   :  { %p4213_p7 = scmp.ne.s32.totalorder %s62_s2, %s4212_s30  ;;  %p4218_p9 = scmp.lt.s32.totalorder %s4212_s30, %s4212_s30 }
  0x74   :  { %p4219_p10 = por %p4218_p9, %p4217_p8 }
  0x76   :  { %p4220_p11 = pnand %p4219_p10, %p4213_p7 }
  0x78   :  { %4223 = shalt.err (!%p4220_p11)
}
  0x79   :  { %67 = dma.hbm_to_vmem [thread:$0]  %s5728_s4, 1024, %s62_s2, [#allocation6], %s5727_s28, %s5727_s28, %s5726_s7  }
  0x7a   :  { %s5729_s25 = sld [smem:[#allocation40_spill]] }
  0x80   :  { %s4224_s29 = scalar_lea.hbm %s5729_s25, 3072 }
  0x81   :  { %p4225_p12 = scmp.ne.s32.totalorder %s5729_s25, %s4224_s29  ;;  %p4228_p13 = scmp.lt.u32.totalorder %s4224_s29, %s5729_s25 }
  0x83   :  { %p4230_p0 = pnand %p4228_p13, %p4225_p12 }
  0x85   :  { %4233 = shalt.err (!%p4230_p0)
}
  0x86   :  { %s4234_s5 = scalar_lea.vmem %s4526_s26, 3072  ;;  %p4239_p2 = scmp.lt.s32.totalorder %s4526_s26, %s4526_s26 }
  0x87   :  { %p4235_p1 = scmp.ne.s32.totalorder %s4526_s26, %s4234_s5  ;;  %p4240_p3 = scmp.lt.s32.totalorder %s4234_s5, %s4234_s5 }
  0x89   :  { %p4241_p4 = por %p4240_p3, %p4239_p2 }
  0x8b   :  { %p4242_p5 = pnand %p4241_p4, %p4235_p1 }
  0x8d   :  { %4245 = shalt.err (!%p4242_p5)
}
  0x8e   :  { %s4334_s2 = smov 192   ;;  %s4335_s4 = smov 12  }
  0x8f   :  { %93 = dma.hbm_to_vmem [thread:$0]  %s5729_s25, 3072, %s4526_s26, [#allocation9], %s4334_s2, %s4334_s2, %s4335_s4  }
  0x90   :  { %s4336_s20 = smov [#allocation13]   ;;  %s4337_s27 = smov [#allocation14]  }
  0x91   :  { %s127_s23 = sshll.u32 %s4336_s20, 4  ;;  %s141_s0 = sshll.u32 %s4337_s27, 4  ;;  %s128_s23 = int_to_ptr.vmem [resolvable:$true] %s127_s23  ;;  %s4560_s0 = int_to_ptr.vmem [resolvable:$true] %s141_s0 }
  0x92   :  { %s4246_s24 = scalar_lea.hbm %s5676_s15, 2048 }
  0x93   :  { %p4247_p6 = scmp.ne.s32.totalorder %s5676_s15, %s4246_s24  ;;  %p4250_p7 = scmp.lt.u32.totalorder %s4246_s24, %s5676_s15 }
  0x95   :  { %p4252_p8 = pnand %p4250_p7, %p4247_p6 }
  0x97   :  { %4255 = shalt.err (!%p4252_p8)
}
  0x98   :  { %s4256_s26 = scalar_lea.vmem %s128_s23, 2048  ;;  %p4261_p10 = scmp.lt.s32.totalorder %s128_s23, %s128_s23 }
  0x99   :  { %p4257_p9 = scmp.ne.s32.totalorder %s128_s23, %s4256_s26  ;;  %p4262_p11 = scmp.lt.s32.totalorder %s4256_s26, %s4256_s26 }
  0x9b   :  { %p4263_p12 = por %p4262_p11, %p4261_p10 }
  0x9d   :  { %p4264_p13 = pnand %p4263_p12, %p4257_p9 }
  0x9f   :  { %4267 = shalt.err (!%p4264_p13)
}
  0xa0   :  { %s5730_s25 = smov 4   ;;  %s5731_s2 = smov 64  }
  0xa1   :  { %133 = dma.hbm_to_vmem [thread:$0]  %s5676_s15, 2048, %s128_s23, [#allocation12], %s5731_s2, %s5731_s2, %s5730_s25  }
  0xa2   :  { %s4268_s28 = scalar_lea.hbm %s5678_s17, 2048 }
  0xa3   :  { %p4269_p0 = scmp.ne.s32.totalorder %s5678_s17, %s4268_s28  ;;  %p4272_p1 = scmp.lt.u32.totalorder %s4268_s28, %s5678_s17 }
  0xa5   :  { %p4274_p2 = pnand %p4272_p1, %p4269_p0 }
  0xa7   :  { %4277 = shalt.err (!%p4274_p2)
}
  0xa8   :  { %s4278_s3 = scalar_lea.vmem %s4560_s0, 2048  ;;  %p4283_p4 = scmp.lt.s32.totalorder %s4560_s0, %s4560_s0 }
  0xa9   :  { %p4279_p3 = scmp.ne.s32.totalorder %s4560_s0, %s4278_s3  ;;  %p4284_p5 = scmp.lt.s32.totalorder %s4278_s3, %s4278_s3 }
  0xab   :  { %p4285_p6 = por %p4284_p5, %p4283_p4 }
  0xad   :  { %p4286_p7 = pnand %p4285_p6, %p4279_p3 }
  0xaf   :  { %4289 = shalt.err (!%p4286_p7)
}
  0xb0   :  { %147 = dma.hbm_to_vmem [thread:$0]  %s5678_s17, 2048, %s4560_s0, [#allocation15], %s5731_s2, %s5731_s2, %s5730_s25  }
  0xb1   :  { %4312 = dma.done.wait [#allocation3], 1024  }
  0xb2   :  { %4313 = vsyncadd [#allocation3], 4294966272 }
  0xb3   :  { %4314 = dma.done.wait [#allocation6], 2048  }
  0xb4   :  { %4315 = vsyncadd [#allocation6], 4294965248 }
  0xb5   :  { %4316 = dma.done.wait [#allocation9], 4096  }
  0xb6   :  { %4317 = vsyncadd [#allocation9], 4294963200 }
  0xb7   :  { %4318 = dma.done.wait [#allocation12], 3072  }
  0xb8   :  { %4319 = vsyncadd [#allocation12], 4294964224 }
  0xb9   :  { %4320 = dma.done.wait [#allocation15], 2048  }
  0xba   :  { %4321 = vsyncadd [#allocation15], 4294965248  ;;  %v179_v0 = vld [vmem:[#allocation2] sm:$0xff]  ;;  %v181_v1 = vld [vmem:[#allocation2 + $0x10] sm:$0xff]  ;;  %vm343_vm0 = vcmask 523264   ;;  %s5735_s26 = sld [smem:[#allocation39_spill]] }
  0xbb   :  { %v4597_v2 = vld [vmem:[#allocation2 + $0x8] sm:$0xff]  ;;  %475 = vadd.xlane.f32.xlu0 %v179_v0  ;;  %479 = vadd.xlane.f32.xlu1 %v181_v1  ;;  %v182_v4 = vld [vmem:[#allocation2 + $0x18] sm:$0xff]  ;;  %v3826_v5 = vld [vmem:[#allocation8] sm:$0xff]   ;;  %vm919_vm1 = vcmask 261120   ;;  %s4340_s22 = smov 32   ;;  %s5768_s25 = sld [smem:[#allocation41_spill]] }
  0xbc   :  { %v219_v3 = vpack.c.bf16 %v4597_v2, %v179_v0  ;;  %3532 = vmatprep.subr.bf16.mxu0 %v3826_v5  ;;  %v3827_v6 = vld [vmem:[#allocation8 + $0x8] sm:$0xff]   ;;  %v4601_v7 = vld [vmem:[#allocation2 + $0x20] sm:$0xff]  ;;  %v3828_v9 = vld [vmem:[#allocation8 + $0x10] sm:$0xff]   ;;  %v220_v17 = vpack.c.bf16 %v182_v4, %v181_v1 }
  0xbd   :  { %v4603_v8 = vld [vmem:[#allocation2 + $0x28] sm:$0xff]  ;;  %3533 = vmatpush3.bf16.msra.mxu0 %v3826_v5  ;;  %v4605_v10 = vld [vmem:[#allocation2 + $0x30] sm:$0xff]  ;;  %v4609_v11 = vld [vmem:[#allocation2 + $0x38] sm:$0xff] }
  0xbe   :  { %3548 = vmatprep.mubr.bf16.mxu0 %v219_v3  ;;  %3534 = vmatprep.subr.bf16.mxu0 %v3827_v6  ;;  %v3829_v12 = vld [vmem:[#allocation8 + $0x18] sm:$0xff]   ;;  %v3830_v13 = vld [vmem:[#allocation8 + $0x20] sm:$0xff]   ;;  %v3831_v14 = vld [vmem:[#allocation8 + $0x28] sm:$0xff]   ;;  %v221_v18 = vpack.c.bf16 %v4603_v8, %v4601_v7  ;;  %v222_v19 = vpack.c.bf16 %v4609_v11, %v4605_v10 }
  0xbf   :  { %477 = vadd.xlane.f32.xlu0 %v4597_v2  ;;  %481 = vadd.xlane.f32.xlu1 %v182_v4  ;;  %v3832_v15 = vld [vmem:[#allocation8 + $0x30] sm:$0xff]   ;;  %v3833_v16 = vld [vmem:[#allocation8 + $0x38] sm:$0xff]   ;;  %v195_v20 = vld [vmem:[#allocation5] sm:$0xff] }
  0xc0   :  { %3572 = vmatprep.mubr.msk.f32.mxu1 %vm343_vm0, %v195_v20  ;;  %v3837_v25 = vld [vmem:[#allocation10 + $0x8] ss:$12 sps:$4 sm:$0xff]   ;;  %v3844_v54 = vld [vmem:[#allocation10 + $0x20] ss:$12 sps:$4 sm:$0xff]   ;;  %v3848_v55 = vld [vmem:[#allocation10 + $0x38] ss:$12 sps:$4 sm:$0xff]  }
  0xc1   :  { %3535 = vmatpush3.bf16.msra.mxu0 %v3827_v6  ;;  %v3852_v56 = vld [vmem:[#allocation10 + $0x50] ss:$12 sps:$4 sm:$0xff]   ;;  %v3856_v57 = vld [vmem:[#allocation10 + $0x68] ss:$12 sps:$4 sm:$0xff]   ;;  %v3860_v58 = vld [vmem:[#allocation10 + $0x80] ss:$12 sps:$4 sm:$0xff]  }
  0xc2   :  { %3536 = vmatprep.subr.bf16.mxu0 %v3828_v9  ;;  %v3864_v59 = vld [vmem:[#allocation10 + $0x98] ss:$12 sps:$4 sm:$0xff]   ;;  %v3865_v60 = vld [vmem:[#allocation10 + $0xb0] ss:$12 sps:$4 sm:$0xff]  }
  0xc3   :  { %483 = vadd.xlane.f32.xlu0 %v4601_v7  ;;  %485 = vadd.xlane.f32.xlu1 %v4603_v8  ;;  %v3847_v20 = vld [vmem:[#allocation10 + $0x4c] ss:$12 sps:$4 sm:$0xff]  }
  0xc5   :  { %3537 = vmatpush3.bf16.msra.mxu0 %v3828_v9  ;;  %v3836_v9 = vld [vmem:[#allocation10 + $0x4] ss:$12 sps:$4 sm:$0xff]  }
  0xc6   :  { %3538 = vmatprep.subr.bf16.mxu0 %v3829_v12 }
  0xc7   :  { %487 = vadd.xlane.f32.xlu0 %v4605_v10  ;;  %489 = vadd.xlane.f32.xlu1 %v4609_v11 }
  0xc9   :  { %3539 = vmatpush3.bf16.msra.mxu0 %v3829_v12  ;;  %v3840_v12 = vld [vmem:[#allocation10 + $0x1c] ss:$12 sps:$4 sm:$0xff]  }
  0xca   :  { %3540 = vmatprep.subr.bf16.mxu0 %v3830_v13 }
  0xcd   :  { %3541 = vmatpush3.bf16.msra.mxu0 %v3830_v13  ;;  %v197_v13 = vld [vmem:[#allocation5 + $0x10] sm:$0xff] }
  0xce   :  { %3542 = vmatprep.subr.bf16.mxu0 %v3831_v14 }
  0xd1   :  { %3543 = vmatpush3.bf16.msra.mxu0 %v3831_v14  ;;  %v3838_v14 = vld [vmem:[#allocation10 + $0x18] ss:$12 sps:$4 sm:$0xff]  }
  0xd2   :  { %3544 = vmatprep.subr.bf16.mxu0 %v3832_v15 }
  0xd5   :  { %3545 = vmatpush3.bf16.msra.mxu0 %v3832_v15  ;;  %v198_v15 = vld [vmem:[#allocation5 + $0x18] sm:$0xff] }
  0xd6   :  { %3546 = vmatprep.subr.bf16.mxu0 %v3833_v16 }
  0xd9   :  { %3547 = vmatpush3.bf16.msra.mxu0 %v3833_v16  ;;  %v3843_v16 = vld [vmem:[#allocation10 + $0x34] ss:$12 sps:$4 sm:$0xff]  }
  0xda   :  { %3584 = vmatprep.subr.bf16.mxu0 %v3837_v25 }
  0xdc   :  { %3549 = vmatmul.mubr.bf16.vlgmr.msra.gmra.mrb[0].mxu0 %v220_v17  ;;  %v199_v17 = vld [vmem:[#allocation5 + $0x20] sm:$0xff] }
  0xdd   :  { %3552 = vmatprep.mubr.bf16.mxu0 %v221_v18  ;;  %3585 = vmatpush3.bf16.msra.mxu0 %v3837_v25  ;;  %v3841_v18 = vld [vmem:[#allocation10 + $0x30] ss:$12 sps:$4 sm:$0xff]   ;;  %v3849_v25 = vld [vmem:[#allocation10 + $0x60] ss:$12 sps:$4 sm:$0xff]  }
  0xde   :  { %3586 = vmatprep.subr.bf16.mxu0 %v3844_v54 }
  0xe1   :  { %3587 = vmatpush3.bf16.msra.mxu0 %v3844_v54 }
  0xe2   :  { %3588 = vmatprep.subr.bf16.mxu0 %v3848_v55 }
  0xe4   :  { %3553 = vmatmul.mubr.bf16.gmra.mrb[4].mxu0 %v222_v19  ;;  %v200_v19 = vld [vmem:[#allocation5 + $0x28] sm:$0xff] }
  0xe5   :  { %3589 = vmatpush3.bf16.msra.mxu0 %v3848_v55 }
  0xe6   :  { %3590 = vmatprep.subr.bf16.mxu0 %v3852_v56 }
  0xe9   :  { %3591 = vmatpush3.bf16.msra.mxu0 %v3852_v56 }
  0xea   :  { %3592 = vmatprep.subr.bf16.mxu0 %v3856_v57 }
  0xed   :  { %3593 = vmatpush3.bf16.msra.mxu0 %v3856_v57 }
  0xee   :  { %3594 = vmatprep.subr.bf16.mxu0 %v3860_v58 }
  0xf1   :  { %3595 = vmatpush3.bf16.msra.mxu0 %v3860_v58 }
  0xf2   :  { %3596 = vmatprep.subr.bf16.mxu0 %v3864_v59 }
  0xf5   :  { %3597 = vmatpush3.bf16.msra.mxu0 %v3864_v59 }
  0xf6   :  { %3598 = vmatprep.subr.bf16.mxu0 %v3865_v60 }
  0xf9   :  { %3599 = vmatpush3.bf16.msra.mxu0 %v3865_v60 }
 0x148   :  { %v476_v21 = vpop.xlane.xlu0 %475  ;;  %v480_v22 = vpop.xlane.xlu1 %479 }
 0x149   :  { %v492_v23 = vmul.f32 0.0078125, %v476_v21  ;;  %v494_v24 = vmul.f32 0.0078125, %v480_v22  ;;  %v201_v21 = vld [vmem:[#allocation5 + $0x30] sm:$0xff] }
 0x14a   :  { %v3845_v22 = vld [vmem:[#allocation10 + $0x48] ss:$12 sps:$4 sm:$0xff]  }
 0x14b   :  { %v4618_v26 = vsub.f32 %v179_v0, %v492_v23  ;;  %v4620_v27 = vsub.f32 %v181_v1, %v494_v24  ;;  %v202_v23 = vld [vmem:[#allocation5 + $0x38] sm:$0xff]  ;;  %v3851_v24 = vld [vmem:[#allocation10 + $0x64] ss:$12 sps:$4 sm:$0xff]  }
 0x14c   :  { %v478_v28 = vpop.xlane.xlu0 %477  ;;  %v482_v29 = vpop.xlane.xlu1 %481 }
 0x14d   :  { %v493_v30 = vmul.f32 0.0078125, %v478_v28  ;;  %v508_v31 = vmul.f32 %v4618_v26, %v4618_v26  ;;  %v495_v32 = vmul.f32 0.0078125, %v482_v29  ;;  %v510_v33 = vmul.f32 %v4620_v27, %v4620_v27  ;;  %v3855_v29 = vld [vmem:[#allocation10 + $0x7c] ss:$12 sps:$4 sm:$0xff]  }
 0x14e   :  { %v5700_v28 = vmov 0  }
 0x14f   :  { %516 = vadd.xlane.f32.xlu0 %v508_v31  ;;  %v4627_v34 = vsub.f32 %v4597_v2, %v493_v30  ;;  %v4629_v35 = vsub.f32 %v182_v4, %v495_v32  ;;  %v3853_v30 = vld [vmem:[#allocation10 + $0x78] ss:$12 sps:$4 sm:$0xff]   ;;  %v3859_v31 = vld [vmem:[#allocation10 + $0x94] ss:$12 sps:$4 sm:$0xff]  }
 0x150   :  { %v484_v36 = vpop.xlane.xlu0 %483  ;;  %v486_v37 = vpop.xlane.xlu1 %485 }
 0x151   :  { %v496_v38 = vmul.f32 0.0078125, %v484_v36  ;;  %v509_v39 = vmul.f32 %v4627_v34, %v4627_v34  ;;  %v497_v40 = vmul.f32 0.0078125, %v486_v37  ;;  %v511_v41 = vmul.f32 %v4629_v35, %v4629_v35  ;;  %v3857_v36 = vld [vmem:[#allocation10 + $0x90] ss:$12 sps:$4 sm:$0xff]   ;;  %v3863_v37 = vld [vmem:[#allocation10 + $0xac] ss:$12 sps:$4 sm:$0xff]  }
 0x153   :  { %520 = vadd.xlane.f32.xlu0 %v510_v33  ;;  %518 = vadd.xlane.f32.xlu1 %v509_v39  ;;  %v4636_v42 = vsub.f32 %v4601_v7, %v496_v38  ;;  %v4639_v43 = vsub.f32 %v4603_v8, %v497_v40 }
 0x154   :  { %v488_v44 = vpop.xlane.xlu0 %487  ;;  %v490_v45 = vpop.xlane.xlu1 %489 }
 0x155   :  { %v498_v46 = vmul.f32 0.0078125, %v488_v44  ;;  %v512_v47 = vmul.f32 %v4636_v42, %v4636_v42  ;;  %v499_v48 = vmul.f32 0.0078125, %v490_v45  ;;  %v513_v49 = vmul.f32 %v4639_v43, %v4639_v43  ;;  %v3861_v45 = vld [vmem:[#allocation10 + $0xa8] ss:$12 sps:$4 sm:$0xff]  }
 0x157   :  { %522 = vadd.xlane.f32.xlu1 %v511_v41  ;;  %524 = vadd.xlane.f32.xlu0 %v512_v47  ;;  %v4646_v50 = vsub.f32 %v4605_v10, %v498_v46  ;;  %v4649_v51 = vsub.f32 %v4609_v11, %v499_v48  ;;  %v196_v10 = vld [vmem:[#allocation5 + $0x8] sm:$0xff] }
 0x158   :  { %v3834_v11 = vld [vmem:[#allocation10] ss:$12 sps:$4 sm:$0xff]  }
 0x159   :  { %v514_v52 = vmul.f32 %v4646_v50, %v4646_v50  ;;  %v515_v53 = vmul.f32 %v4649_v51, %v4649_v51 }
 0x15b   :  { %526 = vadd.xlane.f32.xlu1 %v513_v49  ;;  %528 = vadd.xlane.f32.xlu0 %v514_v52 }
 0x15f   :  { %530 = vadd.xlane.f32.xlu1 %v515_v53 }
 0x1af   :  { %v3550_v61 = vpop.f32.mrb[0].mxu0 }
 0x1b0   :  { %v305_v62 = vpop.f32.mrb[1].mxu0 }
 0x1b1   :  { %v3551_v63 = vpop.f32.mrb[2].mxu0 }
 0x1b2   :  { %v3724_v0 = vpack.c.bf16 %v3551_v63, %v3550_v61  ;;  %v308_v1 = vpop.f32.mrb[3].mxu0 }
 0x1b3   :  { %v3720_v2 = vpack.c.bf16 %v308_v1, %v305_v62  ;;  %v3195_v1 = vld [vmem:[%s5670_s9] ss:$0 sm:$0xff] }
 0x1b5   :  { %3721 = vmatprep.subr.bf16.mxu1 %v3720_v2 }
 0x1b6   :  { %3723 = vmatpush3.bf16.msra.mxu1 %v3720_v2 }
 0x1b7   :  { %v3554_v3 = vpop.f32.mrb[4].mxu0  ;;  %3725 = vmatprep.subr.bf16.mxu1 %v3724_v0 }
 0x1b8   :  { %v321_v4 = vpop.f32.mrb[5].mxu0 }
 0x1b9   :  { %v3555_v5 = vpop.f32.mrb[6].mxu0 }
 0x1ba   :  { %v3732_v6 = vpack.c.bf16 %v3555_v5, %v3554_v3  ;;  %v324_v7 = vpop.f32.mrb[7].mxu0  ;;  %3727 = vmatpush3.bf16.msra.mxu1 %v3724_v0 }
 0x1bb   :  { %v3728_v8 = vpack.c.bf16 %v324_v7, %v321_v4 }
 0x1bd   :  { %3729 = vmatprep.subr.bf16.mxu1 %v3728_v8 }
 0x1be   :  { %3731 = vmatpush3.bf16.msra.mxu1 %v3728_v8 }
 0x1bf   :  { %3733 = vmatprep.subr.bf16.mxu1 %v3732_v6 }
 0x1c2   :  { %3735 = vmatpush3.bf16.msra.mxu1 %v3732_v6 }
 0x1c3   :  { %773 = vmatprep.subr.bf16.mxu1 %v3836_v9 }
 0x1c5   :  { %3573 = vmatmul.mubr.msk.f32.vlgmr.msra.gmra.mrb[0].mxu1 %vm343_vm0, %v196_v10 }
 0x1c6   :  { %774 = vmatpush1.bf16.msra.mxu1 %v3834_v11  ;;  %3575 = vmatprep.mubr.msk.f32.mxu1 %vm343_vm0, %v197_v13 }
 0x1c7   :  { %775 = vmatprep.subr.bf16.mxu1 %v3840_v12 }
 0x1c9   :  { %3576 = vmatmul.mubr.msk.f32.gmra.mrb[2].mxu1 %vm343_vm0, %v198_v15 }
 0x1ca   :  { %776 = vmatpush1.bf16.msra.mxu1 %v3838_v14  ;;  %3578 = vmatprep.mubr.msk.f32.mxu1 %vm343_vm0, %v199_v17 }
 0x1cb   :  { %777 = vmatprep.subr.bf16.mxu1 %v3843_v16 }
 0x1cd   :  { %3579 = vmatmul.mubr.msk.f32.gmra.mrb[4].mxu1 %vm343_vm0, %v200_v19 }
 0x1ce   :  { %778 = vmatpush1.bf16.msra.mxu1 %v3841_v18  ;;  %3581 = vmatprep.mubr.msk.f32.mxu1 %vm343_vm0, %v201_v21 }
 0x1cf   :  { %779 = vmatprep.subr.bf16.mxu1 %v3847_v20 }
 0x1d1   :  { %3582 = vmatmul.mubr.msk.f32.gmra.mrb[6].mxu1 %vm343_vm0, %v202_v23 }
 0x1d2   :  { %780 = vmatpush1.bf16.msra.mxu1 %v3845_v22  ;;  %805 = vmatprep.mubr.bf16.mxu1 %v5700_v28 }
 0x1d3   :  { %781 = vmatprep.subr.bf16.mxu1 %v3851_v24 }
 0x1d6   :  { %782 = vmatpush1.bf16.msra.mxu1 %v3849_v25 }
 0x1d7   :  { %783 = vmatprep.subr.bf16.mxu1 %v3855_v29 }
 0x1da   :  { %784 = vmatpush1.bf16.msra.mxu1 %v3853_v30 }
 0x1db   :  { %785 = vmatprep.subr.bf16.mxu1 %v3859_v31 }
 0x1dc   :  { %v517_v32 = vpop.xlane.xlu0 %516 }
 0x1dd   :  { %v532_v33 = vmul.f32 0.0078125, %v517_v32 }
 0x1de   :  { %786 = vmatpush1.bf16.msra.mxu1 %v3857_v36 }
 0x1df   :  { %v540_v38 = vadd.f32 1e-05, %v532_v33  ;;  %787 = vmatprep.subr.bf16.mxu1 %v3863_v37  ;;  %v3867_v37 = vld [vmem:[#allocation11 + $0x8] sm:$0xff]  }
 0x1e0   :  { %v519_v39 = vpop.xlane.xlu1 %518  ;;  %v521_v40 = vpop.xlane.xlu0 %520 }
 0x1e1   :  { %3930 = vrsqrt.f32 %v540_v38  ;;  %v533_v41 = vmul.f32 0.0078125, %v519_v39  ;;  %v534_v44 = vmul.f32 0.0078125, %v521_v40  ;;  %v3186_v38 = vld [vmem:[%s5735_s26] ss:$0 sm:$0xff] }
 0x1e2   :  { %788 = vmatpush1.bf16.msra.mxu1 %v3861_v45  ;;  %v4996_v45 = vld [vmem:[#allocation7 + $0x10] sm:$0xff] }
 0x1e3   :  { %v541_v46 = vadd.f32 1e-05, %v533_v41  ;;  %v542_v47 = vadd.f32 1e-05, %v534_v44 }
 0x1e4   :  { %v523_v48 = vpop.xlane.xlu1 %522  ;;  %v525_v49 = vpop.xlane.xlu0 %524 }
 0x1e5   :  { %3932 = vrsqrt.f32 %v541_v46  ;;  %v535_v52 = vmul.f32 0.0078125, %v523_v48  ;;  %v536_v53 = vmul.f32 0.0078125, %v525_v49 }
 0x1e6   :  { %3934 = vrsqrt.f32 %v542_v47 }
 0x1e7   :  { %v543_v54 = vadd.f32 1e-05, %v535_v52  ;;  %v544_v55 = vadd.f32 1e-05, %v536_v53 }
 0x1e8   :  { %v527_v56 = vpop.xlane.xlu1 %526  ;;  %v529_v57 = vpop.xlane.xlu0 %528 }
 0x1e9   :  { %3936 = vrsqrt.f32 %v543_v54  ;;  %v537_v58 = vmul.f32 0.0078125, %v527_v56  ;;  %v538_v59 = vmul.f32 0.0078125, %v529_v57 }
 0x1ea   :  { %3938 = vrsqrt.f32 %v544_v55 }
 0x1eb   :  { %v3931_v60 = vpop.eup %3930  ;;  %v545_v61 = vadd.f32 1e-05, %v537_v58  ;;  %v546_v62 = vadd.f32 1e-05, %v538_v59 }
 0x1ec   :  { %v556_v63 = vmul.f32 %v3931_v60, %v4618_v26  ;;  %v531_v0 = vpop.xlane.xlu1 %530  ;;  %v3196_v26 = vld [vmem:[%s5671_s10] ss:$0 sm:$0xff] }
 0x1ed   :  { %3940 = vrsqrt.f32 %v545_v61  ;;  %v539_v2 = vmul.f32 0.0078125, %v531_v0 }
 0x1ee   :  { %3942 = vrsqrt.f32 %v546_v62  ;;  %v570_v6 = vmul.f32 %v3195_v1, %v556_v63  ;;  %v630_v63 = vlaneseq }
 0x1ef   :  { %v3933_v3 = vpop.eup %3932  ;;  %v547_v4 = vadd.f32 1e-05, %v539_v2  ;;  %v628_v2 = vld [vmem:[%s5667_s6] sm:$0x7]  ;;  %s4339_s6 = smov 96  }
 0x1f0   :  { %v3935_v5 = vpop.eup %3934  ;;  %v557_v7 = vmul.f32 %v3933_v3, %v4627_v34  ;;  %v4673_v14 = vadd.f32 %v3196_v26, %v570_v6  ;;  %v4731_v0 = vshrl.u32 %v630_v63, 7 }
 0x1f1   :  { %v558_v8 = vmul.f32 %v3935_v5, %v4620_v27  ;;  %3944 = vrsqrt.f32 %v547_v4 }
 0x1f2   :  { %v571_v9 = vmul.f32 %v3195_v1, %v557_v7  ;;  %5744 = vst [vmem:[#allocation34_spill] sm:$0xff] %v4731_v0  ;;  %v5698_v3 = vsub.s32 1, %v4731_v0  ;;  %v640_v5 = vsub.s32 2, %v4731_v0 }
 0x1f3   :  { %v3937_v10 = vpop.eup %3936  ;;  %v572_v11 = vmul.f32 %v3195_v1, %v558_v8 }
 0x1f4   :  { %v3939_v12 = vpop.eup %3938  ;;  %v559_v13 = vmul.f32 %v3937_v10, %v4629_v35  ;;  %v4675_v15 = vadd.f32 %v3196_v26, %v571_v9  ;;  %v4745_v7 = vrot.slane %v628_v2, %v5698_v3 }
 0x1f5   :  { %v560_v16 = vmul.f32 %v3939_v12, %v4636_v42  ;;  %v4680_v18 = vadd.f32 %v3196_v26, %v572_v11  ;;  %v641_v12 = vrot.slane %v628_v2, %v640_v5 }
 0x1f6   :  { %v573_v34 = vmul.f32 %v3195_v1, %v559_v13  ;;  %v624_v27 = vpack.c.bf16 %v4675_v15, %v4673_v14 }
 0x1f7   :  { %v3941_v17 = vpop.eup %3940  ;;  %v574_v21 = vmul.f32 %v3195_v1, %v560_v16 }
 0x1f8   :  { %v3943_v19 = vpop.eup %3942  ;;  %806 = vmatmul.mubr.bf16.vlgmr.msra.gmra.mrb[8].mxu1 %v624_v27  ;;  %3600 = vmatprep.mubr.bf16.mxu0 %v624_v27  ;;  %v4682_v20 = vadd.f32 %v3196_v26, %v573_v34  ;;  %v561_v35 = vmul.f32 %v3941_v17, %v4639_v43 }
 0x1f9   :  { %815 = vmatprep.mubr.bf16.mxu1 %v5700_v28  ;;  %v562_v22 = vmul.f32 %v3943_v19, %v4646_v50  ;;  %v4689_v25 = vadd.f32 %v3196_v26, %v574_v21 }
 0x1fa   :  { %v625_v42 = vpack.c.bf16 %v4682_v20, %v4680_v18  ;;  %v575_v23 = vmul.f32 %v3195_v1, %v561_v35 }
 0x1fb   :  { %v3945_v24 = vpop.eup %3944  ;;  %v576_v31 = vmul.f32 %v3195_v1, %v562_v22 }
 0x1fc   :  { %3601 = vmatmul.mubr.bf16.vlgmr.msra.gmra.mrb[8].mxu0 %v625_v42  ;;  %v4691_v29 = vadd.f32 %v3196_v26, %v575_v23  ;;  %v563_v30 = vmul.f32 %v3945_v24, %v4649_v51  ;;  %v3866_v51 = vld [vmem:[#allocation11] sm:$0xff]  }
 0x1fd   :  { %v4696_v50 = vadd.f32 %v3196_v26, %v576_v31  ;;  %3624 = vmatprep.subr.bf16.mxu0 %v3866_v51 }
 0x1fe   :  { %5732 = vst [vmem:[#allocation23_spill] sm:$0xff] %v4691_v29  ;;  %v626_v43 = vpack.c.bf16 %v4691_v29, %v4689_v25  ;;  %v577_v32 = vmul.f32 %v3195_v1, %v563_v30  ;;  %3625 = vmatpush3.bf16.msra.mxu0 %v3866_v51  ;;  %v5699_v1 = vsub.s32 0, %v4731_v0 }
 0x1ff   :  { %5733 = vst [vmem:[#allocation24_spill] sm:$0xff] %v4696_v50  ;;  %3626 = vmatprep.subr.bf16.mxu0 %v3867_v37 }
 0x200   :  { %816 = vmatmul.mubr.bf16.gmra.mrb[12].mxu1 %v625_v42  ;;  %3604 = vmatprep.mubr.bf16.mxu0 %v626_v43  ;;  %v4698_v33 = vadd.f32 %v3196_v26, %v577_v32  ;;  %v4740_v4 = vrot.slane %v628_v2, %v5699_v1  ;;  %v5003_v1 = vld [vmem:[#allocation7 + $0x28] sm:$0xff] }
 0x201   :  { %825 = vmatprep.mubr.bf16.mxu1 %v5700_v28 }
 0x202   :  { %5734 = vst [vmem:[#allocation25_spill] sm:$0xff] %v4698_v33  ;;  %v627_v36 = vpack.c.bf16 %v4698_v33, %v4696_v50  ;;  %3627 = vmatpush3.bf16.msra.mxu0 %v3867_v37 }
 0x204   :  { %3605 = vmatmul.mubr.bf16.gmra.mrb[12].mxu0 %v627_v36 }
 0x208   :  { %826 = vmatmul.mubr.bf16.gmra.mrb[16].mxu1 %v626_v43 }
 0x209   :  { %835 = vmatprep.mubr.bf16.mxu1 %v5700_v28 }
 0x210   :  { %836 = vmatmul.mubr.bf16.gmra.mrb[20].mxu1 %v627_v36 }
 0x298   :  { %v3574_v39 = vpop.f32.mrb[0].mxu1 }
 0x299   :  { %v4707_v40 = vadd.f32 %v3574_v39, %v3186_v38  ;;  %v434_v41 = vpop.f32.mrb[1].mxu1 }
 0x29a   :  { %v4709_v44 = vadd.f32 %v3186_v38, %v434_v41 }
 0x29b   :  { %5736 = vst [vmem:[#allocation26_spill] sm:$0xff] %v4707_v40 }
 0x29c   :  { %5737 = vst [vmem:[#allocation27_spill] sm:$0xff] %v4709_v44  ;;  %v3577_v46 = vpop.f32.mrb[2].mxu1 }
 0x29d   :  { %v4713_v47 = vadd.f32 %v3577_v46, %v3186_v38  ;;  %v444_v48 = vpop.f32.mrb[3].mxu1 }
 0x29e   :  { %v4715_v49 = vadd.f32 %v3186_v38, %v444_v48 }
 0x29f   :  { %5738 = vst [vmem:[#allocation28_spill] sm:$0xff] %v4713_v47  ;;  %v5056_v47 = vld [vmem:[#allocation7 + $0x30] sm:$0xff] }
 0x2a0   :  { %5739 = vst [vmem:[#allocation29_spill] sm:$0xff] %v4715_v49  ;;  %v3580_v53 = vpop.f32.mrb[4].mxu1 }
 0x2a1   :  { %v4719_v54 = vadd.f32 %v3580_v53, %v3186_v38  ;;  %v454_v55 = vpop.f32.mrb[5].mxu1 }
 0x2a2   :  { %v4721_v56 = vadd.f32 %v3186_v38, %v454_v55 }
 0x2a3   :  { %5740 = vst [vmem:[#allocation30_spill] sm:$0xff] %v4719_v54 }
 0x2a4   :  { %5741 = vst [vmem:[#allocation31_spill] sm:$0xff] %v4721_v56  ;;  %v3583_v58 = vpop.f32.mrb[6].mxu1 }
 0x2a5   :  { %v4725_v59 = vadd.f32 %v3583_v58, %v3186_v38  ;;  %v464_v60 = vpop.f32.mrb[7].mxu1 }
 0x2a6   :  { %v4727_v61 = vadd.f32 %v3186_v38, %v464_v60 }
 0x2a7   :  { %5742 = vst [vmem:[#allocation32_spill] sm:$0xff] %v4725_v59 }
 0x2a8   :  { %5743 = vst [vmem:[#allocation33_spill] sm:$0xff] %v4727_v61  ;;  %v5031_v61 = vld [vmem:[#allocation7 + $0x38] sm:$0xff] }
 0x2cb   :  { %v807_v6 = vpop.f32.mrb[8].mxu1 }
 0x2cc   :  { %v809_v8 = vpop.f32.mrb[9].mxu1  ;;  %v808_v9 = vadd.f32 %v807_v6, %v4740_v4 }
 0x2cd   :  { %v811_v26 = vpop.f32.mrb[10].mxu1  ;;  %v810_v13 = vadd.f32 %v809_v8, %v4745_v7 }
 0x2ce   :  { %v812_v10 = vadd.f32 %v811_v26, %v4740_v4  ;;  %v813_v11 = vpop.f32.mrb[11].mxu1 }
 0x2cf   :  { %v814_v16 = vadd.f32 %v813_v11, %v4745_v7  ;;  %v3602_v34 = vpop.f32.mrb[8].mxu0 }
 0x2d0   :  { %v4751_v27 = vpack.c.bf16 %v812_v10, %v808_v9  ;;  %v880_v17 = vpop.f32.mrb[9].mxu0  ;;  %v889_v21 = vadd.f32 %v3602_v34, %v641_v12 }
 0x2d1   :  { %v4753_v19 = vpack.c.bf16 %v814_v16, %v810_v13  ;;  %v3603_v35 = vpop.f32.mrb[10].mxu0  ;;  %v881_v23 = vadd.f32 %v880_v17, %v641_v12 }
 0x2d2   :  { %v892_v22 = vadd.f32 %v3603_v35, %v641_v12  ;;  %v883_v42 = vpop.f32.mrb[11].mxu0  ;;  %3616 = vmatprep.mubr.msk.bf16.mxu1 %vm919_vm1, %v4751_v27 }
 0x2d3   :  { %v884_v24 = vadd.f32 %v883_v42, %v641_v12  ;;  %v817_v30 = vpop.f32.mrb[12].mxu1  ;;  %1210 = vrot.lane.b32.xlu0 %v4753_v19, %s4339_s6  ;;  %3752 = vmatprep.subr.msk.bf16.mxu1 %vm919_vm1, %v4753_v19  ;;  %v933_v31 = vsel %vm919_vm1, %v4753_v19, 0 }
 0x2d4   :  { %v4763_v43 = vpack.c.bf16 %v892_v22, %v889_v21  ;;  %v819_v32 = vpop.f32.mrb[13].mxu1  ;;  %3609 = vmatpush3.bf16.xpose.msra.mxu1 %v933_v31  ;;  %v818_v37 = vadd.f32 %v817_v30, %v4740_v4 }
 0x2d5   :  { %v4765_v36 = vpack.c.bf16 %v884_v24, %v881_v23  ;;  %v821_v51 = vpop.f32.mrb[14].mxu1  ;;  %v820_v41 = vadd.f32 %v819_v32, %v4745_v7 }
 0x2d6   :  { %v822_v38 = vadd.f32 %v821_v51, %v4740_v4  ;;  %v823_v39 = vpop.f32.mrb[15].mxu1 }
 0x2d7   :  { %v824_v46 = vadd.f32 %v823_v39, %v4745_v7  ;;  %v3606_v48 = vpop.f32.mrb[12].mxu0  ;;  %3628 = vmatprep.mubr.msk.bf16.mxu0 %vm919_vm1, %v4765_v36  ;;  %1198 = vrot.lane.b32.xlu0 %v4751_v27, %s4339_s6 }
 0x2d8   :  { %v4775_v53 = vpack.c.bf16 %v822_v38, %v818_v37  ;;  %v896_v55 = vpop.f32.mrb[13].mxu0  ;;  %3629 = vmatmul.mubr.msk.bf16.vlgmr.msra.gmra.mrb[16].mxu0 %vm919_vm1, %v4763_v43  ;;  %v905_v63 = vadd.f32 %v3606_v48, %v641_v12 }
 0x2d9   :  { %v4779_v58 = vpack.c.bf16 %v824_v46, %v820_v41  ;;  %v3607_v60 = vpop.f32.mrb[14].mxu0  ;;  %v897_v6 = vadd.f32 %v896_v55, %v641_v12 }
 0x2da   :  { %v908_v2 = vadd.f32 %v3607_v60, %v641_v12  ;;  %v899_v5 = vpop.f32.mrb[15].mxu0 }
 0x2db   :  { %v900_v8 = vadd.f32 %v899_v5, %v641_v12  ;;  %v827_v26 = vpop.f32.mrb[16].mxu1  ;;  %1212 = vrot.lane.b32.xlu1 %v4779_v58, %s4339_s6  ;;  %3753 = vmatprep.subr.msk.bf16.mxu1 %vm919_vm1, %v4779_v58  ;;  %v936_v9 = vsel %vm919_vm1, %v4779_v58, 0  ;;  %v3868_v5 = vld [vmem:[#allocation11 + $0x20] sm:$0xff]  }
 0x2dc   :  { %v4787_v10 = vpack.c.bf16 %v908_v2, %v905_v63  ;;  %v829_v11 = vpop.f32.mrb[17].mxu1  ;;  %3611 = vmatpush3.bf16.xpose.msra.mxu1 %v936_v9  ;;  %v828_v34 = vadd.f32 %v827_v26, %v4740_v4 }
 0x2dd   :  { %v4789_v13 = vpack.c.bf16 %v900_v8, %v897_v6  ;;  %v831_v16 = vpop.f32.mrb[18].mxu1  ;;  %v830_v35 = vadd.f32 %v829_v11, %v4745_v7  ;;  %v3869_v11 = vld [vmem:[#allocation11 + $0x28] sm:$0xff]  }
 0x2de   :  { %v832_v12 = vadd.f32 %v831_v16, %v4740_v4  ;;  %v833_v17 = vpop.f32.mrb[19].mxu1 }
 0x2df   :  { %v834_v21 = vadd.f32 %v833_v17, %v4745_v7  ;;  %3632 = vmatprep.mubr.msk.bf16.mxu0 %vm919_vm1, %v4789_v13 }
 0x2e0   :  { %v913_v22 = vpack.c.bf16 %v832_v12, %v828_v34  ;;  %3633 = vmatmul.mubr.msk.bf16.gmra.mrb[20].mxu0 %vm919_vm1, %v4787_v10 }
 0x2e1   :  { %v917_v42 = vpack.c.bf16 %v834_v21, %v830_v35 }
 0x2e2   :  { %1202 = vrot.lane.b32.xlu0 %v913_v22, %s4339_s6 }
 0x2e3   :  { %v837_v23 = vpop.f32.mrb[20].mxu1  ;;  %1214 = vrot.lane.b32.xlu1 %v917_v42, %s4339_s6  ;;  %3754 = vmatprep.subr.msk.bf16.mxu1 %vm919_vm1, %v917_v42  ;;  %v939_v24 = vsel %vm919_vm1, %v917_v42, 0 }
 0x2e4   :  { %v839_v30 = vpop.f32.mrb[21].mxu1  ;;  %3613 = vmatpush3.bf16.xpose.msra.mxu1 %v939_v24  ;;  %v838_v32 = vadd.f32 %v837_v23, %v4740_v4 }
 0x2e5   :  { %v841_v31 = vpop.f32.mrb[22].mxu1  ;;  %v840_v38 = vadd.f32 %v839_v30, %v4745_v7 }
 0x2e6   :  { %v842_v51 = vadd.f32 %v841_v31, %v4740_v4  ;;  %v843_v37 = vpop.f32.mrb[23].mxu1  ;;  %1697 = vrot.lane.b32.xlu0 %v4765_v36, %s5731_s2  ;;  %v3870_v4 = vld [vmem:[#allocation11 + $0x10] sm:$0xff]  }
 0x2e7   :  { %v844_v39 = vadd.f32 %v843_v37, %v4745_v7  ;;  %v3871_v7 = vld [vmem:[#allocation11 + $0x18] sm:$0xff]  }
 0x2e8   :  { %v914_v41 = vpack.c.bf16 %v842_v51, %v838_v32 }
 0x2e9   :  { %v918_v46 = vpack.c.bf16 %v844_v39, %v840_v38 }
 0x2ea   :  { %1699 = vrot.lane.b32.xlu0 %v4763_v43, %s5731_s2 }
 0x2eb   :  { %1216 = vrot.lane.b32.xlu1 %v918_v46, %s4339_s6  ;;  %3755 = vmatprep.subr.msk.bf16.mxu1 %vm919_vm1, %v918_v46  ;;  %v942_v48 = vsel %vm919_vm1, %v918_v46, 0 }
 0x2ec   :  { %3615 = vmatpush3.bf16.xpose.msra.mxu1 %v942_v48 }
 0x2ed   :  { %3652 = vmatprep.subr.bf16.mxu1 %v3870_v4 }
 0x2ee   :  { %1806 = vrot.lane.b32.xlu0 %v917_v42, %s4340_s22 }
 0x2ef   :  { %1200 = vrot.lane.b32.xlu1 %v4775_v53, %s4339_s6 }
 0x2f2   :  { %1703 = vrot.lane.b32.xlu0 %v4787_v10, %s5731_s2 }
 0x2f3   :  { %1204 = vrot.lane.b32.xlu1 %v914_v41, %s4339_s6  ;;  %3617 = vmatmul.mubr.msk.bf16.vlgmr.msra.gmra.mrb[24].mxu1 %vm919_vm1, %v4775_v53 }
 0x2f4   :  { %3620 = vmatprep.mubr.msk.bf16.mxu1 %vm919_vm1, %v913_v22  ;;  %3653 = vmatpush3.bf16.msra.mxu1 %v3870_v4 }
 0x2f5   :  { %3654 = vmatprep.subr.bf16.mxu1 %v3871_v7 }
 0x2f6   :  { %1794 = vrot.lane.b32.xlu0 %v4751_v27, %s4340_s22 }
 0x2f7   :  { %1802 = vrot.lane.b32.xlu1 %v4753_v19, %s4340_s22 }
 0x2f8   :  { %3655 = vmatpush3.bf16.msra.mxu1 %v3871_v7 }
 0x2fa   :  { %1798 = vrot.lane.b32.xlu0 %v913_v22, %s4340_s22 }
 0x2fb   :  { %1804 = vrot.lane.b32.xlu1 %v4779_v58, %s4340_s22  ;;  %3621 = vmatmul.mubr.msk.bf16.gmra.mrb[28].mxu1 %vm919_vm1, %v914_v41 }
 0x2fe   :  { %1403 = vrot.lane.b32.xlu0 %v4765_v36, %s4339_s6 }
 0x2ff   :  { %1701 = vrot.lane.b32.xlu1 %v4789_v13, %s5731_s2 }
 0x302   :  { %1405 = vrot.lane.b32.xlu0 %v4763_v43, %s4339_s6 }
 0x303   :  { %1808 = vrot.lane.b32.xlu1 %v918_v46, %s4340_s22 }
 0x306   :  { %1512 = vrot.lane.b32.xlu0 %v917_v42, %s5731_s2 }
 0x307   :  { %1796 = vrot.lane.b32.xlu1 %v4775_v53, %s4340_s22 }
 0x30a   :  { %1409 = vrot.lane.b32.xlu0 %v4787_v10, %s4339_s6 }
 0x30b   :  { %1800 = vrot.lane.b32.xlu1 %v914_v41, %s4340_s22 }
 0x30e   :  { %1500 = vrot.lane.b32.xlu0 %v4751_v27, %s5731_s2 }
 0x30f   :  { %1508 = vrot.lane.b32.xlu1 %v4753_v19, %s5731_s2 }
 0x312   :  { %1504 = vrot.lane.b32.xlu0 %v913_v22, %s5731_s2 }
 0x313   :  { %1510 = vrot.lane.b32.xlu1 %v4779_v58, %s5731_s2 }
 0x316   :  { %1991 = vrot.lane.b32.xlu0 %v4765_v36, %s4340_s22 }
 0x317   :  { %1407 = vrot.lane.b32.xlu1 %v4789_v13, %s4339_s6 }
 0x31a   :  { %1995 = vrot.lane.b32.xlu0 %v4789_v13, %s4340_s22 }
 0x31b   :  { %1514 = vrot.lane.b32.xlu1 %v918_v46, %s5731_s2 }
 0x31f   :  { %1502 = vrot.lane.b32.xlu1 %v4775_v53, %s5731_s2 }
 0x323   :  { %1506 = vrot.lane.b32.xlu1 %v914_v41, %s5731_s2 }
 0x327   :  { %1993 = vrot.lane.b32.xlu1 %v4763_v43, %s4340_s22 }
 0x32b   :  { %1997 = vrot.lane.b32.xlu1 %v4787_v10, %s4340_s22 }
 0x345   :  { %v1211_v27 = vpop.permute.xlu0 %1210 }
 0x346   :  { %3756 = vmatprep.subr.msk.bf16.mxu0 %vm919_vm1, %v1211_v27  ;;  %v1231_v19 = vsel %vm919_vm1, %v1211_v27, 0 }
 0x347   :  { %3637 = vmatpush3.bf16.xpose.msra.mxu0 %v1231_v19 }
 0x349   :  { %v1199_v36 = vpop.permute.xlu0 %1198 }
 0x34a   :  { %3644 = vmatprep.mubr.msk.bf16.mxu0 %vm919_vm1, %v1199_v36  ;;  %v3872_v36 = vld [vmem:[#allocation11 + $0x30] sm:$0xff]  }
 0x34d   :  { %v1213_v55 = vpop.permute.xlu1 %1212 }
 0x34e   :  { %3757 = vmatprep.subr.msk.bf16.mxu0 %vm919_vm1, %v1213_v55  ;;  %v1234_v53 = vsel %vm919_vm1, %v1213_v55, 0 }
 0x34f   :  { %3639 = vmatpush3.bf16.xpose.msra.mxu0 %v1234_v53  ;;  %v3873_v53 = vld [vmem:[#allocation11 + $0x38] sm:$0xff]  }
 0x354   :  { %v1203_v58 = vpop.permute.xlu0 %1202 }
 0x355   :  { %v1215_v43 = vpop.permute.xlu1 %1214 }
 0x356   :  { %3758 = vmatprep.subr.msk.bf16.mxu0 %vm919_vm1, %v1215_v43  ;;  %v1237_v60 = vsel %vm919_vm1, %v1215_v43, 0 }
 0x357   :  { %3641 = vmatpush3.bf16.xpose.msra.mxu0 %v1237_v60 }
 0x358   :  { %v1698_v63 = vpop.permute.xlu0 %1697 }
 0x35c   :  { %v1700_v2 = vpop.permute.xlu0 %1699 }
 0x35d   :  { %v1217_v6 = vpop.permute.xlu1 %1216 }
 0x35e   :  { %3759 = vmatprep.subr.msk.bf16.mxu0 %vm919_vm1, %v1217_v6  ;;  %v1240_v8 = vsel %vm919_vm1, %v1217_v6, 0 }
 0x35f   :  { %3643 = vmatpush3.bf16.xpose.msra.mxu0 %v1240_v8 }
 0x360   :  { %v1807_v26 = vpop.permute.xlu0 %1806  ;;  %3680 = vmatprep.subr.bf16.mxu0 %v3868_v5 }
 0x361   :  { %v1201_v9 = vpop.permute.xlu1 %1200  ;;  %v1829_v41 = vsel %vm919_vm1, %v1807_v26, 0 }
 0x364   :  { %v1704_v10 = vpop.permute.xlu0 %1703 }
 0x365   :  { %v1205_v13 = vpop.permute.xlu1 %1204 }
 0x366   :  { %3645 = vmatmul.mubr.msk.bf16.vlgmr.msra.gmra.mrb[24].mxu0 %vm919_vm1, %v1201_v9 }
 0x367   :  { %3648 = vmatprep.mubr.msk.bf16.mxu0 %vm919_vm1, %v1203_v58  ;;  %3681 = vmatpush3.bf16.msra.mxu0 %v3868_v5 }
 0x368   :  { %v1795_v16 = vpop.permute.xlu0 %1794  ;;  %3682 = vmatprep.subr.bf16.mxu0 %v3869_v11 }
 0x369   :  { %v1803_v34 = vpop.permute.xlu1 %1802 }
 0x36a   :  { %v1823_v23 = vsel %vm919_vm1, %v1803_v34, 0 }
 0x36b   :  { %3683 = vmatpush3.bf16.msra.mxu0 %v3869_v11 }
 0x36c   :  { %3764 = vmatprep.subr.msk.bf16.mxu0 %vm919_vm1, %v1803_v34  ;;  %v1799_v12 = vpop.permute.xlu0 %1798 }
 0x36d   :  { %v1805_v17 = vpop.permute.xlu1 %1804 }
 0x36e   :  { %3649 = vmatmul.mubr.msk.bf16.gmra.mrb[28].mxu0 %vm919_vm1, %v1205_v13  ;;  %v1826_v31 = vsel %vm919_vm1, %v1805_v17, 0 }
 0x36f   :  { %3684 = vmatprep.mubr.msk.bf16.mxu0 %vm919_vm1, %v1698_v63 }
 0x370   :  { %v1404_v35 = vpop.permute.xlu0 %1403 }
 0x371   :  { %v1702_v21 = vpop.permute.xlu1 %1701  ;;  %3656 = vmatprep.mubr.msk.bf16.mxu1 %vm919_vm1, %v1404_v35 }
 0x374   :  { %v1406_v22 = vpop.permute.xlu0 %1405 }
 0x375   :  { %v1809_v42 = vpop.permute.xlu1 %1808  ;;  %3657 = vmatmul.mubr.msk.bf16.vlgmr.msra.gmra.mrb[32].mxu1 %vm919_vm1, %v1406_v22 }
 0x376   :  { %3685 = vmatmul.mubr.msk.bf16.vlgmr.msra.gmra.mrb[32].mxu0 %vm919_vm1, %v1700_v2  ;;  %v1832_v7 = vsel %vm919_vm1, %v1809_v42, 0 }
 0x377   :  { %3693 = vmatpush3.bf16.xpose.msra.mxu0 %v1823_v23  ;;  %3688 = vmatprep.mubr.msk.bf16.mxu0 %vm919_vm1, %v1702_v21 }
 0x378   :  { %3765 = vmatprep.subr.msk.bf16.mxu0 %vm919_vm1, %v1805_v17  ;;  %v1513_v32 = vpop.permute.xlu0 %1512 }
 0x379   :  { %v1797_v24 = vpop.permute.xlu1 %1796  ;;  %v1535_v27 = vsel %vm919_vm1, %v1513_v32, 0 }
 0x37c   :  { %v1410_v38 = vpop.permute.xlu0 %1409 }
 0x37d   :  { %v1801_v30 = vpop.permute.xlu1 %1800 }
 0x37e   :  { %3689 = vmatmul.mubr.msk.bf16.gmra.mrb[36].mxu0 %vm919_vm1, %v1704_v10 }
 0x37f   :  { %3695 = vmatpush3.bf16.xpose.msra.mxu0 %v1826_v31  ;;  %3700 = vmatprep.mubr.msk.bf16.mxu0 %vm919_vm1, %v1795_v16 }
 0x380   :  { %3766 = vmatprep.subr.msk.bf16.mxu0 %vm919_vm1, %v1807_v26  ;;  %v1501_v48 = vpop.permute.xlu0 %1500 }
 0x381   :  { %v1509_v51 = vpop.permute.xlu1 %1508 }
 0x382   :  { %3760 = vmatprep.subr.msk.bf16.mxu1 %vm919_vm1, %v1509_v51  ;;  %v1529_v37 = vsel %vm919_vm1, %v1509_v51, 0 }
 0x383   :  { %3665 = vmatpush3.bf16.xpose.msra.mxu1 %v1529_v37 }
 0x384   :  { %v1505_v43 = vpop.permute.xlu0 %1504 }
 0x385   :  { %v1511_v39 = vpop.permute.xlu1 %1510 }
 0x386   :  { %3761 = vmatprep.subr.msk.bf16.mxu1 %vm919_vm1, %v1511_v39  ;;  %v1532_v4 = vsel %vm919_vm1, %v1511_v39, 0 }
 0x387   :  { %3697 = vmatpush3.bf16.xpose.msra.mxu0 %v1829_v41 }
 0x388   :  { %3767 = vmatprep.subr.msk.bf16.mxu0 %vm919_vm1, %v1809_v42  ;;  %v1992_v63 = vpop.permute.xlu0 %1991 }
 0x389   :  { %v1408_v46 = vpop.permute.xlu1 %1407 }
 0x38a   :  { %3660 = vmatprep.mubr.msk.bf16.mxu1 %vm919_vm1, %v1408_v46 }
 0x38b   :  { %3661 = vmatmul.mubr.msk.bf16.gmra.mrb[36].mxu1 %vm919_vm1, %v1410_v38 }
 0x38c   :  { %3667 = vmatpush3.bf16.xpose.msra.mxu1 %v1532_v4  ;;  %3672 = vmatprep.mubr.msk.bf16.mxu1 %vm919_vm1, %v1501_v48  ;;  %v1996_v11 = vpop.permute.xlu0 %1995 }
 0x38d   :  { %3762 = vmatprep.subr.msk.bf16.mxu1 %vm919_vm1, %v1513_v32  ;;  %v1515_v19 = vpop.permute.xlu1 %1514 }
 0x38e   :  { %v1538_v55 = vsel %vm919_vm1, %v1515_v19, 0 }
 0x38f   :  { %3699 = vmatpush3.bf16.xpose.msra.mxu0 %v1832_v7 }
 0x391   :  { %v1503_v58 = vpop.permute.xlu1 %1502 }
 0x394   :  { %3669 = vmatpush3.bf16.xpose.msra.mxu1 %v1535_v27 }
 0x395   :  { %3763 = vmatprep.subr.msk.bf16.mxu1 %vm919_vm1, %v1515_v19  ;;  %v1507_v60 = vpop.permute.xlu1 %1506 }
 0x396   :  { %3701 = vmatmul.mubr.msk.bf16.vlgmr.msra.gmra.mrb[40].mxu0 %vm919_vm1, %v1797_v24 }
 0x397   :  { %3704 = vmatprep.mubr.msk.bf16.mxu0 %vm919_vm1, %v1799_v12 }
 0x399   :  { %v1994_v10 = vpop.permute.xlu1 %1993 }
 0x39c   :  { %3671 = vmatpush3.bf16.xpose.msra.mxu1 %v1538_v55 }
 0x39d   :  { %3708 = vmatprep.subr.bf16.mxu1 %v3872_v36  ;;  %v1998_v21 = vpop.permute.xlu1 %1997 }
 0x39e   :  { %3705 = vmatmul.mubr.msk.bf16.gmra.mrb[44].mxu0 %vm919_vm1, %v1801_v30 }
 0x39f   :  { %2534 = vmatprep.mubr.bf16.mxu0 %v5700_v28 }
 0x3a3   :  { %3673 = vmatmul.mubr.msk.bf16.vlgmr.msra.gmra.mrb[40].mxu1 %vm919_vm1, %v1503_v58 }
 0x3a4   :  { %3676 = vmatprep.mubr.msk.bf16.mxu1 %vm919_vm1, %v1505_v43  ;;  %3709 = vmatpush3.bf16.msra.mxu1 %v3872_v36 }
 0x3a5   :  { %3710 = vmatprep.subr.bf16.mxu1 %v3873_v53 }
 0x3a8   :  { %3711 = vmatpush3.bf16.msra.mxu1 %v3873_v53 }
 0x3ab   :  { %3677 = vmatmul.mubr.msk.bf16.gmra.mrb[44].mxu1 %vm919_vm1, %v1507_v60  ;;  %v3630_v2 = vpop.f32.mrb[16].mxu0 }
 0x3ac   :  { %3712 = vmatprep.mubr.msk.bf16.mxu1 %vm919_vm1, %v1992_v63  ;;  %v1163_v5 = vpop.f32.mrb[17].mxu0  ;;  %v5024_v63 = vld [vmem:[#allocation7 + $0x20] sm:$0xff] }
 0x3ad   :  { %v3631_v6 = vpop.f32.mrb[18].mxu0 }
 0x3ae   :  { %v2177_v8 = vpack.c.bf16 %v3631_v6, %v3630_v2  ;;  %v1166_v26 = vpop.f32.mrb[19].mxu0 }
 0x3af   :  { %v2176_v9 = vpack.c.bf16 %v1166_v26, %v1163_v5 }
 0x3b3   :  { %3713 = vmatmul.mubr.msk.bf16.vlgmr.msra.gmra.mrb[48].mxu1 %vm919_vm1, %v1994_v10  ;;  %v3634_v13 = vpop.f32.mrb[20].mxu0 }
 0x3b4   :  { %3716 = vmatprep.mubr.msk.bf16.mxu1 %vm919_vm1, %v1996_v11  ;;  %v1179_v16 = vpop.f32.mrb[21].mxu0 }
 0x3b5   :  { %v3635_v34 = vpop.f32.mrb[22].mxu0 }
 0x3b6   :  { %v2179_v12 = vpack.c.bf16 %v3635_v34, %v3634_v13  ;;  %v1182_v17 = vpop.f32.mrb[23].mxu0 }
 0x3b7   :  { %v2178_v35 = vpack.c.bf16 %v1182_v17, %v1179_v16 }
 0x3bb   :  { %3717 = vmatmul.mubr.msk.bf16.gmra.mrb[52].mxu1 %vm919_vm1, %v1998_v21 }
 0x3c6   :  { %v4914_v22 = vpop.f32.mrb[24].mxu1 }
 0x3c7   :  { %v4916_v42 = vpop.f32.mrb[25].mxu1 }
 0x3c8   :  { %v4918_v23 = vpop.f32.mrb[26].mxu1 }
 0x3c9   :  { %v4920_v24 = vpop.f32.mrb[27].mxu1 }
 0x3ce   :  { %v4922_v30 = vpop.f32.mrb[28].mxu1 }
 0x3cf   :  { %v4924_v31 = vpop.f32.mrb[29].mxu1 }
 0x3d0   :  { %v4926_v32 = vpop.f32.mrb[30].mxu1 }
 0x3d1   :  { %v4928_v51 = vpop.f32.mrb[31].mxu1 }
 0x439   :  { %v4930_v37 = vpop.f32.mrb[24].mxu0 }
 0x43a   :  { %v1276_v38 = vpop.f32.mrb[25].mxu0 }
 0x43b   :  { %v3647_v39 = vpop.f32.mrb[26].mxu0 }
 0x43c   :  { %v1279_v41 = vpop.f32.mrb[27].mxu0 }
 0x441   :  { %v4932_v46 = vpop.f32.mrb[28].mxu0 }
 0x442   :  { %v4934_v48 = vpop.f32.mrb[29].mxu0 }
 0x443   :  { %v4936_v4 = vpop.f32.mrb[30].mxu0 }
 0x444   :  { %v4938_v7 = vpop.f32.mrb[31].mxu0 }
 0x448   :  { %v4940_v27 = vpop.f32.mrb[32].mxu1 }
 0x449   :  { %v4942_v19 = vpop.f32.mrb[33].mxu1  ;;  %v3686_v36 = vpop.f32.mrb[32].mxu0 }
 0x44a   :  { %v4944_v55 = vpop.f32.mrb[34].mxu1  ;;  %v1763_v53 = vpop.f32.mrb[33].mxu0 }
 0x44b   :  { %v4948_v43 = vpop.f32.mrb[35].mxu1  ;;  %v3687_v60 = vpop.f32.mrb[34].mxu0 }
 0x44c   :  { %v2185_v2 = vpack.c.bf16 %v3687_v60, %v3686_v36  ;;  %v1766_v5 = vpop.f32.mrb[35].mxu0 }
 0x44d   :  { %v2184_v6 = vpack.c.bf16 %v1766_v5, %v1763_v53 }
 0x44f   :  { %3412 = vmatprep.subr.bf16.mxu1 %v2184_v6  ;;  %v4969_v6 = vld [vmem:[#allocation7 + $0x8] sm:$0xff] }
 0x450   :  { %3413 = vmatpush3.bf16.msra.mxu1 %v2176_v9  ;;  %v4987_v62 = vadd.f32 %v1279_v41, %v4969_v6 }
 0x451   :  { %v3690_v26 = vpop.f32.mrb[36].mxu0  ;;  %3414 = vmatprep.subr.bf16.mxu1 %v2185_v2  ;;  %v4964_v2 = vld [vmem:[#allocation7] sm:$0xff] }
 0x452   :  { %v1779_v10 = vpop.f32.mrb[37].mxu0  ;;  %v1310_v3 = vsel %vm343_vm0, %v4987_v62, -inf }
 0x453   :  { %v3691_v11 = vpop.f32.mrb[38].mxu0 }
 0x454   :  { %v2187_v13 = vpack.c.bf16 %v3691_v11, %v3690_v26  ;;  %v1782_v16 = vpop.f32.mrb[39].mxu0  ;;  %3415 = vmatpush3.bf16.msra.mxu1 %v2177_v8 }
 0x455   :  { %v2186_v34 = vpack.c.bf16 %v1782_v16, %v1779_v10  ;;  %v4972_v10 = vadd.f32 %v1276_v38, %v4964_v2  ;;  %v4979_v16 = vld [vmem:[#allocation7 + $0x18] sm:$0xff] }
 0x456   :  { %v4992_v52 = vadd.f32 %v3647_v39, %v4979_v16 }
 0x457   :  { %3416 = vmatprep.subr.bf16.mxu1 %v2186_v34 }
 0x458   :  { %3417 = vmatpush3.bf16.msra.mxu1 %v2178_v35  ;;  %v1316_v9 = vsel %vm343_vm0, %v4992_v52, -inf }
 0x459   :  { %3418 = vmatprep.subr.bf16.mxu1 %v2187_v13 }
 0x45c   :  { %3419 = vmatpush3.bf16.msra.mxu1 %v2179_v12 }
 0x45e   :  { %v4952_v17 = vpop.f32.mrb[36].mxu1 }
 0x45f   :  { %v4954_v21 = vpop.f32.mrb[37].mxu1 }
 0x460   :  { %v4956_v36 = vpop.f32.mrb[38].mxu1 }
 0x461   :  { %v4960_v53 = vpop.f32.mrb[39].mxu1 }
 0x469   :  { %v3702_v8 = vpop.f32.mrb[40].mxu0 }
 0x46a   :  { %v1868_v35 = vpop.f32.mrb[41].mxu0  ;;  %v4999_v41 = vadd.f32 %v3702_v8, %v4996_v45  ;;  %v5014_v8 = vadd.f32 %v4930_v37, %v4996_v45 }
 0x46b   :  { %v4967_v12 = vadd.f32 %v1868_v35, %v4964_v2  ;;  %v3703_v5 = vpop.f32.mrb[42].mxu0 }
 0x46c   :  { %v1871_v26 = vpop.f32.mrb[43].mxu0  ;;  %v4982_v34 = vadd.f32 %v3703_v5, %v4979_v16  ;;  %v1905_v58 = vsel %vm343_vm0, %v4999_v41, -inf  ;;  %v1313_v37 = vsel %vm343_vm0, %v5014_v8, -inf }
 0x46d   :  { %v4975_v11 = vadd.f32 %v1871_v26, %v4969_v6  ;;  %v1899_v13 = vsel %vm343_vm0, %v4967_v12, -inf  ;;  %v1307_v26 = vsel %vm343_vm0, %v4972_v10, -inf }
 0x46e   :  { %1900 = vmax.xlane.f32.xlu0 %v1899_v13  ;;  %v1908_v5 = vsel %vm343_vm0, %v4982_v34, -inf }
 0x46f   :  { %v1902_v35 = vsel %vm343_vm0, %v4975_v11, -inf }
 0x470   :  { %1903 = vmax.xlane.f32.xlu1 %v1902_v35 }
 0x471   :  { %v3706_v38 = vpop.f32.mrb[44].mxu0 }
 0x472   :  { %1308 = vmax.xlane.f32.xlu0 %v1307_v26  ;;  %v1884_v57 = vpop.f32.mrb[45].mxu0 }
 0x473   :  { %v3707_v13 = vpop.f32.mrb[46].mxu0 }
 0x474   :  { %1909 = vmax.xlane.f32.xlu1 %v1908_v5  ;;  %v1887_v35 = vpop.f32.mrb[47].mxu0 }
 0x475   :  { %v5008_v39 = vadd.f32 %v1887_v35, %v5003_v1 }
 0x476   :  { %1311 = vmax.xlane.f32.xlu0 %v1310_v3  ;;  %v5005_v26 = vpop.f32.mrb[40].mxu1  ;;  %v5020_v3 = vadd.f32 %v4938_v7, %v5003_v1  ;;  %v5036_v7 = vadd.f32 %v3707_v13, %v5031_v61  ;;  %v5052_v13 = vadd.f32 %v4936_v4, %v5031_v61 }
 0x477   :  { %v1574_v28 = vpop.f32.mrb[41].mxu1  ;;  %v1914_v35 = vsel %vm343_vm0, %v5008_v39, -inf }
 0x478   :  { %1317 = vmax.xlane.f32.xlu1 %v1316_v9  ;;  %v3675_v5 = vpop.f32.mrb[42].mxu1  ;;  %v5027_v9 = vadd.f32 %v1884_v57, %v5024_v63  ;;  %v1322_v56 = vsel %vm343_vm0, %v5020_v3, -inf  ;;  %v5046_v57 = vadd.f32 %v4934_v48, %v5024_v63  ;;  %v1920_v49 = vsel %vm343_vm0, %v5036_v7, -inf }
 0x479   :  { %v1577_v60 = vpop.f32.mrb[43].mxu1  ;;  %v1328_v4 = vsel %vm343_vm0, %v5052_v13, -inf }
 0x47a   :  { %1906 = vmax.xlane.f32.xlu0 %v1905_v58  ;;  %v1319_v48 = vsel %vm343_vm0, %v5046_v57, -inf }
 0x47c   :  { %1915 = vmax.xlane.f32.xlu1 %v1914_v35 }
 0x47e   :  { %1314 = vmax.xlane.f32.xlu0 %v1313_v37  ;;  %v5033_v58 = vpop.f32.mrb[44].mxu1  ;;  %v1911_v37 = vsel %vm343_vm0, %v5027_v9, -inf }
 0x47f   :  { %v5038_v59 = vpop.f32.mrb[45].mxu1 }
 0x480   :  { %1323 = vmax.xlane.f32.xlu1 %v1322_v56  ;;  %v5042_v35 = vpop.f32.mrb[46].mxu1  ;;  %v5059_v56 = vadd.f32 %v3706_v38, %v5056_v47 }
 0x481   :  { %v1593_v54 = vpop.f32.mrb[47].mxu1 }
 0x482   :  { %1912 = vmax.xlane.f32.xlu0 %v1911_v37  ;;  %v5064_v37 = vadd.f32 %v1577_v60, %v4969_v6  ;;  %v1917_v50 = vsel %vm343_vm0, %v5059_v56, -inf  ;;  %v5076_v60 = vadd.f32 %v4920_v24, %v4969_v6 }
 0x484   :  { %1921 = vmax.xlane.f32.xlu1 %v1920_v49  ;;  %v5070_v49 = vadd.f32 %v4932_v46, %v5056_v47  ;;  %v1608_v29 = vsel %vm343_vm0, %v5064_v37, -inf }
 0x486   :  { %1320 = vmax.xlane.f32.xlu0 %v1319_v48  ;;  %v3714_v44 = vpop.f32.mrb[48].mxu1 }
 0x487   :  { %v2057_v40 = vpop.f32.mrb[49].mxu1 }
 0x488   :  { %1329 = vmax.xlane.f32.xlu1 %v1328_v4  ;;  %v3715_v0 = vpop.f32.mrb[50].mxu1  ;;  %v5081_v4 = vadd.f32 %v1574_v28, %v4964_v2  ;;  %v5095_v28 = vadd.f32 %v4916_v42, %v4964_v2  ;;  %v5110_v42 = vadd.f32 %v5005_v26, %v4996_v45 }
 0x489   :  { %v2189_v38 = vpack.c.bf16 %v3715_v0, %v3714_v44  ;;  %v2060_v33 = vpop.f32.mrb[51].mxu1  ;;  %v5745_v44 = vpack.c.bf16 %v4948_v43, %v4942_v19  ;;  %v5746_v43 = vpack.c.bf16 %v4944_v55, %v4940_v27  ;;  %v5747_v27 = vpack.c.bf16 %v4960_v53, %v4954_v21 }
 0x48a   :  { %v2188_v48 = vpack.c.bf16 %v2060_v33, %v2057_v40  ;;  %1918 = vmax.xlane.f32.xlu0 %v1917_v50  ;;  %v1325_v33 = vsel %vm343_vm0, %v5070_v49, -inf  ;;  %v5089_v40 = vadd.f32 %v3675_v5, %v4979_v16  ;;  %v1605_v6 = vsel %vm343_vm0, %v5081_v4, -inf }
 0x48b   :  { %v1009_v55 = vsel %vm343_vm0, %v5095_v28, -inf  ;;  %v5748_v21 = vpack.c.bf16 %v4956_v36, %v4952_v17  ;;  %v1611_v53 = vsel %vm343_vm0, %v5110_v42, -inf  ;;  %v5145_v17 = vadd.f32 %v5042_v35, %v5031_v61 }
 0x48c   :  { %3420 = vmatprep.subr.bf16.mxu1 %v2188_v48  ;;  %1609 = vmax.xlane.f32.xlu1 %v1608_v29  ;;  %v1012_v29 = vsel %vm343_vm0, %v5076_v60, -inf  ;;  %v1614_v48 = vsel %vm343_vm0, %v5089_v40, -inf  ;;  %v5157_v36 = vadd.f32 %v4926_v32, %v5031_v61  ;;  %v5171_v61 = vadd.f32 %v4922_v30, %v5056_v47 }
 0x48d   :  { %3421 = vmatpush3.bf16.msra.mxu1 %v5745_v44  ;;  %v1626_v35 = vsel %vm343_vm0, %v5145_v17, -inf  ;;  %v5163_v44 = vadd.f32 %v5033_v58, %v5056_v47 }
 0x48e   :  { %1326 = vmax.xlane.f32.xlu0 %v1325_v33  ;;  %v3718_v50 = vpop.f32.mrb[52].mxu1  ;;  %3422 = vmatprep.subr.bf16.mxu1 %v2189_v38  ;;  %v5104_v38 = vadd.f32 %v4918_v23, %v4979_v16  ;;  %v5118_v23 = vadd.f32 %v1593_v54, %v5003_v1  ;;  %v5124_v16 = vadd.f32 %v4914_v22, %v4996_v45  ;;  %v1027_v58 = vsel %vm343_vm0, %v5171_v61, -inf }
 0x48f   :  { %v2073_v0 = vpop.f32.mrb[53].mxu1  ;;  %v5133_v54 = vadd.f32 %v4928_v51, %v5003_v1  ;;  %v5139_v45 = vadd.f32 %v5038_v59, %v5024_v63  ;;  %v5151_v51 = vadd.f32 %v4924_v31, %v5024_v63  ;;  %v1030_v63 = vsel %vm343_vm0, %v5157_v36, -inf }
 0x490   :  { %v3719_v24 = vpop.f32.mrb[54].mxu1  ;;  %1013 = vmax.xlane.f32.xlu1 %v1012_v29  ;;  %v1018_v2 = vsel %vm343_vm0, %v5104_v38, -inf  ;;  %v1620_v26 = vsel %vm343_vm0, %v5118_v23, -inf  ;;  %v1015_v22 = vsel %vm343_vm0, %v5124_v16, -inf  ;;  %v1623_v32 = vsel %vm343_vm0, %v5163_v44, -inf }
 0x491   :  { %v2191_v46 = vpack.c.bf16 %v3719_v24, %v3718_v50  ;;  %v2076_v19 = vpop.f32.mrb[55].mxu1  ;;  %3423 = vmatpush3.bf16.msra.mxu1 %v5746_v43  ;;  %v1024_v1 = vsel %vm343_vm0, %v5133_v54, -inf  ;;  %v1617_v59 = vsel %vm343_vm0, %v5139_v45, -inf  ;;  %v1021_v31 = vsel %vm343_vm0, %v5151_v51, -inf }
 0x492   :  { %v2190_v5 = vpack.c.bf16 %v2076_v19, %v2073_v0  ;;  %1606 = vmax.xlane.f32.xlu0 %v1605_v6 }
 0x494   :  { %3424 = vmatprep.subr.bf16.mxu1 %v2190_v5  ;;  %1615 = vmax.xlane.f32.xlu1 %v1614_v48 }
 0x495   :  { %3425 = vmatpush3.bf16.msra.mxu1 %v5747_v27 }
 0x496   :  { %3426 = vmatprep.subr.bf16.mxu1 %v2191_v46  ;;  %1010 = vmax.xlane.f32.xlu0 %v1009_v55 }
 0x498   :  { %1019 = vmax.xlane.f32.xlu1 %v1018_v2 }
 0x499   :  { %3427 = vmatpush3.bf16.msra.mxu1 %v5748_v21 }
 0x49a   :  { %1612 = vmax.xlane.f32.xlu0 %v1611_v53 }
 0x49c   :  { %1621 = vmax.xlane.f32.xlu1 %v1620_v26 }
 0x49e   :  { %1016 = vmax.xlane.f32.xlu0 %v1015_v22 }
 0x4a0   :  { %1025 = vmax.xlane.f32.xlu1 %v1024_v1 }
 0x4a2   :  { %1618 = vmax.xlane.f32.xlu0 %v1617_v59 }
 0x4a4   :  { %1627 = vmax.xlane.f32.xlu1 %v1626_v35 }
 0x4a6   :  { %1022 = vmax.xlane.f32.xlu0 %v1021_v31 }
 0x4a8   :  { %1031 = vmax.xlane.f32.xlu1 %v1030_v63 }
 0x4aa   :  { %1624 = vmax.xlane.f32.xlu0 %v1623_v32 }
 0x4ae   :  { %1028 = vmax.xlane.f32.xlu0 %v1027_v58 }
 0x4fb   :  { %v1901_v33 = vpop.xlane.xlu0 %1900 }
 0x4fc   :  { %v1923_v0 = vsub.f32 %v4967_v12, %v1901_v33 }
 0x4fd   :  { %v1904_v50 = vpop.xlane.xlu1 %1903 }
 0x4fe   :  { %v1931_v19 = vmul.f32 1.442695, %v1923_v0  ;;  %v1924_v48 = vsub.f32 %v4975_v11, %v1904_v50 }
 0x4ff   :  { %v1309_v29 = vpop.xlane.xlu0 %1308 }
 0x500   :  { %v1331_v24 = vsub.f32 %v4972_v10, %v1309_v29  ;;  %v1933_v21 = vmul.f32 1.442695, %v1924_v48 }
 0x501   :  { %v1910_v46 = vpop.xlane.xlu1 %1909 }
 0x502   :  { %v1339_v43 = vmul.f32 1.442695, %v1331_v24  ;;  %v1926_v47 = vsub.f32 %v4982_v34, %v1910_v46 }
 0x503   :  { %v1312_v30 = vpop.xlane.xlu0 %1311 }
 0x504   :  { %3946 = vpow2.f32 %v1339_v43  ;;  %v1332_v6 = vsub.f32 %v4987_v62, %v1312_v30  ;;  %v1937_v27 = vmul.f32 1.442695, %v1926_v47 }
 0x505   :  { %v1318_v5 = vpop.xlane.xlu1 %1317  ;;  %3948 = vpow2.f32 %v1931_v19 }
 0x506   :  { %v1341_v55 = vmul.f32 1.442695, %v1332_v6  ;;  %v1334_v53 = vsub.f32 %v4992_v52, %v1318_v5 }
 0x507   :  { %v1907_v2 = vpop.xlane.xlu0 %1906 }
 0x508   :  { %3950 = vpow2.f32 %v1341_v55  ;;  %v1925_v12 = vsub.f32 %v4999_v41, %v1907_v2  ;;  %v1345_v11 = vmul.f32 1.442695, %v1334_v53 }
 0x509   :  { %v1916_v10 = vpop.xlane.xlu1 %1915  ;;  %3952 = vpow2.f32 %v1937_v27 }
 0x50a   :  { %v1935_v34 = vmul.f32 1.442695, %v1925_v12 }
 0x50b   :  { %v1315_v26 = vpop.xlane.xlu0 %1314 }
 0x50c   :  { %3954 = vpow2.f32 %v1935_v34  ;;  %v1333_v62 = vsub.f32 %v5014_v8, %v1315_v26 }
 0x50d   :  { %v1324_v22 = vpop.xlane.xlu1 %1323  ;;  %3956 = vpow2.f32 %v1933_v21 }
 0x50e   :  { %v5185_v1 = vpop.eup %3946  ;;  %v1343_v59 = vmul.f32 1.442695, %v1333_v62  ;;  %v1336_v35 = vsub.f32 %v5020_v3, %v1324_v22 }
 0x50f   :  { %v1913_v31 = vpop.xlane.xlu0 %1912  ;;  %v1355_v41 = vsel %vm343_vm0, %v5185_v1, 0.0  ;;  %v5190_v63 = vpop.eup %3948 }
 0x510   :  { %3958 = vpow2.f32 %v1343_v59  ;;  %1356 = vadd.xlane.f32.xlu0 %v1355_v41  ;;  %v1927_v52 = vsub.f32 %v5027_v9, %v1913_v31  ;;  %v1349_v58 = vmul.f32 1.442695, %v1336_v35  ;;  %v1947_v0 = vsel %vm343_vm0, %v5190_v63, 0.0 }
 0x511   :  { %v1922_v32 = vpop.xlane.xlu1 %1921  ;;  %3960 = vpow2.f32 %v1345_v11  ;;  %v1928_v9 = vsub.f32 %v5008_v39, %v1916_v10 }
 0x512   :  { %v5193_v8 = vpop.eup %3950  ;;  %v1930_v33 = vsub.f32 %v5036_v7, %v1922_v32  ;;  %v1939_v46 = vmul.f32 1.442695, %v1927_v52  ;;  %3962 = vpow2.f32 %v1349_v58 }
 0x513   :  { %v1321_v50 = vpop.xlane.xlu0 %1320  ;;  %v1358_v3 = vsel %vm343_vm0, %v5193_v8, 0.0  ;;  %v5200_v29 = vpop.eup %3952  ;;  %v1941_v39 = vmul.f32 1.442695, %v1928_v9 }
 0x514   :  { %v1335_v24 = vsub.f32 %v5046_v57, %v1321_v50  ;;  %1359 = vadd.xlane.f32.xlu1 %v1358_v3  ;;  %1948 = vadd.xlane.f32.xlu0 %v1947_v0  ;;  %v1945_v7 = vmul.f32 1.442695, %v1930_v33  ;;  %v1956_v6 = vsel %vm343_vm0, %v5200_v29, 0.0 }
 0x515   :  { %v1330_v19 = vpop.xlane.xlu1 %1329 }
 0x516   :  { %v5204_v43 = vpop.eup %3954  ;;  %v1347_v47 = vmul.f32 1.442695, %v1335_v24  ;;  %v1338_v27 = vsub.f32 %v5052_v13, %v1330_v19 }
 0x517   :  { %v1919_v30 = vpop.xlane.xlu0 %1918  ;;  %v1953_v5 = vsel %vm343_vm0, %v5204_v43, 0.0  ;;  %v5210_v48 = vpop.eup %3956 }
 0x518   :  { %3964 = vpow2.f32 %v1347_v47  ;;  %v1929_v57 = vsub.f32 %v5059_v56, %v1919_v30  ;;  %1957 = vadd.xlane.f32.xlu1 %v1956_v6  ;;  %1954 = vadd.xlane.f32.xlu0 %v1953_v5  ;;  %v1950_v21 = vsel %vm343_vm0, %v5210_v48, 0.0  ;;  %v1353_v13 = vmul.f32 1.442695, %v1338_v27 }
 0x519   :  { %3966 = vpow2.f32 %v1939_v46  ;;  %v1610_v55 = vpop.xlane.xlu1 %1609 }
 0x51a   :  { %v5214_v2 = vpop.eup %3958  ;;  %3968 = vpow2.f32 %v1945_v7  ;;  %v1943_v12 = vmul.f32 1.442695, %v1929_v57  ;;  %v1630_v26 = vsub.f32 %v5064_v37, %v1610_v55 }
 0x51b   :  { %v1327_v10 = vpop.xlane.xlu0 %1326  ;;  %v1361_v53 = vsel %vm343_vm0, %v5214_v2, 0.0  ;;  %v5220_v34 = vpop.eup %3960  ;;  %3970 = vpow2.f32 %v1941_v39 }
 0x51c   :  { %v1337_v56 = vsub.f32 %v5070_v49, %v1327_v10  ;;  %1951 = vadd.xlane.f32.xlu1 %v1950_v21  ;;  %1362 = vadd.xlane.f32.xlu0 %v1361_v53  ;;  %3972 = vpow2.f32 %v1943_v12  ;;  %v1364_v59 = vsel %vm343_vm0, %v5220_v34, 0.0  ;;  %v5226_v35 = vpop.eup %3962  ;;  %v1639_v49 = vmul.f32 1.442695, %v1630_v26 }
 0x51d   :  { %v1014_v62 = vpop.xlane.xlu1 %1013  ;;  %3974 = vpow2.f32 %v1353_v13  ;;  %v1370_v50 = vsel %vm343_vm0, %v5226_v35, 0.0 }
 0x51e   :  { %v1351_v22 = vmul.f32 1.442695, %v1337_v56  ;;  %v1034_v41 = vsub.f32 %v5076_v60, %v1014_v62 }
 0x51f   :  { %v1607_v11 = vpop.xlane.xlu0 %1606 }
 0x520   :  { %v1629_v31 = vsub.f32 %v5081_v4, %v1607_v11  ;;  %1365 = vadd.xlane.f32.xlu1 %v1364_v59  ;;  %3976 = vpow2.f32 %v1351_v22  ;;  %v1043_v60 = vmul.f32 1.442695, %v1034_v41 }
 0x521   :  { %v1616_v52 = vpop.xlane.xlu1 %1615  ;;  %3978 = vpow2.f32 %v1639_v49 }
 0x522   :  { %v5230_v32 = vpop.eup %3964  ;;  %v1637_v37 = vmul.f32 1.442695, %v1629_v31  ;;  %v1632_v24 = vsub.f32 %v5089_v40, %v1616_v52 }
 0x523   :  { %v5232_v58 = vpop.eup %3966  ;;  %v1011_v33 = vpop.xlane.xlu0 %1010  ;;  %v1367_v3 = vsel %vm343_vm0, %v5230_v32, 0.0 }
 0x524   :  { %v5238_v4 = vpop.eup %3968  ;;  %v1033_v0 = vsub.f32 %v5095_v28, %v1011_v33  ;;  %1371 = vadd.xlane.f32.xlu1 %v1370_v50  ;;  %1368 = vadd.xlane.f32.xlu0 %v1367_v3  ;;  %3980 = vpow2.f32 %v1637_v37  ;;  %v1959_v30 = vsel %vm343_vm0, %v5232_v58, 0.0  ;;  %v1643_v40 = vmul.f32 1.442695, %v1632_v24 }
 0x525   :  { %v1020_v9 = vpop.xlane.xlu1 %1019  ;;  %v5242_v19 = vpop.eup %3970  ;;  %v1968_v47 = vsel %vm343_vm0, %v5238_v4, 0.0  ;;  %3982 = vpow2.f32 %v1043_v60 }
 0x526   :  { %v1041_v46 = vmul.f32 1.442695, %v1033_v0  ;;  %v5248_v6 = vpop.eup %3972  ;;  %v1036_v5 = vsub.f32 %v5104_v38, %v1020_v9  ;;  %v1962_v12 = vsel %vm343_vm0, %v5242_v19, 0.0 }
 0x527   :  { %v1613_v7 = vpop.xlane.xlu0 %1612  ;;  %v5252_v27 = vpop.eup %3974  ;;  %v1965_v10 = vsel %vm343_vm0, %v5248_v6, 0.0 }
 0x528   :  { %v1631_v28 = vsub.f32 %v5110_v42, %v1613_v7  ;;  %1969 = vadd.xlane.f32.xlu1 %v1968_v47  ;;  %1960 = vadd.xlane.f32.xlu0 %v1959_v30  ;;  %3984 = vpow2.f32 %v1041_v46  ;;  %v1047_v38 = vmul.f32 1.442695, %v1036_v5  ;;  %v1376_v22 = vsel %vm343_vm0, %v5252_v27, 0.0 }
 0x529   :  { %v1622_v57 = vpop.xlane.xlu1 %1621  ;;  %3986 = vpow2.f32 %v1643_v40 }
 0x52a   :  { %v1641_v39 = vmul.f32 1.442695, %v1631_v28  ;;  %v5258_v21 = vpop.eup %3976  ;;  %v1634_v53 = vsub.f32 %v5118_v23, %v1622_v57 }
 0x52b   :  { %v1017_v55 = vpop.xlane.xlu0 %1016  ;;  %v5262_v26 = vpop.eup %3978  ;;  %v1373_v11 = vsel %vm343_vm0, %v5258_v21, 0.0 }
 0x52c   :  { %v1035_v42 = vsub.f32 %v5124_v16, %v1017_v55  ;;  %1963 = vadd.xlane.f32.xlu1 %v1962_v12  ;;  %1966 = vadd.xlane.f32.xlu0 %v1965_v10  ;;  %3988 = vpow2.f32 %v1641_v39  ;;  %v1647_v23 = vmul.f32 1.442695, %v1634_v53  ;;  %v1656_v33 = vsel %vm343_vm0, %v5262_v26, 0.0 }
 0x52d   :  { %v1026_v56 = vpop.xlane.xlu1 %1025  ;;  %3990 = vpow2.f32 %v1047_v38 }
 0x52e   :  { %v1045_v13 = vmul.f32 1.442695, %v1035_v42  ;;  %v5268_v59 = vpop.eup %3980  ;;  %v1038_v31 = vsub.f32 %v5133_v54, %v1026_v56 }
 0x52f   :  { %v1619_v62 = vpop.xlane.xlu0 %1618  ;;  %v5272_v52 = vpop.eup %3982  ;;  %v1653_v50 = vsel %vm343_vm0, %v5268_v59, 0.0 }
 0x530   :  { %v1633_v16 = vsub.f32 %v5139_v45, %v1619_v62  ;;  %1377 = vadd.xlane.f32.xlu1 %v1376_v22  ;;  %1374 = vadd.xlane.f32.xlu0 %v1373_v11  ;;  %3992 = vpow2.f32 %v1045_v13  ;;  %v1051_v54 = vmul.f32 1.442695, %v1038_v31  ;;  %v1060_v7 = vsel %vm343_vm0, %v5272_v52, 0.0 }
 0x531   :  { %v1628_v49 = vpop.xlane.xlu1 %1627  ;;  %3994 = vpow2.f32 %v1647_v23 }
 0x532   :  { %v1645_v41 = vmul.f32 1.442695, %v1633_v16  ;;  %v5278_v3 = vpop.eup %3984  ;;  %v1636_v0 = vsub.f32 %v5145_v17, %v1628_v49 }
 0x533   :  { %v1023_v37 = vpop.xlane.xlu0 %1022  ;;  %v5282_v9 = vpop.eup %3986  ;;  %v1057_v47 = vsel %vm343_vm0, %v5278_v3, 0.0 }
 0x534   :  { %v1037_v45 = vsub.f32 %v5151_v51, %v1023_v37  ;;  %1657 = vadd.xlane.f32.xlu1 %v1656_v33  ;;  %1654 = vadd.xlane.f32.xlu0 %v1653_v50  ;;  %3996 = vpow2.f32 %v1645_v41  ;;  %v1651_v17 = vmul.f32 1.442695, %v1636_v0  ;;  %v1662_v39 = vsel %vm343_vm0, %v5282_v9, 0.0 }
 0x535   :  { %v1032_v24 = vpop.xlane.xlu1 %1031  ;;  %3998 = vpow2.f32 %v1051_v54 }
 0x536   :  { %v1049_v60 = vmul.f32 1.442695, %v1037_v45  ;;  %v5288_v30 = vpop.eup %3988  ;;  %v1040_v28 = vsub.f32 %v5157_v36, %v1032_v24 }
 0x537   :  { %v1625_v46 = vpop.xlane.xlu0 %1624  ;;  %v5292_v5 = vpop.eup %3990  ;;  %v1659_v55 = vsel %vm343_vm0, %v5288_v30, 0.0 }
 0x538   :  { %v1635_v51 = vsub.f32 %v5163_v44, %v1625_v46  ;;  %1061 = vadd.xlane.f32.xlu1 %v1060_v7  ;;  %1058 = vadd.xlane.f32.xlu0 %v1057_v47  ;;  %4000 = vpow2.f32 %v1049_v60  ;;  %v1055_v10 = vmul.f32 1.442695, %v1040_v28  ;;  %v1066_v38 = vsel %vm343_vm0, %v5292_v5, 0.0 }
 0x539   :  { %4002 = vpow2.f32 %v1651_v17 }
 0x53a   :  { %v1649_v40 = vmul.f32 1.442695, %v1635_v51  ;;  %v5298_v12 = vpop.eup %3992 }
 0x53b   :  { %v1029_v57 = vpop.xlane.xlu0 %1028  ;;  %v5301_v42 = vpop.eup %3994  ;;  %v1063_v53 = vsel %vm343_vm0, %v5298_v12, 0.0 }
 0x53c   :  { %v1039_v44 = vsub.f32 %v5171_v61, %v1029_v57  ;;  %1663 = vadd.xlane.f32.xlu1 %v1662_v39  ;;  %1660 = vadd.xlane.f32.xlu0 %v1659_v55  ;;  %4004 = vpow2.f32 %v1649_v40  ;;  %v1668_v13 = vsel %vm343_vm0, %v5301_v42, 0.0 }
 0x53d   :  { %4006 = vpow2.f32 %v1055_v10 }
 0x53e   :  { %v1053_v36 = vmul.f32 1.442695, %v1039_v44  ;;  %v5307_v56 = vpop.eup %3996 }
 0x53f   :  { %v5309_v61 = vpop.eup %3998  ;;  %v1665_v62 = vsel %vm343_vm0, %v5307_v56, 0.0 }
 0x540   :  { %1067 = vadd.xlane.f32.xlu1 %v1066_v38  ;;  %1064 = vadd.xlane.f32.xlu0 %v1063_v53  ;;  %4008 = vpow2.f32 %v1053_v36  ;;  %v1072_v16 = vsel %vm343_vm0, %v5309_v61, 0.0 }
 0x542   :  { %v5315_v22 = vpop.eup %4000 }
 0x543   :  { %v5317_v11 = vpop.eup %4002  ;;  %v1069_v23 = vsel %vm343_vm0, %v5315_v22, 0.0 }
 0x544   :  { %1669 = vadd.xlane.f32.xlu1 %v1668_v13  ;;  %1666 = vadd.xlane.f32.xlu0 %v1665_v62  ;;  %v1674_v41 = vsel %vm343_vm0, %v5317_v11, 0.0 }
 0x546   :  { %v5323_v31 = vpop.eup %4004 }
 0x547   :  { %v5325_v49 = vpop.eup %4006  ;;  %v1671_v37 = vsel %vm343_vm0, %v5323_v31, 0.0 }
 0x548   :  { %1073 = vadd.xlane.f32.xlu1 %v1072_v16  ;;  %1070 = vadd.xlane.f32.xlu0 %v1069_v23  ;;  %v1078_v50 = vsel %vm343_vm0, %v5325_v49, 0.0 }
 0x54a   :  { %v5331_v33 = vpop.eup %4008 }
 0x54b   :  { %v1075_v45 = vsel %vm343_vm0, %v5331_v33, 0.0 }
 0x54c   :  { %1675 = vadd.xlane.f32.xlu1 %v1674_v41  ;;  %1672 = vadd.xlane.f32.xlu0 %v1671_v37 }
 0x550   :  { %1079 = vadd.xlane.f32.xlu1 %v1078_v50  ;;  %1076 = vadd.xlane.f32.xlu0 %v1075_v45 }
 0x59d   :  { %v1357_v54 = vpop.xlane.xlu0 %1356 }
 0x59e   :  { %4010 = vrcp.f32 %v1357_v54 }
 0x5a1   :  { %v1360_v0 = vpop.xlane.xlu1 %1359  ;;  %v1949_v60 = vpop.xlane.xlu0 %1948 }
 0x5a2   :  { %4012 = vrcp.f32 %v1360_v0 }
 0x5a5   :  { %v1958_v24 = vpop.xlane.xlu1 %1957  ;;  %v1955_v46 = vpop.xlane.xlu0 %1954 }
 0x5a6   :  { %4014 = vrcp.f32 %v1958_v24 }
 0x5a7   :  { %4016 = vrcp.f32 %v1955_v46 }
 0x5a8   :  { %4018 = vrcp.f32 %v1949_v60  ;;  %v4011_v51 = vpop.eup %4010 }
 0x5a9   :  { %v1952_v7 = vpop.xlane.xlu1 %1951  ;;  %v1363_v47 = vpop.xlane.xlu0 %1362  ;;  %v1387_v40 = vmul.f32 %v4011_v51, %v5185_v1 }
 0x5aa   :  { %4020 = vrcp.f32 %v1952_v7 }
 0x5ab   :  { %4022 = vrcp.f32 %v1363_v47 }
 0x5ac   :  { %v4013_v17 = vpop.eup %4012 }
 0x5ad   :  { %v1366_v28 = vpop.xlane.xlu1 %1365  ;;  %v1388_v57 = vmul.f32 %v4013_v17, %v5193_v8 }
 0x5ae   :  { %4024 = vrcp.f32 %v1366_v28 }
 0x5af   :  { %v3791_v39 = vpack.i.bf16 %v1388_v57, %v1387_v40 }
 0x5b0   :  { %v4015_v55 = vpop.eup %4014 }
 0x5b1   :  { %v4017_v44 = vpop.eup %4016  ;;  %v1372_v10 = vpop.xlane.xlu1 %1371  ;;  %3792 = vrot.lane.b32.xlu1 %v3791_v39, %s5731_s2  ;;  %v1982_v38 = vmul.f32 %v4015_v55, %v5200_v29 }
 0x5b2   :  { %v1369_v36 = vpop.xlane.xlu0 %1368  ;;  %v4019_v53 = vpop.eup %4018  ;;  %4026 = vrcp.f32 %v1372_v10  ;;  %v1981_v13 = vmul.f32 %v4017_v44, %v5204_v43 }
 0x5b3   :  { %4028 = vrcp.f32 %v1369_v36  ;;  %v1979_v8 = vmul.f32 %v4019_v53, %v5190_v63 }
 0x5b4   :  { %v4021_v62 = vpop.eup %4020  ;;  %v3796_v16 = vpack.i.bf16 %v1982_v38, %v1981_v13 }
 0x5b5   :  { %v1970_v1 = vpop.xlane.xlu1 %1969  ;;  %v1980_v41 = vmul.f32 %v4021_v62, %v5210_v48  ;;  %v4023_v37 = vpop.eup %4022 }
 0x5b6   :  { %v1961_v23 = vpop.xlane.xlu0 %1960  ;;  %3797 = vrot.lane.b32.xlu1 %v3796_v16, %s5731_s2  ;;  %v1389_v43 = vmul.f32 %v4023_v37, %v5214_v2 }
 0x5b7   :  { %v3786_v50 = vpack.i.bf16 %v1980_v41, %v1979_v8  ;;  %4030 = vrcp.f32 %v1961_v23 }
 0x5b8   :  { %v4025_v45 = vpop.eup %4024 }
 0x5b9   :  { %v1964_v29 = vpop.xlane.xlu1 %1963  ;;  %3787 = vrot.lane.b32.xlu0 %v3786_v50, %s5731_s2  ;;  %v1390_v0 = vmul.f32 %v4025_v45, %v5220_v34 }
 0x5ba   :  { %v1967_v54 = vpop.xlane.xlu0 %1966  ;;  %4032 = vrcp.f32 %v1964_v29 }
 0x5bb   :  { %4034 = vrcp.f32 %v1967_v54  ;;  %v3801_v60 = vpack.i.bf16 %v1390_v0, %v1389_v43 }
 0x5bc   :  { %v4027_v63 = vpop.eup %4026  ;;  %4036 = vrcp.f32 %v1970_v1 }
 0x5bd   :  { %v4029_v48 = vpop.eup %4028  ;;  %v1378_v24 = vpop.xlane.xlu1 %1377  ;;  %3802 = vrot.lane.b32.xlu1 %v3801_v60, %s5731_s2  ;;  %v1392_v7 = vmul.f32 %v4027_v63, %v5226_v35 }
 0x5be   :  { %v1375_v46 = vpop.xlane.xlu0 %1374  ;;  %4038 = vrcp.f32 %v1378_v24  ;;  %v1391_v47 = vmul.f32 %v4029_v48, %v5230_v32 }
 0x5bf   :  { %4040 = vrcp.f32 %v1375_v46 }
 0x5c0   :  { %v3811_v51 = vpack.i.bf16 %v1392_v7, %v1391_v47 }
 0x5c1   :  { %v4031_v2 = vpop.eup %4030 }
 0x5c2   :  { %3812 = vrot.lane.b32.xlu1 %v3811_v51, %s5731_s2  ;;  %v1983_v28 = vmul.f32 %v4031_v2, %v5232_v58  ;;  %v1658_v58 = vpop.xlane.xlu1 %1657  ;;  %v1655_v13 = vpop.xlane.xlu0 %1654 }
 0x5c3   :  { %4042 = vrcp.f32 %v1658_v58 }
 0x5c4   :  { %v4033_v34 = vpop.eup %4032  ;;  %4044 = vrcp.f32 %v1655_v13 }
 0x5c5   :  { %v4035_v17 = vpop.eup %4034  ;;  %v1984_v40 = vmul.f32 %v4033_v34, %v5242_v19 }
 0x5c6   :  { %v4037_v57 = vpop.eup %4036  ;;  %v1985_v55 = vmul.f32 %v4035_v17, %v5248_v6  ;;  %v1062_v19 = vpop.xlane.xlu1 %1061 }
 0x5c7   :  { %v3806_v39 = vpack.i.bf16 %v1984_v40, %v1983_v28  ;;  %v1986_v32 = vmul.f32 %v4037_v57, %v5238_v4  ;;  %v1059_v62 = vpop.xlane.xlu0 %1058  ;;  %4046 = vrcp.f32 %v1062_v19 }
 0x5c8   :  { %v4039_v44 = vpop.eup %4038  ;;  %4048 = vrcp.f32 %v1059_v62 }
 0x5c9   :  { %v4041_v35 = vpop.eup %4040  ;;  %3807 = vrot.lane.b32.xlu0 %v3806_v39, %s5731_s2  ;;  %v1394_v10 = vmul.f32 %v4039_v44, %v5252_v27  ;;  %v3816_v38 = vpack.i.bf16 %v1986_v32, %v1985_v55 }
 0x5ca   :  { %v1393_v36 = vmul.f32 %v4041_v35, %v5258_v21  ;;  %v1664_v6 = vpop.xlane.xlu1 %1663 }
 0x5cb   :  { %v1661_v1 = vpop.xlane.xlu0 %1660  ;;  %4050 = vrcp.f32 %v1664_v6 }
 0x5cc   :  { %v3821_v53 = vpack.i.bf16 %v1394_v10, %v1393_v36  ;;  %4052 = vrcp.f32 %v1661_v1 }
 0x5cd   :  { %3817 = vrot.lane.b32.xlu0 %v3816_v38, %s5731_s2  ;;  %v4043_v29 = vpop.eup %4042 }
 0x5ce   :  { %3822 = vrot.lane.b32.xlu1 %v3821_v53, %s5731_s2  ;;  %v1068_v16 = vpop.xlane.xlu1 %1067  ;;  %v4045_v54 = vpop.eup %4044  ;;  %v1686_v34 = vmul.f32 %v4043_v29, %v5262_v26 }
 0x5cf   :  { %v1065_v8 = vpop.xlane.xlu0 %1064  ;;  %4054 = vrcp.f32 %v1068_v16  ;;  %v1685_v2 = vmul.f32 %v4045_v54, %v5268_v59 }
 0x5d0   :  { %4056 = vrcp.f32 %v1065_v8 }
 0x5d1   :  { %v4047_v43 = vpop.eup %4046 }
 0x5d2   :  { %v1670_v23 = vpop.xlane.xlu1 %1669  ;;  %v4049_v0 = vpop.eup %4048  ;;  %v1090_v17 = vmul.f32 %v4047_v43, %v5272_v52 }
 0x5d3   :  { %v1667_v41 = vpop.xlane.xlu0 %1666  ;;  %4058 = vrcp.f32 %v1670_v23  ;;  %v1089_v28 = vmul.f32 %v4049_v0, %v5278_v3 }
 0x5d5   :  { %v4051_v63 = vpop.eup %4050 }
 0x5d6   :  { %v1074_v4 = vpop.xlane.xlu1 %1073  ;;  %v4053_v24 = vpop.eup %4052  ;;  %v1688_v57 = vmul.f32 %v4051_v63, %v5282_v9 }
 0x5d7   :  { %v1071_v21 = vpop.xlane.xlu0 %1070  ;;  %4060 = vrcp.f32 %v1074_v4  ;;  %v1687_v44 = vmul.f32 %v4053_v24, %v5288_v30 }
 0x5d8   :  { %4062 = vrcp.f32 %v1071_v21 }
 0x5d9   :  { %v4055_v10 = vpop.eup %4054  ;;  %4064 = vrcp.f32 %v1667_v41 }
 0x5da   :  { %v1676_v27 = vpop.xlane.xlu1 %1675  ;;  %v4057_v38 = vpop.eup %4056  ;;  %v1092_v6 = vmul.f32 %v4055_v10, %v5292_v5 }
 0x5db   :  { %v1673_v50 = vpop.xlane.xlu0 %1672  ;;  %4066 = vrcp.f32 %v1676_v27  ;;  %v1091_v13 = vmul.f32 %v4057_v38, %v5298_v12 }
 0x5dc   :  { %4068 = vrcp.f32 %v1673_v50 }
 0x5dd   :  { %v4059_v62 = vpop.eup %4058 }
 0x5de   :  { %v1080_v37 = vpop.xlane.xlu1 %1079  ;;  %v1690_v0 = vmul.f32 %v4059_v62, %v5301_v42 }
 0x5df   :  { %v1077_v60 = vpop.xlane.xlu0 %1076  ;;  %4070 = vrcp.f32 %v1080_v37 }
 0x5e0   :  { %4072 = vrcp.f32 %v1077_v60 }
 0x5e1   :  { %v4061_v23 = vpop.eup %4060 }
 0x5e2   :  { %v4063_v4 = vpop.eup %4062  ;;  %v1094_v5 = vmul.f32 %v4061_v23, %v5309_v61 }
 0x5e3   :  { %v4065_v21 = vpop.eup %4064  ;;  %v1093_v12 = vmul.f32 %v4063_v4, %v5315_v22 }
 0x5e4   :  { %v1689_v43 = vmul.f32 %v4065_v21, %v5307_v56 }
 0x5e5   :  { %v4067_v29 = vpop.eup %4066 }
 0x5e6   :  { %v4069_v60 = vpop.eup %4068  ;;  %v1692_v61 = vmul.f32 %v4067_v29, %v5317_v11 }
 0x5e7   :  { %v1691_v42 = vmul.f32 %v4069_v60, %v5323_v31 }
 0x623   :  { %v3793_v45 = vpop.permute.xlu1 %3792 }
 0x624   :  { %v3795_v46 = vunpack.i.h.bf16 %v3793_v45  ;;  %v3794_v7 = vunpack.i.l.bf16 %v3793_v45 }
 0x626   :  { %v2153_v35 = vsel %vm343_vm0, %v1090_v17, %v3795_v46  ;;  %v2152_v59 = vsel %vm343_vm0, %v1089_v28, %v3794_v7  ;;  %v4071_v7 = vpop.eup %4070 }
 0x627   :  { %v2168_v53 = vpack.c.bf16 %v2153_v35, %v2152_v59  ;;  %v1096_v11 = vmul.f32 %v4071_v7, %v5325_v49  ;;  %v3874_v7 = vld [vmem:[%s5674_s13] ss:$8 sps:$4 sm:$0xff]  }
 0x628   :  { %v3798_v48 = vpop.permute.xlu1 %3797 }
 0x629   :  { %v3800_v47 = vunpack.i.h.bf16 %v3798_v48  ;;  %v3799_v51 = vunpack.i.l.bf16 %v3798_v48 }
 0x62b   :  { %v3788_v40 = vpop.permute.xlu0 %3787  ;;  %v2162_v52 = vsel %vm343_vm0, %v1687_v44, %v3799_v51  ;;  %v2163_v3 = vsel %vm343_vm0, %v1688_v57, %v3800_v47  ;;  %v4073_v51 = vpop.eup %4072 }
 0x62c   :  { %v3790_v39 = vunpack.i.h.bf16 %v3788_v40  ;;  %v3789_v55 = vunpack.i.l.bf16 %v3788_v40  ;;  %v2171_v19 = vpack.c.bf16 %v2163_v3, %v2162_v52  ;;  %v1095_v44 = vmul.f32 %v4073_v51, %v5331_v33 }
 0x62e   :  { %v2160_v26 = vsel %vm343_vm0, %v1685_v2, %v3789_v55  ;;  %v2161_v32 = vsel %vm343_vm0, %v1686_v34, %v3790_v39 }
 0x62f   :  { %v3803_v9 = vpop.permute.xlu1 %3802  ;;  %v2169_v36 = vpack.c.bf16 %v2161_v32, %v2160_v26  ;;  %v3261_v32 = vld [vmem:[%s5669_s8] ss:$0 sm:$0xff] }
 0x630   :  { %v3805_v30 = vunpack.i.h.bf16 %v3803_v9  ;;  %v3804_v58 = vunpack.i.l.bf16 %v3803_v9 }
 0x631   :  { %2231 = vmatprep.mubr.bf16.mxu1 %v2169_v36 }
 0x632   :  { %2232 = vmatmul.mubr.bf16.vlgmr.msra.gmra.mrb[56].mxu1 %v2168_v53  ;;  %v2154_v16 = vsel %vm343_vm0, %v1091_v13, %v3804_v58  ;;  %v2155_v1 = vsel %vm343_vm0, %v1092_v6, %v3805_v30 }
 0x633   :  { %2239 = vmatprep.mubr.bf16.mxu1 %v2171_v19  ;;  %v2170_v41 = vpack.c.bf16 %v2155_v1, %v2154_v16 }
 0x634   :  { %v3813_v8 = vpop.permute.xlu1 %3812 }
 0x635   :  { %v3815_v27 = vunpack.i.h.bf16 %v3813_v8  ;;  %v3814_v45 = vunpack.i.l.bf16 %v3813_v8 }
 0x637   :  { %v2156_v63 = vsel %vm343_vm0, %v1093_v12, %v3814_v45  ;;  %v2157_v48 = vsel %vm343_vm0, %v1094_v5, %v3815_v27  ;;  %v5749_v5 = vld [vmem:[#allocation23_spill] sm:$0xff] }
 0x638   :  { %v2172_v17 = vpack.c.bf16 %v2157_v48, %v2156_v63  ;;  %v5750_v48 = vld [vmem:[#allocation24_spill] sm:$0xff] }
 0x63a   :  { %2240 = vmatmul.mubr.bf16.gmra.mrb[60].mxu1 %v2170_v41 }
 0x63b   :  { %v3808_v50 = vpop.permute.xlu0 %3807 }
 0x63c   :  { %v3810_v37 = vunpack.i.h.bf16 %v3808_v50  ;;  %v3809_v54 = vunpack.i.l.bf16 %v3808_v50 }
 0x63e   :  { %v2164_v24 = vsel %vm343_vm0, %v1689_v43, %v3809_v54  ;;  %v2165_v46 = vsel %vm343_vm0, %v1690_v0, %v3810_v37 }
 0x63f   :  { %v3818_v22 = vpop.permute.xlu0 %3817  ;;  %v2173_v47 = vpack.c.bf16 %v2165_v46, %v2164_v24 }
 0x640   :  { %v3823_v2 = vpop.permute.xlu1 %3822  ;;  %v3820_v34 = vunpack.i.h.bf16 %v3818_v22  ;;  %v3819_v56 = vunpack.i.l.bf16 %v3818_v22  ;;  %v3876_v22 = vld [vmem:[%s5674_s13 + $0x4] ss:$8 sps:$4 sm:$0xff]  }
 0x641   :  { %v3825_v28 = vunpack.i.h.bf16 %v3823_v2  ;;  %v3824_v40 = vunpack.i.l.bf16 %v3823_v2  ;;  %2247 = vmatprep.mubr.bf16.mxu1 %v2173_v47  ;;  %v3879_v47 = vld [vmem:[%s5674_s13 + $0x14] ss:$8 sps:$4 sm:$0xff]   ;;  %2502 = vmatprep.subr.bf16.mxu0 %v3876_v22  ;;  %v3907_v22 = vld [vmem:[#allocation13 + $0x20] sm:$0xff]  }
 0x642   :  { %2248 = vmatmul.mubr.bf16.gmra.mrb[64].mxu1 %v2172_v17  ;;  %v2166_v57 = vsel %vm343_vm0, %v1691_v42, %v3819_v56  ;;  %v2167_v39 = vsel %vm343_vm0, %v1692_v61, %v3820_v34  ;;  %2503 = vmatpush1.bf16.msra.mxu0 %v3874_v7  ;;  %v3877_v61 = vld [vmem:[%s5674_s13 + $0x10] ss:$8 sps:$4 sm:$0xff]   ;;  %v3906_v7 = vld [vmem:[#allocation13 + $0x60] sm:$0xff]  }
 0x643   :  { %v2175_v55 = vpack.c.bf16 %v2167_v39, %v2166_v57  ;;  %v2158_v35 = vsel %vm343_vm0, %v1095_v44, %v3824_v40  ;;  %v2159_v59 = vsel %vm343_vm0, %v1096_v11, %v3825_v28  ;;  %2504 = vmatprep.subr.bf16.mxu0 %v3879_v47  ;;  %v3908_v47 = vld [vmem:[#allocation13 + $0x68] sm:$0xff]  }
 0x644   :  { %v2174_v26 = vpack.c.bf16 %v2159_v59, %v2158_v35 }
 0x645   :  { %2255 = vmatprep.mubr.bf16.mxu1 %v2175_v55 }
 0x646   :  { %2505 = vmatpush1.bf16.msra.mxu0 %v3877_v61 }
 0x64a   :  { %2256 = vmatmul.mubr.bf16.gmra.mrb[68].mxu1 %v2174_v26 }
 0x705   :  { %v3428_v31 = vpop.f32.mrb[56].mxu1 }
 0x706   :  { %v3429_v52 = vpop.f32.mrb[57].mxu1 }
 0x707   :  { %v3430_v3 = vadd.f32 %v3429_v52, %v3428_v31  ;;  %v3431_v10 = vpop.f32.mrb[58].mxu1 }
 0x708   :  { %v3432_v9 = vpop.f32.mrb[59].mxu1 }
 0x709   :  { %v2234_v36 = vadd.f32 %v3430_v3, %v3261_v32  ;;  %v3433_v33 = vadd.f32 %v3432_v9, %v3431_v10 }
 0x70b   :  { %v2237_v38 = vadd.f32 %v3433_v33, %v3261_v32  ;;  %v5397_v49 = vadd.f32 %v2234_v36, %v4673_v14  ;;  %v3882_v33 = vld [vmem:[%s5674_s13 + $0x24] ss:$8 sps:$4 sm:$0xff]  }
 0x70c   :  { %2506 = vmatprep.subr.bf16.mxu0 %v3882_v33 }
 0x70d   :  { %v3434_v53 = vpop.f32.mrb[60].mxu1  ;;  %2274 = vadd.xlane.f32.xlu0 %v5397_v49  ;;  %v5401_v30 = vadd.f32 %v2237_v38, %v4675_v15  ;;  %v3880_v38 = vld [vmem:[%s5674_s13 + $0x20] ss:$8 sps:$4 sm:$0xff]  }
 0x70e   :  { %v3435_v58 = vpop.f32.mrb[61].mxu1  ;;  %2507 = vmatpush1.bf16.msra.mxu0 %v3880_v38 }
 0x70f   :  { %v3436_v19 = vadd.f32 %v3435_v58, %v3434_v53  ;;  %v3437_v13 = vpop.f32.mrb[62].mxu1  ;;  %2276 = vadd.xlane.f32.xlu1 %v5401_v30 }
 0x710   :  { %v3438_v6 = vpop.f32.mrb[63].mxu1 }
 0x711   :  { %v2242_v62 = vadd.f32 %v3436_v19, %v3261_v32  ;;  %v3439_v16 = vadd.f32 %v3438_v6, %v3437_v13  ;;  %v3885_v13 = vld [vmem:[%s5674_s13 + $0x34] ss:$8 sps:$4 sm:$0xff]  }
 0x712   :  { %2508 = vmatprep.subr.bf16.mxu0 %v3885_v13  ;;  %v3263_v13 = vld [vmem:[%s5673_s12] ss:$0 sm:$0xff] }
 0x713   :  { %v2245_v1 = vadd.f32 %v3439_v16, %v3261_v32  ;;  %v5405_v23 = vadd.f32 %v2242_v62, %v4680_v18  ;;  %v3883_v62 = vld [vmem:[%s5674_s13 + $0x30] ss:$8 sps:$4 sm:$0xff]  }
 0x714   :  { %2509 = vmatpush1.bf16.msra.mxu0 %v3883_v62 }
 0x715   :  { %v3440_v14 = vpop.f32.mrb[64].mxu1  ;;  %2278 = vadd.xlane.f32.xlu0 %v5405_v23  ;;  %v5409_v15 = vadd.f32 %v2245_v1, %v4682_v20 }
 0x716   :  { %v3441_v8 = vpop.f32.mrb[65].mxu1 }
 0x717   :  { %v3442_v4 = vadd.f32 %v3441_v8, %v3440_v14  ;;  %v3443_v41 = vpop.f32.mrb[66].mxu1 }
 0x718   :  { %v3444_v21 = vpop.f32.mrb[67].mxu1 }
 0x719   :  { %v2250_v27 = vadd.f32 %v3442_v4, %v3261_v32  ;;  %v3445_v45 = vadd.f32 %v3444_v21, %v3443_v41  ;;  %2280 = vadd.xlane.f32.xlu0 %v5409_v15  ;;  %v3888_v4 = vld [vmem:[%s5674_s13 + $0x44] ss:$8 sps:$4 sm:$0xff]   ;;  %v3886_v41 = vld [vmem:[%s5674_s13 + $0x40] ss:$8 sps:$4 sm:$0xff]  }
 0x71a   :  { %2510 = vmatprep.subr.bf16.mxu0 %v3888_v4 }
 0x71b   :  { %v2253_v50 = vadd.f32 %v3445_v45, %v3261_v32  ;;  %v5413_v12 = vadd.f32 %v2250_v27, %v4689_v25  ;;  %v5751_v25 = vld [vmem:[#allocation25_spill] sm:$0xff]  ;;  %2511 = vmatpush1.bf16.msra.mxu0 %v3886_v41 }
 0x71c   :  { %v3891_v27 = vld [vmem:[%s5674_s13 + $0x54] ss:$8 sps:$4 sm:$0xff]   ;;  %v3889_v45 = vld [vmem:[%s5674_s13 + $0x50] ss:$8 sps:$4 sm:$0xff]  }
 0x71d   :  { %v3446_v18 = vpop.f32.mrb[68].mxu1  ;;  %2282 = vadd.xlane.f32.xlu0 %v5413_v12  ;;  %v5417_v29 = vadd.f32 %v2253_v50, %v5749_v5  ;;  %2512 = vmatprep.subr.bf16.mxu0 %v3891_v27  ;;  %v3894_v50 = vld [vmem:[%s5674_s13 + $0x64] ss:$8 sps:$4 sm:$0xff]   ;;  %v3897_v5 = vld [vmem:[%s5674_s13 + $0x74] ss:$8 sps:$4 sm:$0xff]  }
 0x71e   :  { %v3447_v37 = vpop.f32.mrb[69].mxu1 }
 0x71f   :  { %v3448_v54 = vadd.f32 %v3447_v37, %v3446_v18  ;;  %v3449_v43 = vpop.f32.mrb[70].mxu1  ;;  %2284 = vadd.xlane.f32.xlu1 %v5417_v29  ;;  %2513 = vmatpush1.bf16.msra.mxu0 %v3889_v45  ;;  %v3892_v18 = vld [vmem:[%s5674_s13 + $0x60] ss:$8 sps:$4 sm:$0xff]   ;;  %v3895_v37 = vld [vmem:[%s5674_s13 + $0x70] ss:$8 sps:$4 sm:$0xff]  }
 0x720   :  { %v3450_v20 = vpop.f32.mrb[71].mxu1  ;;  %2514 = vmatprep.subr.bf16.mxu0 %v3894_v50 }
 0x721   :  { %v2258_v0 = vadd.f32 %v3448_v54, %v3261_v32  ;;  %v3451_v60 = vadd.f32 %v3450_v20, %v3449_v43  ;;  %v3898_v54 = vld [vmem:[#allocation13 + $0x40] sm:$0xff]   ;;  %v3900_v20 = vld [vmem:[#allocation13 + $0x48] sm:$0xff]  }
 0x722   :  { %v3899_v43 = vld [vmem:[#allocation13] sm:$0xff]   ;;  %3452 = vmatprep.subr.bf16.mxu1 %v3898_v54 }
 0x723   :  { %v2261_v63 = vadd.f32 %v3451_v60, %v3261_v32  ;;  %v5421_v24 = vadd.f32 %v2258_v0, %v5750_v48  ;;  %2515 = vmatpush1.bf16.msra.mxu0 %v3892_v18  ;;  %3453 = vmatpush3.bf16.msra.mxu1 %v3899_v43  ;;  %v3901_v0 = vld [vmem:[#allocation13 + $0x8] sm:$0xff]   ;;  %v3902_v60 = vld [vmem:[#allocation13 + $0x50] sm:$0xff]   ;;  %v3904_v48 = vld [vmem:[#allocation13 + $0x58] sm:$0xff]  }
 0x724   :  { %2516 = vmatprep.subr.bf16.mxu0 %v3897_v5  ;;  %3454 = vmatprep.subr.bf16.mxu1 %v3900_v20  ;;  %v5752_v5 = vmov 0  }
 0x725   :  { %2286 = vadd.xlane.f32.xlu0 %v5421_v24  ;;  %v5425_v46 = vadd.f32 %v2261_v63, %v5751_v25  ;;  %v3903_v63 = vld [vmem:[#allocation13 + $0x10] sm:$0xff]   ;;  %v3905_v25 = vld [vmem:[#allocation13 + $0x18] sm:$0xff]  }
 0x727   :  { %2288 = vadd.xlane.f32.xlu1 %v5425_v46  ;;  %2517 = vmatpush1.bf16.msra.mxu0 %v3895_v37 }
 0x728   :  { %3455 = vmatpush3.bf16.msra.mxu1 %v3901_v0 }
 0x729   :  { %3456 = vmatprep.subr.bf16.mxu1 %v3902_v60 }
 0x72c   :  { %3457 = vmatpush3.bf16.msra.mxu1 %v3903_v63 }
 0x72d   :  { %3458 = vmatprep.subr.bf16.mxu1 %v3904_v48 }
 0x730   :  { %3459 = vmatpush3.bf16.msra.mxu1 %v3905_v25 }
 0x731   :  { %3460 = vmatprep.subr.bf16.mxu1 %v3906_v7 }
 0x734   :  { %3461 = vmatpush3.bf16.msra.mxu1 %v3907_v22 }
 0x735   :  { %3462 = vmatprep.subr.bf16.mxu1 %v3908_v47 }
 0x79a   :  { %v2275_v51 = vpop.xlane.xlu0 %2274 }
 0x79b   :  { %v2290_v2 = vmul.f32 0.0078125, %v2275_v51 }
 0x79c   :  { %v2277_v34 = vpop.xlane.xlu1 %2276 }
 0x79d   :  { %v5441_v56 = vsub.f32 %v5397_v49, %v2290_v2  ;;  %v2291_v17 = vmul.f32 0.0078125, %v2277_v34 }
 0x79f   :  { %v5444_v42 = vsub.f32 %v5401_v30, %v2291_v17  ;;  %v2306_v28 = vmul.f32 %v5441_v56, %v5441_v56 }
 0x7a1   :  { %2314 = vadd.xlane.f32.xlu0 %v2306_v28  ;;  %v2307_v40 = vmul.f32 %v5444_v42, %v5444_v42 }
 0x7a2   :  { %v2279_v57 = vpop.xlane.xlu0 %2278 }
 0x7a3   :  { %v2292_v39 = vmul.f32 0.0078125, %v2279_v57  ;;  %2316 = vadd.xlane.f32.xlu1 %v2307_v40 }
 0x7a5   :  { %v5451_v55 = vsub.f32 %v5405_v23, %v2292_v39 }
 0x7a6   :  { %v2281_v44 = vpop.xlane.xlu0 %2280 }
 0x7a7   :  { %v2293_v11 = vmul.f32 0.0078125, %v2281_v44  ;;  %v2308_v35 = vmul.f32 %v5451_v55, %v5451_v55 }
 0x7a9   :  { %v5456_v59 = vsub.f32 %v5409_v15, %v2293_v11  ;;  %2318 = vadd.xlane.f32.xlu0 %v2308_v35 }
 0x7aa   :  { %v2283_v26 = vpop.xlane.xlu0 %2282 }
 0x7ab   :  { %v2294_v31 = vmul.f32 0.0078125, %v2283_v26  ;;  %v2309_v32 = vmul.f32 %v5456_v59, %v5456_v59  ;;  %v3262_v26 = vld [vmem:[%s5672_s11] ss:$0 sm:$0xff] }
 0x7ac   :  { %v2285_v52 = vpop.xlane.xlu1 %2284 }
 0x7ad   :  { %v5461_v3 = vsub.f32 %v5413_v12, %v2294_v31  ;;  %v2295_v10 = vmul.f32 0.0078125, %v2285_v52  ;;  %2320 = vadd.xlane.f32.xlu1 %v2309_v32 }
 0x7af   :  { %v5464_v9 = vsub.f32 %v5417_v29, %v2295_v10  ;;  %v2310_v36 = vmul.f32 %v5461_v3, %v5461_v3 }
 0x7b1   :  { %2322 = vadd.xlane.f32.xlu0 %v2310_v36  ;;  %v2311_v53 = vmul.f32 %v5464_v9, %v5464_v9 }
 0x7b2   :  { %v2287_v58 = vpop.xlane.xlu0 %2286 }
 0x7b3   :  { %v2296_v19 = vmul.f32 0.0078125, %v2287_v58  ;;  %2324 = vadd.xlane.f32.xlu1 %v2311_v53 }
 0x7b4   :  { %v2289_v6 = vpop.xlane.xlu1 %2288 }
 0x7b5   :  { %v5483_v16 = vsub.f32 %v5421_v24, %v2296_v19  ;;  %v2297_v1 = vmul.f32 0.0078125, %v2289_v6 }
 0x7b7   :  { %v5486_v14 = vsub.f32 %v5425_v46, %v2297_v1  ;;  %v2312_v8 = vmul.f32 %v5483_v16, %v5483_v16 }
 0x7b9   :  { %2326 = vadd.xlane.f32.xlu0 %v2312_v8  ;;  %v2313_v21 = vmul.f32 %v5486_v14, %v5486_v14 }
 0x7bb   :  { %2328 = vadd.xlane.f32.xlu1 %v2313_v21 }
 0x82e   :  { %v2315_v61 = vpop.xlane.xlu0 %2314 }
 0x82f   :  { %v2330_v51 = vmul.f32 0.0078125, %v2315_v61 }
 0x830   :  { %v2317_v2 = vpop.xlane.xlu1 %2316 }
 0x831   :  { %v2338_v34 = vadd.f32 1e-05, %v2330_v51  ;;  %v2331_v17 = vmul.f32 0.0078125, %v2317_v2 }
 0x833   :  { %4074 = vrsqrt.f32 %v2338_v34  ;;  %v2339_v28 = vadd.f32 1e-05, %v2331_v17 }
 0x835   :  { %4076 = vrsqrt.f32 %v2339_v28 }
 0x836   :  { %v2319_v40 = vpop.xlane.xlu0 %2318 }
 0x837   :  { %v2332_v57 = vmul.f32 0.0078125, %v2319_v40 }
 0x839   :  { %v2340_v39 = vadd.f32 1e-05, %v2332_v57 }
 0x83a   :  { %v2321_v44 = vpop.xlane.xlu1 %2320 }
 0x83b   :  { %4078 = vrsqrt.f32 %v2340_v39  ;;  %v2333_v11 = vmul.f32 0.0078125, %v2321_v44  ;;  %v3909_v44 = vld [vmem:[#allocation13 + $0x28] sm:$0xff]  }
 0x83c   :  { %3463 = vmatpush3.bf16.msra.mxu1 %v3909_v44 }
 0x83d   :  { %v4075_v35 = vpop.eup %4074  ;;  %v2341_v31 = vadd.f32 1e-05, %v2333_v11  ;;  %v3910_v11 = vld [vmem:[#allocation13 + $0x70] sm:$0xff]  }
 0x83e   :  { %v2354_v32 = vmul.f32 %v4075_v35, %v5441_v56  ;;  %v2323_v52 = vpop.xlane.xlu0 %2322  ;;  %v3911_v35 = vld [vmem:[#allocation13 + $0x30] sm:$0xff]   ;;  %3464 = vmatprep.subr.bf16.mxu1 %v3910_v11 }
 0x83f   :  { %v4077_v10 = vpop.eup %4076  ;;  %4080 = vrsqrt.f32 %v2341_v31  ;;  %v2334_v36 = vmul.f32 0.0078125, %v2323_v52  ;;  %v3913_v31 = vld [vmem:[#allocation13 + $0x38] sm:$0xff]   ;;  %v3916_v52 = vld [vmem:[#allocation14 + $0x48] sm:$0xff]  }
 0x840   :  { %v2368_v33 = vmul.f32 %v3262_v26, %v2354_v32  ;;  %v2355_v38 = vmul.f32 %v4077_v10, %v5444_v42  ;;  %v2325_v53 = vpop.xlane.xlu1 %2324  ;;  %3465 = vmatpush3.bf16.msra.mxu1 %v3911_v35  ;;  %v3915_v32 = vld [vmem:[#allocation14] sm:$0xff]   ;;  %v3918_v10 = vld [vmem:[#allocation14 + $0x50] sm:$0xff]  }
 0x841   :  { %v2342_v58 = vadd.f32 1e-05, %v2334_v36  ;;  %v2335_v19 = vmul.f32 0.0078125, %v2325_v53  ;;  %v3919_v36 = vld [vmem:[#allocation14 + $0x10] sm:$0xff]   ;;  %v3922_v53 = vld [vmem:[#allocation14 + $0x60] sm:$0xff]  }
 0x842   :  { %v2369_v6 = vmul.f32 %v3262_v26, %v2355_v38  ;;  %v2382_v1 = vadd.f32 %v3263_v13, %v2368_v33  ;;  %v3920_v33 = vld [vmem:[#allocation14 + $0x58] sm:$0xff]  }
 0x843   :  { %4082 = vrsqrt.f32 %v2342_v58  ;;  %v2343_v62 = vadd.f32 1e-05, %v2335_v19  ;;  %v3921_v38 = vld [vmem:[#allocation14 + $0x18] sm:$0xff]   ;;  %v5533_v58 = vld [vmem:[#allocation14 + $0x20] sm:$0xff]  }
 0x844   :  { %v2383_v8 = vadd.f32 %v3263_v13, %v2369_v6  ;;  %v2410_v19 = vld [vmem:[%s5675_s14] sm:$0x3] }
 0x845   :  { %v4079_v56 = vpop.eup %4078  ;;  %4084 = vrsqrt.f32 %v2343_v62 }
 0x846   :  { %v2327_v4 = vpop.xlane.xlu0 %2326  ;;  %v2406_v41 = vpack.c.bf16 %v2383_v8, %v2382_v1  ;;  %v2356_v21 = vmul.f32 %v4079_v56, %v5451_v55 }
 0x847   :  { %v2336_v27 = vmul.f32 0.0078125, %v2327_v4 }
 0x848   :  { %v2329_v42 = vpop.xlane.xlu1 %2328  ;;  %2535 = vmatmul.mubr.bf16.vlgmr.msra.gmra.mrb[48].mxu0 %v2406_v41  ;;  %v2370_v54 = vmul.f32 %v3262_v26, %v2356_v21 }
 0x849   :  { %v4081_v45 = vpop.eup %4080  ;;  %v2344_v50 = vadd.f32 1e-05, %v2336_v27  ;;  %v2337_v18 = vmul.f32 0.0078125, %v2329_v42  ;;  %2544 = vmatprep.mubr.bf16.mxu0 %v5752_v5 }
 0x84a   :  { %v2357_v37 = vmul.f32 %v4081_v45, %v5456_v59  ;;  %v2384_v60 = vadd.f32 %v3263_v13, %v2370_v54 }
 0x84b   :  { %4086 = vrsqrt.f32 %v2344_v50  ;;  %v2345_v43 = vadd.f32 1e-05, %v2337_v18 }
 0x84c   :  { %v2371_v20 = vmul.f32 %v3262_v26, %v2357_v37 }
 0x84d   :  { %v4083_v0 = vpop.eup %4082  ;;  %4088 = vrsqrt.f32 %v2345_v43 }
 0x84e   :  { %v2385_v63 = vadd.f32 %v3263_v13, %v2371_v20  ;;  %v2358_v55 = vmul.f32 %v4083_v0, %v5461_v3 }
 0x84f   :  { %v4085_v48 = vpop.eup %4084 }
 0x850   :  { %v2407_v25 = vpack.c.bf16 %v2385_v63, %v2384_v60  ;;  %v2359_v7 = vmul.f32 %v4085_v48, %v5464_v9  ;;  %v2372_v22 = vmul.f32 %v3262_v26, %v2358_v55 }
 0x852   :  { %2545 = vmatmul.mubr.bf16.gmra.mrb[52].mxu0 %v2407_v25  ;;  %v2373_v47 = vmul.f32 %v3262_v26, %v2359_v7  ;;  %v2386_v51 = vadd.f32 %v3263_v13, %v2372_v22 }
 0x853   :  { %2554 = vmatprep.mubr.bf16.mxu0 %v5752_v5 }
 0x854   :  { %v2387_v59 = vadd.f32 %v3263_v13, %v2373_v47 }
 0x855   :  { %v4087_v61 = vpop.eup %4086 }
 0x856   :  { %v2360_v2 = vmul.f32 %v4087_v61, %v5483_v16  ;;  %v2408_v17 = vpack.c.bf16 %v2387_v59, %v2386_v51  ;;  %v3912_v16 = vld [vmem:[#allocation13 + $0x78] sm:$0xff]  }
 0x857   :  { %v4089_v34 = vpop.eup %4088  ;;  %3466 = vmatprep.subr.bf16.mxu1 %v3912_v16 }
 0x858   :  { %v2361_v28 = vmul.f32 %v4089_v34, %v5486_v14  ;;  %v2374_v3 = vmul.f32 %v3262_v26, %v2360_v2  ;;  %3467 = vmatpush3.bf16.msra.mxu1 %v3913_v31  ;;  %v3914_v14 = vld [vmem:[#allocation14 + $0x40] sm:$0xff]  }
 0x859   :  { %3492 = vmatprep.subr.bf16.mxu0 %v3914_v14  ;;  %3736 = vmatprep.subr.bf16.mxu1 %v3914_v14 }
 0x85a   :  { %2555 = vmatmul.mubr.bf16.gmra.mrb[56].mxu0 %v2408_v17  ;;  %v2375_v40 = vmul.f32 %v3262_v26, %v2361_v28  ;;  %v2388_v57 = vadd.f32 %v3263_v13, %v2374_v3  ;;  %v3917_v26 = vld [vmem:[#allocation14 + $0x8] sm:$0xff]  }
 0x85b   :  { %2564 = vmatprep.mubr.bf16.mxu0 %v5752_v5  ;;  %3493 = vmatpush3.bf16.msra.mxu0 %v3915_v32 }
 0x85c   :  { %v2389_v9 = vadd.f32 %v3263_v13, %v2375_v40  ;;  %3494 = vmatprep.subr.bf16.mxu0 %v3916_v52  ;;  %v5753_v13 = vld [vmem:[#allocation34_spill] sm:$0xff] }
 0x85d   :  { %v5754_v6 = vsub.s32 0, %v5753_v13  ;;  %v5755_v1 = vsub.s32 1, %v5753_v13 }
 0x85e   :  { %v2409_v39 = vpack.c.bf16 %v2389_v9, %v2388_v57 }
 0x85f   :  { %3495 = vmatpush3.bf16.msra.mxu0 %v3917_v26  ;;  %v5541_v62 = vrot.slane %v2410_v19, %v5754_v6  ;;  %v5545_v8 = vrot.slane %v2410_v19, %v5755_v1 }
 0x860   :  { %3496 = vmatprep.subr.bf16.mxu0 %v3918_v10 }
 0x862   :  { %2565 = vmatmul.mubr.bf16.gmra.mrb[60].mxu0 %v2409_v39 }
 0x863   :  { %3497 = vmatpush3.bf16.msra.mxu0 %v3919_v36 }
 0x864   :  { %3498 = vmatprep.subr.bf16.mxu0 %v3920_v33 }
 0x867   :  { %3499 = vmatpush3.bf16.msra.mxu0 %v3921_v38 }
 0x868   :  { %3500 = vmatprep.subr.bf16.mxu0 %v3922_v53 }
 0x86b   :  { %3501 = vmatpush3.bf16.msra.mxu0 %v5533_v58 }
 0x91b   :  { %v2536_v56 = vpop.f32.mrb[48].mxu0 }
 0x91c   :  { %v2537_v4 = vadd.f32 %v2536_v56, %v5541_v62  ;;  %v2538_v41 = vpop.f32.mrb[49].mxu0 }
 0x91d   :  { %v2539_v21 = vadd.f32 %v2538_v41, %v5545_v8  ;;  %v2540_v27 = vpop.f32.mrb[50].mxu0 }
 0x91e   :  { %v2541_v42 = vadd.f32 %v2540_v27, %v5541_v62  ;;  %v2542_v45 = vpop.f32.mrb[51].mxu0  ;;  %v2575_v18 = vmax.f32 %v2537_v4, 0.0  ;;  %v3925_v27 = vld [vmem:[#allocation14 + $0x28] sm:$0xff]  }
 0x91f   :  { %v2543_v50 = vadd.f32 %v2542_v45, %v5545_v8  ;;  %v2576_v37 = vmax.f32 %v2539_v21, 0.0  ;;  %v3924_v21 = vld [vmem:[#allocation14 + $0x68] sm:$0xff]  }
 0x920   :  { %v2577_v5 = vmax.f32 %v2541_v42, 0.0  ;;  %3502 = vmatprep.subr.bf16.mxu0 %v3924_v21  ;;  %v3929_v42 = vld [vmem:[#allocation14 + $0x38] sm:$0xff]  }
 0x921   :  { %v2578_v54 = vmax.f32 %v2543_v50, 0.0  ;;  %3503 = vmatpush3.bf16.msra.mxu0 %v3925_v27 }
 0x922   :  { %v2623_v43 = vpack.c.bf16 %v2577_v5, %v2575_v18 }
 0x923   :  { %v2624_v20 = vpack.c.bf16 %v2578_v54, %v2576_v37 }
 0x925   :  { %v2546_v0 = vpop.f32.mrb[52].mxu0  ;;  %2759 = vmatprep.mubr.bf16.mxu1 %v2624_v20  ;;  %v3296_v20 = vld [vmem:[%s5677_s16] ss:$0 sm:$0xff] }
 0x926   :  { %v2547_v60 = vadd.f32 %v2546_v0, %v5541_v62  ;;  %v2548_v63 = vpop.f32.mrb[53].mxu0  ;;  %2760 = vmatmul.mubr.bf16.vlgmr.msra.gmra.mrb[72].mxu1 %v2623_v43 }
 0x927   :  { %v2549_v55 = vadd.f32 %v2548_v63, %v5545_v8  ;;  %v2550_v48 = vpop.f32.mrb[54].mxu0  ;;  %3744 = vmatpush3.bf16.msra.mxu1 %v3915_v32 }
 0x928   :  { %v2551_v25 = vadd.f32 %v2550_v48, %v5541_v62  ;;  %v2552_v7 = vpop.f32.mrb[55].mxu0  ;;  %3737 = vmatprep.subr.bf16.mxu1 %v3916_v52  ;;  %v2579_v47 = vmax.f32 %v2547_v60, 0.0 }
 0x929   :  { %v2553_v22 = vadd.f32 %v2552_v7, %v5545_v8  ;;  %v2580_v61 = vmax.f32 %v2549_v55, 0.0 }
 0x92a   :  { %v2581_v59 = vmax.f32 %v2551_v25, 0.0 }
 0x92b   :  { %v2582_v51 = vmax.f32 %v2553_v22, 0.0  ;;  %3745 = vmatpush3.bf16.msra.mxu1 %v3917_v26 }
 0x92c   :  { %v2625_v2 = vpack.c.bf16 %v2581_v59, %v2579_v47  ;;  %3738 = vmatprep.subr.bf16.mxu1 %v3918_v10  ;;  %v5756_v59 = vld [vmem:[#allocation26_spill] sm:$0xff] }
 0x92d   :  { %v2626_v34 = vpack.c.bf16 %v2582_v51, %v2580_v61  ;;  %v2556_v17 = vpop.f32.mrb[56].mxu0  ;;  %v5757_v61 = vld [vmem:[#allocation27_spill] sm:$0xff] }
 0x92e   :  { %v2557_v28 = vadd.f32 %v2556_v17, %v5541_v62  ;;  %v2558_v3 = vpop.f32.mrb[57].mxu0  ;;  %v5758_v51 = vpack.c.bf16 %v5756_v59, %v5757_v61 }
 0x92f   :  { %v2559_v40 = vadd.f32 %v2558_v3, %v5545_v8  ;;  %v2560_v9 = vpop.f32.mrb[58].mxu0  ;;  %2767 = vmatprep.mubr.bf16.mxu1 %v2626_v34  ;;  %3746 = vmatpush3.bf16.msra.mxu1 %v3919_v36 }
 0x930   :  { %v2561_v57 = vadd.f32 %v2560_v9, %v5541_v62  ;;  %v2562_v39 = vpop.f32.mrb[59].mxu0  ;;  %2768 = vmatmul.mubr.bf16.gmra.mrb[76].mxu1 %v2625_v2  ;;  %3739 = vmatprep.subr.bf16.mxu1 %v3920_v33  ;;  %v2583_v11 = vmax.f32 %v2557_v28, 0.0 }
 0x931   :  { %v2563_v44 = vadd.f32 %v2562_v39, %v5545_v8  ;;  %v2584_v16 = vmax.f32 %v2559_v40, 0.0 }
 0x932   :  { %v2585_v35 = vmax.f32 %v2561_v57, 0.0 }
 0x933   :  { %v2586_v31 = vmax.f32 %v2563_v44, 0.0  ;;  %3747 = vmatpush3.bf16.msra.mxu1 %v3921_v38 }
 0x934   :  { %v2627_v14 = vpack.c.bf16 %v2585_v35, %v2583_v11  ;;  %3740 = vmatprep.subr.bf16.mxu1 %v3922_v53  ;;  %v5759_v35 = vld [vmem:[#allocation28_spill] sm:$0xff] }
 0x935   :  { %v2628_v32 = vpack.c.bf16 %v2586_v31, %v2584_v16  ;;  %v2566_v52 = vpop.f32.mrb[60].mxu0  ;;  %v5760_v16 = vld [vmem:[#allocation29_spill] sm:$0xff] }
 0x936   :  { %v2567_v26 = vadd.f32 %v2566_v52, %v5541_v62  ;;  %v2568_v10 = vpop.f32.mrb[61].mxu0  ;;  %v5761_v31 = vpack.c.bf16 %v5759_v35, %v5760_v16 }
 0x937   :  { %v2569_v36 = vadd.f32 %v2568_v10, %v5545_v8  ;;  %v2570_v19 = vpop.f32.mrb[62].mxu0  ;;  %2775 = vmatprep.mubr.bf16.mxu1 %v2628_v32  ;;  %3748 = vmatpush3.bf16.msra.mxu1 %v5533_v58  ;;  %v3926_v58 = vld [vmem:[#allocation14 + $0x70] sm:$0xff]  }
 0x938   :  { %v2571_v33 = vadd.f32 %v2570_v19, %v5541_v62  ;;  %v2572_v13 = vpop.f32.mrb[63].mxu0  ;;  %2776 = vmatmul.mubr.bf16.gmra.mrb[80].mxu1 %v2627_v14  ;;  %v2587_v38 = vmax.f32 %v2567_v26, 0.0  ;;  %3741 = vmatprep.subr.bf16.mxu1 %v3924_v21  ;;  %v3927_v62 = vld [vmem:[#allocation14 + $0x30] sm:$0xff]  }
 0x939   :  { %v2573_v6 = vadd.f32 %v2572_v13, %v5545_v8  ;;  %v2588_v53 = vmax.f32 %v2569_v36, 0.0  ;;  %3504 = vmatprep.subr.bf16.mxu0 %v3926_v58  ;;  %v3928_v8 = vld [vmem:[#allocation14 + $0x78] sm:$0xff]  }
 0x93a   :  { %v2589_v1 = vmax.f32 %v2571_v33, 0.0  ;;  %3505 = vmatpush3.bf16.msra.mxu0 %v3927_v62 }
 0x93b   :  { %v2590_v56 = vmax.f32 %v2573_v6, 0.0  ;;  %3749 = vmatpush3.bf16.msra.mxu1 %v3925_v27  ;;  %3506 = vmatprep.subr.bf16.mxu0 %v3928_v8  ;;  %v5763_v6 = vld [vmem:[#allocation31_spill] sm:$0xff] }
 0x93c   :  { %v2629_v4 = vpack.c.bf16 %v2589_v1, %v2587_v38  ;;  %3742 = vmatprep.subr.bf16.mxu1 %v3926_v58 }
 0x93d   :  { %v2630_v41 = vpack.c.bf16 %v2590_v56, %v2588_v53 }
 0x93e   :  { %3507 = vmatpush3.bf16.msra.mxu0 %v3929_v42 }
 0x93f   :  { %2783 = vmatprep.mubr.bf16.mxu1 %v2630_v41  ;;  %3750 = vmatpush3.bf16.msra.mxu1 %v3927_v62  ;;  %v5766_v41 = vld [vmem:[#allocation33_spill] sm:$0xff] }
 0x940   :  { %2784 = vmatmul.mubr.bf16.gmra.mrb[84].mxu1 %v2629_v4  ;;  %3743 = vmatprep.subr.bf16.mxu1 %v3928_v8  ;;  %v5765_v4 = vld [vmem:[#allocation32_spill] sm:$0xff] }
 0x941   :  { %v5767_v21 = vpack.c.bf16 %v5765_v4, %v5766_v41 }
 0x943   :  { %3751 = vmatpush3.bf16.msra.mxu1 %v3929_v42 }
 0x9f9   :  { %v3468_v45 = vpop.f32.mrb[72].mxu1 }
 0x9fa   :  { %v3469_v50 = vpop.f32.mrb[73].mxu1 }
 0x9fb   :  { %v3470_v18 = vadd.f32 %v3469_v50, %v3468_v45  ;;  %v3471_v5 = vpop.f32.mrb[74].mxu1 }
 0x9fc   :  { %v3472_v37 = vpop.f32.mrb[75].mxu1 }
 0x9fd   :  { %v2792_v54 = vadd.f32 %v3470_v18, %v5397_v49  ;;  %v3473_v43 = vadd.f32 %v3472_v37, %v3471_v5 }
 0x9ff   :  { %v2793_v0 = vadd.f32 %v3473_v43, %v5401_v30  ;;  %v2807_v60 = vadd.f32 %v3296_v20, %v2792_v54 }
 0xa01   :  { %v2808_v63 = vadd.f32 %v3296_v20, %v2793_v0 }
 0xa03   :  { %v3474_v55 = vpop.f32.mrb[76].mxu1  ;;  %v2848_v48 = vpack.c.bf16 %v2808_v63, %v2807_v60 }
 0xa04   :  { %v3475_v25 = vpop.f32.mrb[77].mxu1 }
 0xa05   :  { %v3476_v7 = vadd.f32 %v3475_v25, %v3474_v55  ;;  %v3477_v22 = vpop.f32.mrb[78].mxu1  ;;  %2990 = vmatprep.mubr.bf16.mxu0 %v2848_v48 }
 0xa06   :  { %v3478_v47 = vpop.f32.mrb[79].mxu1  ;;  %2991 = vmatmul.mubr.bf16.vlgmr.msra.gmra.mrb[64].mxu0 %v5758_v51 }
 0xa07   :  { %v2794_v49 = vadd.f32 %v3476_v7, %v5405_v23  ;;  %v3479_v2 = vadd.f32 %v3478_v47, %v3477_v22 }
 0xa09   :  { %v2795_v34 = vadd.f32 %v3479_v2, %v5409_v15  ;;  %v2809_v17 = vadd.f32 %v3296_v20, %v2794_v49 }
 0xa0b   :  { %v2810_v30 = vadd.f32 %v3296_v20, %v2795_v34  ;;  %v3480_v28 = vpop.f32.mrb[80].mxu1 }
 0xa0c   :  { %v3481_v3 = vpop.f32.mrb[81].mxu1 }
 0xa0d   :  { %v3482_v40 = vadd.f32 %v3481_v3, %v3480_v28  ;;  %v3483_v9 = vpop.f32.mrb[82].mxu1  ;;  %v2850_v57 = vpack.c.bf16 %v2810_v30, %v2809_v17 }
 0xa0e   :  { %v3484_v39 = vpop.f32.mrb[83].mxu1 }
 0xa0f   :  { %v2796_v44 = vadd.f32 %v3482_v40, %v5413_v12  ;;  %v3485_v11 = vadd.f32 %v3484_v39, %v3483_v9  ;;  %2998 = vmatprep.mubr.bf16.mxu0 %v2850_v57  ;;  %v5762_v12 = vld [vmem:[#allocation30_spill] sm:$0xff] }
 0xa10   :  { %2999 = vmatmul.mubr.bf16.gmra.mrb[68].mxu0 %v5761_v31  ;;  %v5764_v38 = vpack.c.bf16 %v5762_v12, %v5763_v6 }
 0xa11   :  { %v2797_v23 = vadd.f32 %v3485_v11, %v5417_v29  ;;  %v2811_v14 = vadd.f32 %v3296_v20, %v2796_v44 }
 0xa13   :  { %v2812_v15 = vadd.f32 %v3296_v20, %v2797_v23  ;;  %v3486_v32 = vpop.f32.mrb[84].mxu1 }
 0xa14   :  { %v3487_v52 = vpop.f32.mrb[85].mxu1 }
 0xa15   :  { %v3488_v26 = vadd.f32 %v3487_v52, %v3486_v32  ;;  %v3489_v10 = vpop.f32.mrb[86].mxu1  ;;  %v2852_v36 = vpack.c.bf16 %v2812_v15, %v2811_v14 }
 0xa16   :  { %v3490_v19 = vpop.f32.mrb[87].mxu1 }
 0xa17   :  { %v2798_v33 = vadd.f32 %v3488_v26, %v5421_v24  ;;  %v3491_v13 = vadd.f32 %v3490_v19, %v3489_v10  ;;  %3006 = vmatprep.mubr.bf16.mxu0 %v2852_v36  ;;  %v3297_v24 = vld [vmem:[%s5679_s18] ss:$0 sm:$0xff] }
 0xa18   :  { %3007 = vmatmul.mubr.bf16.gmra.mrb[72].mxu0 %v5764_v38 }
 0xa19   :  { %v2799_v1 = vadd.f32 %v3491_v13, %v5425_v46  ;;  %v2813_v53 = vadd.f32 %v3296_v20, %v2798_v33 }
 0xa1b   :  { %v2814_v29 = vadd.f32 %v3296_v20, %v2799_v1 }
 0xa1d   :  { %v2854_v56 = vpack.c.bf16 %v2814_v29, %v2813_v53 }
 0xa1f   :  { %3014 = vmatprep.mubr.bf16.mxu1 %v2854_v56 }
 0xa20   :  { %3015 = vmatmul.mubr.bf16.vlgmr.msra.gmra.mrb[88].mxu1 %v5767_v21 }
 0xad9   :  { %v3508_v27 = vpop.f32.mrb[64].mxu0 }
 0xada   :  { %v3509_v58 = vpop.f32.mrb[65].mxu0 }
 0xadb   :  { %v3510_v62 = vadd.f32 %v3509_v58, %v3508_v27  ;;  %v3511_v8 = vpop.f32.mrb[66].mxu0 }
 0xadc   :  { %v3512_v42 = vpop.f32.mrb[67].mxu0 }
 0xadd   :  { %v2993_v45 = vadd.f32 %v3510_v62, %v3297_v24  ;;  %v3513_v50 = vadd.f32 %v3512_v42, %v3511_v8 }
 0xadf   :  { %v2996_v46 = vadd.f32 %v3513_v50, %v3297_v24  ;;  %3025 = vadd.xlane.f32.xlu0 %v2993_v45 }
 0xae1   :  { %3027 = vadd.xlane.f32.xlu1 %v2996_v46 }
 0xae3   :  { %v3514_v18 = vpop.f32.mrb[68].mxu0 }
 0xae4   :  { %v3515_v5 = vpop.f32.mrb[69].mxu0 }
 0xae5   :  { %v3516_v37 = vadd.f32 %v3515_v5, %v3514_v18  ;;  %v3517_v54 = vpop.f32.mrb[70].mxu0 }
 0xae6   :  { %v3518_v43 = vpop.f32.mrb[71].mxu0 }
 0xae7   :  { %v3001_v20 = vadd.f32 %v3516_v37, %v3297_v24  ;;  %v3519_v0 = vadd.f32 %v3518_v43, %v3517_v54  ;;  %v5617_v43 = vld [vmem:[%s5680_s19] ss:$0 sm:$0xff]  ;;  %s4341_s19 = smov [#allocation16]  }
 0xae8   :  { %s3162_s4 = sshll.u32 %s4341_s19, 4  ;;  %s3163_s4 = int_to_ptr.vmem [resolvable:$true] %s3162_s4 }
 0xae9   :  { %v3004_v60 = vadd.f32 %v3519_v0, %v3297_v24  ;;  %3029 = vadd.xlane.f32.xlu0 %v3001_v20  ;;  %s4290_s6 = scalar_lea.vmem %s3163_s4, 1024  ;;  %p4295_p9 = scmp.lt.s32.totalorder %s3163_s4, %s3163_s4 }
 0xaea   :  { %p4291_p8 = scmp.ne.s32.totalorder %s3163_s4, %s4290_s6  ;;  %p4296_p10 = scmp.lt.s32.totalorder %s4290_s6, %s4290_s6 }
 0xaeb   :  { %v3520_v63 = vpop.f32.mrb[72].mxu0  ;;  %3031 = vadd.xlane.f32.xlu1 %v3004_v60 }
 0xaec   :  { %v3521_v55 = vpop.f32.mrb[73].mxu0  ;;  %p4297_p11 = por %p4296_p10, %p4295_p9 }
 0xaed   :  { %v3522_v48 = vadd.f32 %v3521_v55, %v3520_v63  ;;  %v3523_v25 = vpop.f32.mrb[74].mxu0  ;;  %v5622_v63 = vld [vmem:[%s5768_s25] ss:$0 sm:$0xff] }
 0xaee   :  { %v3524_v7 = vpop.f32.mrb[75].mxu0  ;;  %p4298_p12 = pnand %p4297_p11, %p4291_p8 }
 0xaef   :  { %v3009_v22 = vadd.f32 %v3522_v48, %v3297_v24  ;;  %v3525_v47 = vadd.f32 %v3524_v7, %v3523_v25 }
 0xaf1   :  { %v3012_v59 = vadd.f32 %v3525_v47, %v3297_v24  ;;  %3033 = vadd.xlane.f32.xlu0 %v3009_v22 }
 0xaf3   :  { %v3526_v61 = vpop.f32.mrb[88].mxu1  ;;  %3035 = vadd.xlane.f32.xlu1 %v3012_v59 }
 0xaf4   :  { %v3527_v51 = vpop.f32.mrb[89].mxu1 }
 0xaf5   :  { %v3528_v49 = vadd.f32 %v3527_v51, %v3526_v61  ;;  %v3529_v2 = vpop.f32.mrb[90].mxu1 }
 0xaf6   :  { %v3530_v34 = vpop.f32.mrb[91].mxu1 }
 0xaf7   :  { %v3017_v17 = vadd.f32 %v3528_v49, %v3297_v24  ;;  %v3531_v30 = vadd.f32 %v3530_v34, %v3529_v2  ;;  %v4106_v49 = vld [vmem:[#allocation2] sm:$0xff] }
 0xaf9   :  { %v3020_v28 = vadd.f32 %v3531_v30, %v3297_v24  ;;  %3037 = vadd.xlane.f32.xlu0 %v3017_v17  ;;  %v4107_v30 = vld [vmem:[#allocation2 + $0x8] sm:$0xff] }
 0xafb   :  { %3039 = vadd.xlane.f32.xlu1 %v3020_v28 }
 0xb6c   :  { %v3026_v3 = vpop.xlane.xlu0 %3025 }
 0xb6d   :  { %v3041_v40 = vmul.f32 0.0078125, %v3026_v3 }
 0xb6e   :  { %v3028_v9 = vpop.xlane.xlu1 %3027 }
 0xb6f   :  { %v3049_v57 = vsub.f32 %v2993_v45, %v3041_v40  ;;  %v3042_v39 = vmul.f32 0.0078125, %v3028_v9 }
 0xb71   :  { %v3050_v44 = vsub.f32 %v2996_v46, %v3042_v39  ;;  %v3057_v11 = vmul.f32 %v3049_v57, %v3049_v57 }
 0xb73   :  { %3065 = vadd.xlane.f32.xlu0 %v3057_v11  ;;  %v3058_v35 = vmul.f32 %v3050_v44, %v3050_v44 }
 0xb75   :  { %3067 = vadd.xlane.f32.xlu1 %v3058_v35 }
 0xb76   :  { %v3030_v16 = vpop.xlane.xlu0 %3029 }
 0xb77   :  { %v3043_v31 = vmul.f32 0.0078125, %v3030_v16 }
 0xb78   :  { %v3032_v23 = vpop.xlane.xlu1 %3031 }
 0xb79   :  { %v5590_v14 = vsub.f32 %v3001_v20, %v3043_v31  ;;  %v3044_v15 = vmul.f32 0.0078125, %v3032_v23 }
 0xb7b   :  { %v5592_v32 = vsub.f32 %v3004_v60, %v3044_v15  ;;  %v3059_v52 = vmul.f32 %v5590_v14, %v5590_v14 }
 0xb7d   :  { %3069 = vadd.xlane.f32.xlu0 %v3059_v52  ;;  %v3060_v26 = vmul.f32 %v5592_v32, %v5592_v32 }
 0xb7e   :  { %v3034_v10 = vpop.xlane.xlu0 %3033 }
 0xb7f   :  { %v3045_v36 = vmul.f32 0.0078125, %v3034_v10  ;;  %3071 = vadd.xlane.f32.xlu1 %v3060_v26  ;;  %v4108_v26 = vld [vmem:[#allocation2 + $0x10] sm:$0xff] }
 0xb80   :  { %v3036_v19 = vpop.xlane.xlu1 %3035 }
 0xb81   :  { %v5598_v33 = vsub.f32 %v3009_v22, %v3045_v36  ;;  %v3046_v13 = vmul.f32 0.0078125, %v3036_v19  ;;  %v4109_v19 = vld [vmem:[#allocation2 + $0x18] sm:$0xff] }
 0xb83   :  { %v5600_v12 = vsub.f32 %v3012_v59, %v3046_v13  ;;  %v3061_v6 = vmul.f32 %v5598_v33, %v5598_v33 }
 0xb85   :  { %3073 = vadd.xlane.f32.xlu0 %v3061_v6  ;;  %v3062_v38 = vmul.f32 %v5600_v12, %v5600_v12 }
 0xb86   :  { %v3038_v1 = vpop.xlane.xlu0 %3037 }
 0xb87   :  { %v3047_v53 = vmul.f32 0.0078125, %v3038_v1  ;;  %3075 = vadd.xlane.f32.xlu1 %v3062_v38 }
 0xb88   :  { %v3040_v29 = vpop.xlane.xlu1 %3039 }
 0xb89   :  { %v5606_v56 = vsub.f32 %v3017_v17, %v3047_v53  ;;  %v3048_v4 = vmul.f32 0.0078125, %v3040_v29 }
 0xb8b   :  { %v5608_v41 = vsub.f32 %v3020_v28, %v3048_v4  ;;  %v3063_v21 = vmul.f32 %v5606_v56, %v5606_v56  ;;  %v4110_v4 = vld [vmem:[#allocation2 + $0x20] sm:$0xff] }
 0xb8d   :  { %3077 = vadd.xlane.f32.xlu0 %v3063_v21  ;;  %v3064_v27 = vmul.f32 %v5608_v41, %v5608_v41 }
 0xb8f   :  { %3079 = vadd.xlane.f32.xlu1 %v3064_v27 }
 0xc00   :  { %v3066_v24 = vpop.xlane.xlu0 %3065 }
 0xc01   :  { %v3081_v58 = vmul.f32 0.0078125, %v3066_v24 }
 0xc02   :  { %v3068_v62 = vpop.xlane.xlu1 %3067 }
 0xc03   :  { %v3089_v8 = vadd.f32 1e-05, %v3081_v58  ;;  %v3082_v42 = vmul.f32 0.0078125, %v3068_v62  ;;  %v4111_v58 = vld [vmem:[#allocation2 + $0x28] sm:$0xff] }
 0xc05   :  { %4090 = vrsqrt.f32 %v3089_v8  ;;  %v3090_v45 = vadd.f32 1e-05, %v3082_v42 }
 0xc07   :  { %4092 = vrsqrt.f32 %v3090_v45 }
 0xc0a   :  { %v3070_v50 = vpop.xlane.xlu0 %3069 }
 0xc0b   :  { %v3083_v46 = vmul.f32 0.0078125, %v3070_v50 }
 0xc0c   :  { %v3072_v18 = vpop.xlane.xlu1 %3071 }
 0xc0d   :  { %v3091_v5 = vadd.f32 1e-05, %v3083_v46  ;;  %v3084_v37 = vmul.f32 0.0078125, %v3072_v18  ;;  %v4112_v46 = vld [vmem:[#allocation2 + $0x30] sm:$0xff] }
 0xc0f   :  { %v4091_v54 = vpop.eup %4090  ;;  %4094 = vrsqrt.f32 %v3091_v5  ;;  %v3092_v20 = vadd.f32 1e-05, %v3084_v37  ;;  %v4113_v37 = vld [vmem:[#allocation2 + $0x38] sm:$0xff] }
 0xc10   :  { %v3105_v0 = vmul.f32 %v4091_v54, %v3049_v57 }
 0xc11   :  { %v4093_v60 = vpop.eup %4092  ;;  %4096 = vrsqrt.f32 %v3092_v20 }
 0xc12   :  { %v3119_v55 = vmul.f32 %v5617_v43, %v3105_v0  ;;  %v3106_v48 = vmul.f32 %v4093_v60, %v3050_v44  ;;  %v3074_v25 = vpop.xlane.xlu0 %3073 }
 0xc13   :  { %v3085_v7 = vmul.f32 0.0078125, %v3074_v25 }
 0xc14   :  { %v3133_v22 = vadd.f32 %v5622_v63, %v3119_v55  ;;  %v3120_v47 = vmul.f32 %v5617_v43, %v3106_v48  ;;  %v3076_v59 = vpop.xlane.xlu1 %3075 }
 0xc15   :  { %v3093_v61 = vadd.f32 1e-05, %v3085_v7  ;;  %v3086_v51 = vmul.f32 0.0078125, %v3076_v59 }
 0xc16   :  { %v3141_v2 = vadd.f32 %v4106_v49, %v3133_v22  ;;  %v3134_v34 = vadd.f32 %v5622_v63, %v3120_v47 }
 0xc17   :  { %4098 = vrsqrt.f32 %v3093_v61  ;;  %v3094_v17 = vadd.f32 1e-05, %v3086_v51 }
 0xc18   :  { %3149 = vst [vmem:[#allocation16] sm:$0xff] %v3141_v2  ;;  %v3142_v28 = vadd.f32 %v4107_v30, %v3134_v34 }
 0xc19   :  { %v4095_v3 = vpop.eup %4094  ;;  %4100 = vrsqrt.f32 %v3094_v17 }
 0xc1a   :  { %3150 = vst [vmem:[#allocation16 + $0x8] sm:$0xff] %v3142_v28  ;;  %v3107_v40 = vmul.f32 %v4095_v3, %v5590_v14  ;;  %v3078_v9 = vpop.xlane.xlu0 %3077 }
 0xc1b   :  { %v4097_v57 = vpop.eup %4096  ;;  %v3087_v39 = vmul.f32 0.0078125, %v3078_v9 }
 0xc1c   :  { %v3121_v44 = vmul.f32 %v5617_v43, %v3107_v40  ;;  %v3108_v11 = vmul.f32 %v4097_v57, %v5592_v32  ;;  %v3080_v35 = vpop.xlane.xlu1 %3079 }
 0xc1d   :  { %v3095_v16 = vadd.f32 1e-05, %v3087_v39  ;;  %v3088_v31 = vmul.f32 0.0078125, %v3080_v35 }
 0xc1e   :  { %v3135_v23 = vadd.f32 %v5622_v63, %v3121_v44  ;;  %v3122_v15 = vmul.f32 %v5617_v43, %v3108_v11 }
 0xc1f   :  { %4102 = vrsqrt.f32 %v3095_v16  ;;  %v3096_v52 = vadd.f32 1e-05, %v3088_v31 }
 0xc20   :  { %v3143_v10 = vadd.f32 %v4108_v26, %v3135_v23  ;;  %v3136_v14 = vadd.f32 %v5622_v63, %v3122_v15 }
 0xc21   :  { %v4099_v36 = vpop.eup %4098  ;;  %4104 = vrsqrt.f32 %v3096_v52 }
 0xc22   :  { %3151 = vst [vmem:[#allocation16 + $0x10] sm:$0xff] %v3143_v10  ;;  %v3144_v13 = vadd.f32 %v4109_v19, %v3136_v14  ;;  %v3109_v32 = vmul.f32 %v4099_v36, %v5598_v33 }
 0xc23   :  { %v4101_v6 = vpop.eup %4100 }
 0xc24   :  { %3152 = vst [vmem:[#allocation16 + $0x18] sm:$0xff] %v3144_v13  ;;  %v3123_v38 = vmul.f32 %v5617_v43, %v3109_v32  ;;  %v3110_v1 = vmul.f32 %v4101_v6, %v5600_v12 }
 0xc26   :  { %v3137_v53 = vadd.f32 %v5622_v63, %v3123_v38  ;;  %v3124_v29 = vmul.f32 %v5617_v43, %v3110_v1 }
 0xc28   :  { %v3145_v21 = vadd.f32 %v4110_v4, %v3137_v53  ;;  %v3138_v27 = vadd.f32 %v5622_v63, %v3124_v29 }
 0xc29   :  { %v4103_v24 = vpop.eup %4102 }
 0xc2a   :  { %3153 = vst [vmem:[#allocation16 + $0x20] sm:$0xff] %v3145_v21  ;;  %v3146_v62 = vadd.f32 %v4111_v58, %v3138_v27  ;;  %v3111_v33 = vmul.f32 %v4103_v24, %v5606_v56 }
 0xc2b   :  { %v4105_v8 = vpop.eup %4104 }
 0xc2c   :  { %3154 = vst [vmem:[#allocation16 + $0x28] sm:$0xff] %v3146_v62  ;;  %v3125_v42 = vmul.f32 %v5617_v43, %v3111_v33  ;;  %v3112_v12 = vmul.f32 %v4105_v8, %v5608_v41 }
 0xc2e   :  { %v3139_v45 = vadd.f32 %v5622_v63, %v3125_v42  ;;  %v3126_v50 = vmul.f32 %v5617_v43, %v3112_v12 }
 0xc30   :  { %v3147_v18 = vadd.f32 %v4112_v46, %v3139_v45  ;;  %v3140_v5 = vadd.f32 %v5622_v63, %v3126_v50 }
 0xc32   :  { %3155 = vst [vmem:[#allocation16 + $0x30] sm:$0xff] %v3147_v18  ;;  %v3148_v54 = vadd.f32 %v4113_v37, %v3140_v5 }
 0xc34   :  { %3156 = vst [vmem:[#allocation16 + $0x38] sm:$0xff] %v3148_v54 }
 0xc35   :  { %4301 = shalt.err (!%p4298_p12)
}
 0xc36   :  { %s5769_s30 = sld [smem:[#allocation42_spill]] }
 0xc3c   :  { %s4302_s8 = scalar_lea.hbm %s5769_s30, 1024 }
 0xc3d   :  { %p4303_p13 = scmp.ne.s32.totalorder %s5769_s30, %s4302_s8  ;;  %p4306_p0 = scmp.lt.u32.totalorder %s4302_s8, %s5769_s30 }
 0xc3f   :  { %p4308_p1 = pnand %p4306_p0, %p4303_p13 }
 0xc41   :  { %4311 = shalt.err (!%p4308_p1)
}
 0xc42   :  { %s5770_s1 = smov 128  }
 0xc43   :  { %3168 = dma.vmem_to_hbm [thread:$0]  %s3163_s4, 1024, %s5769_s30, [#allocation4], %s5770_s1, %s5770_s1, %s5726_s7  }
 0xc44   :  { %4322 = dma.done.wait [#allocation4], 1024  }
 0xc45   :  { %4323 = vsyncadd [#allocation4], 4294966272 }
 0xc46   :  { %3172 = vsyncpa [#allocation3], 1 }
 0xc47   :  { %3173 = vsyncpa [#allocation6], 1 }
 0xc48   :  { %3174 = vsyncpa [#allocation9], 1 }
 0xc49   :  { %3175 = vsyncpa [#allocation12], 1 }
 0xc4a   :  { %3176 = vsyncpa [#allocation15], 1 }
 0xc4b   :  { %3177 = vsyncpa [#allocation4], 1 }

</bundles_post_ra>
